<compile_context>
chip_gen: v6e
topology: v6e:2x2x1
jax: 0.10.0
libtpu: 0.0.40
codegen_flags: <defaults>
</compile_context>

<pallas_src>
import math

import jax
import jax.numpy as jnp
from jax.experimental import pallas as pl
from jax.experimental.pallas import tpu as pltpu


def _gabor_kernel(x_ref, freq_ref, nmu_ref, nhg_ref, o_ref):
    # x_ref:    (tm, F+2)  augmented input  [x | 1 | ||x||^2]
    # freq_ref: (F+2, tn)  rows = [freq_eff ; phase ; 0]
    # nmu_ref:  (F+2, tn)  rows = [-2*mu ; ||mu||^2 ; 1]
    # nhg_ref:  (1,  tn)   -0.5 * gamma
    # o_ref:    (tm, tn)
    x = x_ref[...]                                                       # f32
    s = jnp.dot(x, freq_ref[...], preferred_element_type=jnp.float32)   # x@freq_eff + phase
    d = jnp.dot(x, nmu_ref[...], preferred_element_type=jnp.float32)    # ||x - mu||^2
    o_ref[...] = (jnp.exp(d * nhg_ref[...]) * jnp.sin(s)).astype(o_ref.dtype)


def _round_up(a, b):
    return -(-a // b) * b


def gabor_filter(x, frequency, phase, mu, gamma, weight_scale, *,
                 tm=None, tn=None, out_dtype=None):
    """Pallas GaborFilter forward. x: (..., in_features) -> (..., layer_size)."""
    orig_lead = x.shape[:-1]
    in_features = x.shape[-1]
    layer_size = frequency.shape[1]
    out_dtype = x.dtype if out_dtype is None else out_dtype

    xm = x.reshape(-1, in_features).astype(jnp.float32)
    m_rows = xm.shape[0]

    # ---- tile selection: lane-dense, VMEM-budgeted -------------------------
    if tn is None:
        ln = _round_up(layer_size, 128)
        tn = ln if ln <= 2048 else 1024           # whole L in one tile if it fits
    if tm is None:
        # keep the f32 output tile <= ~4 MiB (x2 double-buffering = 8 MiB) so it
        # fits the v5e 16 MiB scoped default and the v7x 64 MiB physical VMEM.
        budget_rows = max(256, (4 << 20) // (4 * tn))
        budget_rows = (budget_rows // 8) * 8
        tm = min(_round_up(m_rows, 8), budget_rows)
    assert tm % 8 == 0 and tn % 128 == 0

    m_pad = _round_up(m_rows, tm)
    l_pad = _round_up(layer_size, tn)

    # ---- parameter glue (plain JAX; O(F*L) + O(M*F), tiny vs the M*L output)
    freq_f = frequency.astype(jnp.float32)
    mu_f = mu.astype(jnp.float32)
    gamma_f = gamma.astype(jnp.float32)
    phase_f = phase.astype(jnp.float32)

    freq_eff = (2.0 * math.pi * weight_scale) * freq_f * jnp.sqrt(gamma_f)[None, :]
    # Augmented RHS rows so the matmuls carry the bias terms:
    #   [x | 1 | ||x||^2] @ [freq_eff ; phase  ; 0]  = x @ freq_eff + phase
    #   [x | 1 | ||x||^2] @ [-2*mu   ; ||mu||^2; 1]  = ||x - mu||^2
    freq_aug = jnp.concatenate(
        [freq_eff, phase_f[None, :], jnp.zeros((1, layer_size), jnp.float32)],
        axis=0)
    nmu_aug = jnp.concatenate(
        [-2.0 * mu_f,
         jnp.sum(mu_f * mu_f, axis=0, keepdims=True),
         jnp.ones((1, layer_size), jnp.float32)],
        axis=0)
    nhg = (-0.5 * gamma_f)[None, :]

    x_aug = jnp.concatenate(
        [xm,
         jnp.ones((m_rows, 1), jnp.float32),
         jnp.sum(xm * xm, axis=1, keepdims=True)],
        axis=1)                                                   # (M, F+2)
    k_aug = in_features + 2

    # zero-pad to the tile grid (sliced away after the call)
    if m_pad != m_rows:
        x_aug = jnp.pad(x_aug, ((0, m_pad - m_rows), (0, 0)))
    if l_pad != layer_size:
        pad_l = ((0, 0), (0, l_pad - layer_size))
        freq_aug = jnp.pad(freq_aug, pad_l)
        nmu_aug = jnp.pad(nmu_aug, pad_l)
        nhg = jnp.pad(nhg, pad_l)

    # L innermost: the x block index (i, 0) is constant across the inner sweep
    # so its DMA is not re-issued.
    grid = (m_pad // tm, l_pad // tn)

    cost = pl.CostEstimate(
        flops=2 * m_pad * l_pad * k_aug * 2 + 3 * m_pad * l_pad,
        transcendentals=2 * m_pad * l_pad,
        bytes_accessed=4 * (m_pad * k_aug + 2 * k_aug * l_pad + l_pad
                            + m_pad * l_pad),
    )

    out = pl.pallas_call(
        _gabor_kernel,
        out_shape=jax.ShapeDtypeStruct((m_pad, l_pad), out_dtype),
        grid_spec=pltpu.PrefetchScalarGridSpec(
            num_scalar_prefetch=0,
            grid=grid,
            in_specs=[
                pl.BlockSpec((tm, k_aug), lambda i, j: (i, 0)),
                pl.BlockSpec((k_aug, tn), lambda i, j: (0, j)),
                pl.BlockSpec((k_aug, tn), lambda i, j: (0, j)),
                pl.BlockSpec((1, tn), lambda i, j: (0, j)),
            ],
            out_specs=pl.BlockSpec((tm, tn), lambda i, j: (i, j)),
        ),
        compiler_params=pltpu.CompilerParams(
            dimension_semantics=("parallel", "parallel"),
            vmem_limit_bytes=48 << 20,
        ),
        cost_estimate=cost,
    )(x_aug, freq_aug, nmu_aug, nhg)

    out = out[:m_rows, :layer_size]
    return out.reshape(*orig_lead, layer_size)


def gabor_reference(x, frequency, phase, mu, gamma, weight_scale):
    """Pure-JAX transcription of the PyTorch forward (correctness check)."""
    freq = weight_scale * (frequency * jnp.sqrt(gamma))
    x_c = x[..., None] - mu                                   # (..., F, L)
    x_c = jnp.sum(jnp.square(x_c), axis=-2)                   # (..., L)
    x_c = jnp.exp(-0.5 * x_c * gamma)
    return x_c * jnp.sin(jnp.matmul(x, 2.0 * math.pi * freq) + phase)


if __name__ == "__main__":
    # Module config (small, consistent with GaborFilter.__init__)
    in_features = 4
    layer_size = 256
    nr_layers = 3
    input_scale = 10.0
    alpha, beta = 6.0, 1.0
    weight_scale = input_scale / math.sqrt(nr_layers + 1)

    key = jax.random.PRNGKey(0)
    k_x, k_f, k_p, k_m, k_g = jax.random.split(key, 5)

    # Deterministic parameter init mirroring reset_parameters():
    #  - frequency: xavier_uniform -> U(-b, b), b = sqrt(6/(fan_in+fan_out))
    #  - phase:     U(-pi, pi)
    #  - mu:        U(-1, 1)
    #  - gamma:     Gamma(alpha, scale=1/beta)
    xav = math.sqrt(6.0 / (in_features + layer_size))
    frequency = jax.random.uniform(k_f, (in_features, layer_size),
                                   jnp.float32, -xav, xav)
    phase = jax.random.uniform(k_p, (layer_size,), jnp.float32, -math.pi, math.pi)
    mu = jax.random.uniform(k_m, (in_features, layer_size), jnp.float32, -1.0, 1.0)
    gamma = jax.random.gamma(k_g, alpha, (layer_size,), jnp.float32) / beta

    # Example input: (batch=2, points=64, in_features=4)
    x = jax.random.normal(k_x, (2, 64, in_features), jnp.float32)

    out = gabor_filter(x, frequency, phase, mu, gamma, weight_scale)
    out = jax.block_until_ready(out)

    ref = gabor_reference(x, frequency, phase, mu, gamma, weight_scale)
    assert out.shape == (2, 64, layer_size)
    assert jnp.allclose(out, ref, rtol=1e-4, atol=1e-4), \
        f"max abs err {jnp.max(jnp.abs(out - ref))}"

    print("KERNEL_OK")
</pallas_src>

<mosaic_0001>
module attributes {stable_mosaic.version = 11 : i64} {
  func.func @_gabor_kernel(%arg0: i32, %arg1: i32, %arg2: memref<128x6xf32, #tpu.memory_space<vmem>>, %arg3: memref<6x256xf32, #tpu.memory_space<vmem>>, %arg4: memref<6x256xf32, #tpu.memory_space<vmem>>, %arg5: memref<1x256xf32, #tpu.memory_space<vmem>>, %arg6: memref<128x256xf32, #tpu.memory_space<vmem>>) attributes {dimension_semantics = [#tpu.dimension_semantics<parallel>, #tpu.dimension_semantics<parallel>], iteration_bounds = array<i64: 1, 1>, scalar_prefetch = 0 : i64, scratch_operands = 0 : i64, tpu.core_type = #tpu.core_type<tc>, window_params = [{transform_indices = @transform_0, window_bounds = array<i64: 128, 6>}, {transform_indices = @transform_1, window_bounds = array<i64: 6, 256>}, {transform_indices = @transform_2, window_bounds = array<i64: 6, 256>}, {transform_indices = @transform_3, window_bounds = array<i64: 1, 256>}, {transform_indices = @transform_4, window_bounds = array<i64: 128, 256>}]} {
    %c0 = arith.constant 0 : index
    %c0_0 = arith.constant 0 : index
    %0 = vector.load %arg2[%c0, %c0_0] : memref<128x6xf32, #tpu.memory_space<vmem>>, vector<128x6xf32>
    %c0_1 = arith.constant 0 : index
    %c0_2 = arith.constant 0 : index
    %1 = vector.load %arg3[%c0_1, %c0_2] : memref<6x256xf32, #tpu.memory_space<vmem>>, vector<6x256xf32>
    %cst = arith.constant dense<0.000000e+00> : vector<128x256xf32>
    %2 = tpu.matmul %0, %1, %cst {dimension_numbers = #tpu.dot_dimension_numbers<[1], [0], [0], [1], [0, 0, 1, 1], [], []>} : vector<128x6xf32>, vector<6x256xf32>, vector<128x256xf32> -> vector<128x256xf32>
    %c0_3 = arith.constant 0 : index
    %c0_4 = arith.constant 0 : index
    %3 = vector.load %arg4[%c0_3, %c0_4] : memref<6x256xf32, #tpu.memory_space<vmem>>, vector<6x256xf32>
    %cst_5 = arith.constant dense<0.000000e+00> : vector<128x256xf32>
    %4 = tpu.matmul %0, %3, %cst_5 {dimension_numbers = #tpu.dot_dimension_numbers<[1], [0], [0], [1], [0, 0, 1, 1], [], []>} : vector<128x6xf32>, vector<6x256xf32>, vector<128x256xf32> -> vector<128x256xf32>
    %c0_6 = arith.constant 0 : index
    %c0_7 = arith.constant 0 : index
    %5 = vector.load %arg5[%c0_6, %c0_7] : memref<1x256xf32, #tpu.memory_space<vmem>>, vector<1x256xf32>
    %6 = vector.broadcast %5 : vector<1x256xf32> to vector<128x256xf32>
    %7 = arith.mulf %4, %6 : vector<128x256xf32>
    %8 = math.exp %7 : vector<128x256xf32>
    %9 = math.sin %2 : vector<128x256xf32>
    %10 = arith.mulf %8, %9 : vector<128x256xf32>
    %c0_8 = arith.constant 0 : index
    %c0_9 = arith.constant 0 : index
    %11 = vector.load %arg6[%c0_8, %c0_9] : memref<128x256xf32, #tpu.memory_space<vmem>>, vector<128x256xf32>
    tpu.vector_store %arg6[%c0_8, %c0_9], %10 {strides = array<i32>} : memref<128x256xf32, #tpu.memory_space<vmem>>, vector<128x256xf32>,
    return
  }
  func.func @transform_0(%arg0: i32, %arg1: i32) -> (i32, i32) {
    %c0_i32 = arith.constant 0 : i32
    %c0_i32_0 = arith.constant 0 : i32
    return %arg0, %c0_i32 : i32, i32
  }
  func.func @transform_1(%arg0: i32, %arg1: i32) -> (i32, i32) {
    %c0_i32 = arith.constant 0 : i32
    %c0_i32_0 = arith.constant 0 : i32
    return %c0_i32, %arg1 : i32, i32
  }
  func.func @transform_2(%arg0: i32, %arg1: i32) -> (i32, i32) {
    %c0_i32 = arith.constant 0 : i32
    %c0_i32_0 = arith.constant 0 : i32
    return %c0_i32, %arg1 : i32, i32
  }
  func.func @transform_3(%arg0: i32, %arg1: i32) -> (i32, i32) {
    %c0_i32 = arith.constant 0 : i32
    %c0_i32_0 = arith.constant 0 : i32
    return %c0_i32, %arg1 : i32, i32
  }
  func.func @transform_4(%arg0: i32, %arg1: i32) -> (i32, i32) {
    %c0_i32 = arith.constant 0 : i32
    return %arg0, %arg1 : i32, i32
  }
}

</mosaic_0001>

<bundles_post_ra>
// kernel: tpu_custom_call.1
= control target key start
LH: loop header
LB: loop body
LE: loop exit
PB: predicated region body
PF: predicated region fallthrough
CT: control target
= control target key end

     0   :  { %vm85_vm0 = vcmask 1045504   ;;  %v4454_v2 = vmov 0.0   ;;  %vm36_vm1 = vcmask 48128   ;;  %s8810_s0 = inlined_call_operand.vmem [shape: f32[128,6], index: 0, kind: input, shape index: {}]   ;;  %s8811_s1 = inlined_call_operand.vmem [shape: f32[6,256], index: 1, kind: input, shape index: {}]   ;;  %s8812_s2 = inlined_call_operand.vmem [shape: f32[6,256], index: 2, kind: input, shape index: {}]   ;;  %s8813_s3 = inlined_call_operand.vmem [shape: f32[1,256], index: 3, kind: input, shape index: {}]   ;;  %s8814_s4 = inlined_call_operand.hbm [shape: f32[128,256], index: 4, kind: output, shape index: {}]  }
   0x1   :  { %v35_v0 = vld [vmem:[%s8811_s1 + $0x8] sm:$0x3f]  ;;  %v34_v1 = vld [vmem:[%s8811_s1] sm:$0x3f]  ;;  %156 = vmatprep.mubr.f32.mxu0 %v4454_v2  ;;  %325 = vmatprep.mubr.f32.mxu1 %v4454_v2 }
   0x2   :  { %3938 = vmatprep.subr.msk.mxu0 %vm85_vm0, %v35_v0  ;;  %v18_v3 = vld [vmem:[%s8810_s0] sm:$0xff]  ;;  %v19_v4 = vld [vmem:[%s8810_s0 + $0x8] sm:$0xff] }
   0x3   :  { %3939 = vmatpush1.msk.msra.mxu0 %vm85_vm0, %v34_v1  ;;  %v254_v5 = vld [vmem:[%s8812_s2 + $0x8] sm:$0x3f]  ;;  %v253_v6 = vld [vmem:[%s8812_s2] sm:$0x3f] }
   0x4   :  { %3940 = vmatmul.mubr.msk.f32.vlgmr.msra.gmra.mxu0 %vm36_vm1, %v18_v3  ;;  %3956 = vmatprep.subr.msk.mxu1 %vm85_vm0, %v254_v5 }
   0x5   :  { %162 = vmatprep.mubr.f32.mxu0 %v4454_v2 }
   0x8   :  { %3941 = vmatmul.mubr.msk.f32.gmra.mxu0 %vm36_vm1, %v19_v4 }
   0x9   :  { %9 = vsyncpa [#allocation3], 0  ;;  %168 = vmatprep.mubr.f32.mxu0 %v4454_v2  ;;  %v20_v7 = vld [vmem:[%s8810_s0 + $0x10] sm:$0xff]  ;;  %3957 = vmatpush1.msk.msra.mxu1 %vm85_vm0, %v253_v6  ;;  %v21_v8 = vld [vmem:[%s8810_s0 + $0x18] sm:$0xff]  ;;  %v8830_v36 = vmov 920167782  }
   0xa   :  { %3958 = vmatmul.mubr.msk.f32.vlgmr.msra.gmra.mxu1 %vm36_vm1, %v18_v3  ;;  %v22_v9 = vld [vmem:[%s8810_s0 + $0x20] sm:$0xff]  ;;  %v23_v10 = vld [vmem:[%s8810_s0 + $0x28] sm:$0xff]  ;;  %v24_v11 = vld [vmem:[%s8810_s0 + $0x30] sm:$0xff]  ;;  %v8818_v39 = vmov 1326507024  }
   0xb   :  { %331 = vmatprep.mubr.f32.mxu1 %v4454_v2  ;;  %v25_v12 = vld [vmem:[%s8810_s0 + $0x38] sm:$0xff]  ;;  %v26_v13 = vld [vmem:[%s8810_s0 + $0x40] sm:$0xff]  ;;  %v27_v14 = vld [vmem:[%s8810_s0 + $0x48] sm:$0xff]  ;;  %v8821_v42 = vmov 2102212464  }
   0xc   :  { %3942 = vmatmul.mubr.msk.f32.gmra.mxu0 %vm36_vm1, %v20_v7  ;;  %v28_v15 = vld [vmem:[%s8810_s0 + $0x50] sm:$0xff]  ;;  %v29_v16 = vld [vmem:[%s8810_s0 + $0x58] sm:$0xff]  ;;  %v30_v17 = vld [vmem:[%s8810_s0 + $0x60] sm:$0xff]  ;;  %v8827_v45 = vmov 2475754826  }
   0xd   :  { %174 = vmatprep.mubr.f32.mxu0 %v4454_v2  ;;  %v31_v18 = vld [vmem:[%s8810_s0 + $0x68] sm:$0xff]  ;;  %v32_v19 = vld [vmem:[%s8810_s0 + $0x70] sm:$0xff]  ;;  %v33_v20 = vld [vmem:[%s8810_s0 + $0x78] sm:$0xff]  ;;  %v8825_v47 = vmov 2131351028  }
   0xe   :  { %3959 = vmatmul.mubr.msk.f32.gmra.mxu1 %vm36_vm1, %v19_v4  ;;  %v8841_v52 = vmov 683565275  }
   0xf   :  { %337 = vmatprep.mubr.f32.mxu1 %v4454_v2 }
  0x10   :  { %3943 = vmatmul.mubr.msk.f32.gmra.mxu0 %vm36_vm1, %v21_v8 }
  0x11   :  { %180 = vmatprep.mubr.f32.mxu0 %v4454_v2 }
  0x12   :  { %3960 = vmatmul.mubr.msk.f32.gmra.mxu1 %vm36_vm1, %v20_v7 }
  0x13   :  { %343 = vmatprep.mubr.f32.mxu1 %v4454_v2 }
  0x14   :  { %3944 = vmatmul.mubr.msk.f32.gmra.mxu0 %vm36_vm1, %v22_v9 }
  0x15   :  { %186 = vmatprep.mubr.f32.mxu0 %v4454_v2 }
  0x16   :  { %3961 = vmatmul.mubr.msk.f32.gmra.mxu1 %vm36_vm1, %v21_v8 }
  0x17   :  { %349 = vmatprep.mubr.f32.mxu1 %v4454_v2 }
  0x18   :  { %3945 = vmatmul.mubr.msk.f32.gmra.mxu0 %vm36_vm1, %v23_v10 }
  0x19   :  { %192 = vmatprep.mubr.f32.mxu0 %v4454_v2 }
  0x1a   :  { %3962 = vmatmul.mubr.msk.f32.gmra.mxu1 %vm36_vm1, %v22_v9 }
  0x1b   :  { %355 = vmatprep.mubr.f32.mxu1 %v4454_v2 }
  0x1c   :  { %3946 = vmatmul.mubr.msk.f32.gmra.mxu0 %vm36_vm1, %v24_v11 }
  0x1d   :  { %198 = vmatprep.mubr.f32.mxu0 %v4454_v2 }
  0x1e   :  { %3963 = vmatmul.mubr.msk.f32.gmra.mxu1 %vm36_vm1, %v23_v10 }
  0x1f   :  { %361 = vmatprep.mubr.f32.mxu1 %v4454_v2 }
  0x20   :  { %3947 = vmatmul.mubr.msk.f32.gmra.mxu0 %vm36_vm1, %v25_v12 }
  0x21   :  { %204 = vmatprep.mubr.f32.mxu0 %v4454_v2 }
  0x22   :  { %3964 = vmatmul.mubr.msk.f32.gmra.mxu1 %vm36_vm1, %v24_v11 }
  0x23   :  { %367 = vmatprep.mubr.f32.mxu1 %v4454_v2 }
  0x24   :  { %3948 = vmatmul.mubr.msk.f32.gmra.mxu0 %vm36_vm1, %v26_v13 }
  0x25   :  { %210 = vmatprep.mubr.f32.mxu0 %v4454_v2 }
  0x26   :  { %3965 = vmatmul.mubr.msk.f32.gmra.mxu1 %vm36_vm1, %v25_v12 }
  0x27   :  { %373 = vmatprep.mubr.f32.mxu1 %v4454_v2 }
  0x28   :  { %3949 = vmatmul.mubr.msk.f32.gmra.mxu0 %vm36_vm1, %v27_v14 }
  0x29   :  { %216 = vmatprep.mubr.f32.mxu0 %v4454_v2 }
  0x2a   :  { %3966 = vmatmul.mubr.msk.f32.gmra.mxu1 %vm36_vm1, %v26_v13 }
  0x2b   :  { %379 = vmatprep.mubr.f32.mxu1 %v4454_v2 }
  0x2c   :  { %3950 = vmatmul.mubr.msk.f32.gmra.mxu0 %vm36_vm1, %v28_v15 }
  0x2d   :  { %222 = vmatprep.mubr.f32.mxu0 %v4454_v2 }
  0x2e   :  { %3967 = vmatmul.mubr.msk.f32.gmra.mxu1 %vm36_vm1, %v27_v14 }
  0x2f   :  { %385 = vmatprep.mubr.f32.mxu1 %v4454_v2 }
  0x30   :  { %3951 = vmatmul.mubr.msk.f32.gmra.mxu0 %vm36_vm1, %v29_v16 }
  0x31   :  { %228 = vmatprep.mubr.f32.mxu0 %v4454_v2 }
  0x32   :  { %3968 = vmatmul.mubr.msk.f32.gmra.mxu1 %vm36_vm1, %v28_v15 }
  0x33   :  { %391 = vmatprep.mubr.f32.mxu1 %v4454_v2 }
  0x34   :  { %3952 = vmatmul.mubr.msk.f32.gmra.mxu0 %vm36_vm1, %v30_v17 }
  0x35   :  { %234 = vmatprep.mubr.f32.mxu0 %v4454_v2 }
  0x36   :  { %3969 = vmatmul.mubr.msk.f32.gmra.mxu1 %vm36_vm1, %v29_v16 }
  0x37   :  { %397 = vmatprep.mubr.f32.mxu1 %v4454_v2 }
  0x38   :  { %3953 = vmatmul.mubr.msk.f32.gmra.mxu0 %vm36_vm1, %v31_v18 }
  0x39   :  { %240 = vmatprep.mubr.f32.mxu0 %v4454_v2 }
  0x3a   :  { %3970 = vmatmul.mubr.msk.f32.gmra.mxu1 %vm36_vm1, %v30_v17 }
  0x3b   :  { %403 = vmatprep.mubr.f32.mxu1 %v4454_v2 }
  0x3c   :  { %3954 = vmatmul.mubr.msk.f32.gmra.mxu0 %vm36_vm1, %v32_v19 }
  0x3d   :  { %246 = vmatprep.mubr.f32.mxu0 %v4454_v2 }
  0x3e   :  { %3971 = vmatmul.mubr.msk.f32.gmra.mxu1 %vm36_vm1, %v31_v18 }
  0x3f   :  { %409 = vmatprep.mubr.f32.mxu1 %v4454_v2 }
  0x40   :  { %3955 = vmatmul.mubr.msk.f32.gmra.mxu0 %vm36_vm1, %v33_v20 }
  0x42   :  { %3972 = vmatmul.mubr.msk.f32.gmra.mxu1 %vm36_vm1, %v32_v19 }
  0x43   :  { %415 = vmatprep.mubr.f32.mxu1 %v4454_v2 }
  0x46   :  { %3973 = vmatmul.mubr.msk.f32.gmra.mxu1 %vm36_vm1, %v33_v20 }
  0xc4   :  { %v4617_v21 = vpop.f32.mrf.mxu0 }
  0xc5   :  { %v533_v22 = vand.u32 2139095040, %v4617_v21  ;;  %v530_v38 = vand.u32 2147483647, %v4617_v21 }
  0xc6   :  { %v4620_v26 = vpop.f32.mrf.mxu0 }
  0xc7   :  { %v534_v23 = vshrl.u32 %v533_v22, 23  ;;  %v637_v27 = vand.u32 2139095040, %v4620_v26  ;;  %v537_v57 = vand.u32 8388607, %v530_v38  ;;  %v634_v8 = vand.u32 2147483647, %v4620_v26 }
  0xc8   :  { %v4623_v32 = vpop.f32.mrf.mxu0 }
  0xc9   :  { %v3974_v24 = vadd.s32 4294967169, %v534_v23  ;;  %v638_v29 = vshrl.u32 %v637_v27, 23  ;;  %v741_v35 = vand.u32 2139095040, %v4623_v32  ;;  %v538_v3 = vor.u32 8388608, %v537_v57 }
  0xca   :  { %v4660_v10 = vpop.f32.mrf.mxu0  ;;  %v641_v14 = vand.u32 8388607, %v634_v8 }
  0xcb   :  { %v540_v25 = vadd.s32 1, %v3974_v24  ;;  %v3978_v31 = vadd.s32 4294967169, %v638_v29  ;;  %v742_v44 = vshrl.u32 %v741_v35, 23  ;;  %v4666_v13 = vshll.u32 %v538_v3, 8 }
  0xcc   :  { %v845_v15 = vand.u32 2139095040, %v4660_v10 }
  0xcd   :  { %vm541_vm2 = vcmp.gt.s32.totalorder %v540_v25, 0  ;;  %v644_v34 = vadd.s32 1, %v3978_v31  ;;  %v3982_v59 = vadd.s32 4294967169, %v742_v44 }
  0xce   :  { %v542_v28 = vsel %vm541_vm2, %v540_v25, 0 }
  0xcf   :  { %v544_v30 = vand.u32 31, %v542_v28  ;;  %v4629_v41 = vshrl.u32 %v542_v28, 5  ;;  %vm645_vm3 = vcmp.gt.s32.totalorder %v644_v34, 0  ;;  %v748_v2 = vadd.s32 1, %v3982_v59 }
  0xd0   :  { %v646_v58 = vsel %vm645_vm3, %v644_v34, 0  ;;  %v846_v34 = vshrl.u32 %v845_v15, 23 }
  0xd1   :  { %v545_v33 = vsub.s32 32, %v544_v30  ;;  %v556_v43 = vshll.u32 %v8821_v42, %v544_v30  ;;  %v559_v50 = vshll.u32 %v8830_v36, %v544_v30  ;;  %v547_v53 = vshll.u32 %v8841_v52, %v544_v30 }
  0xd2   :  { %v550_v54 = vshll.u32 %v8827_v45, %v544_v30  ;;  %v553_v55 = vshll.u32 %v8825_v47, %v544_v30  ;;  %vm565_vm4 = vcmp.lt.s32.totalorder %v4629_v41, 4  ;;  %v648_v1 = vand.u32 31, %v646_v58 }
  0xd3   :  { %v557_v37 = vshrl.u32 %v8830_v36, %v545_v33  ;;  %v560_v40 = vshrl.u32 %v8818_v39, %v545_v33  ;;  %v548_v46 = vshrl.u32 %v8827_v45, %v545_v33  ;;  %v551_v48 = vshrl.u32 %v8825_v47, %v545_v33 }
  0xd4   :  { %v554_v49 = vshrl.u32 %v8821_v42, %v545_v33  ;;  %vm562_vm5 = vcmp.lt.s32.totalorder %v4629_v41, 1  ;;  %vm564_vm6 = vcmp.lt.s32.totalorder %v4629_v41, 3  ;;  %vm563_vm7 = vcmp.lt.s32.totalorder %v4629_v41, 2 }
  0xd5   :  { %v558_v51 = vor.u32 %v557_v37, %v556_v43  ;;  %v561_v56 = vor.u32 %v560_v40, %v559_v50  ;;  %v549_v60 = vor.u32 %v548_v46, %v547_v53  ;;  %v552_v61 = vor.u32 %v551_v48, %v550_v54 }
  0xd6   :  { %v555_v62 = vor.u32 %v554_v49, %v553_v55  ;;  %v4658_v9 = vsub.s32 32, %v648_v1  ;;  %vm749_vm8 = vcmp.gt.s32.totalorder %v748_v2, 0  ;;  %v546_v20 = vshrl.u32 %v8841_v52, %v545_v33 }
  0xd7   :  { %v571_v63 = vsel %vm565_vm4, %v558_v51, 920167782  ;;  %v575_v0 = vsel %vm565_vm4, %v561_v56, 1326507024  ;;  %v570_v4 = vsel %vm562_vm5, %v549_v60, %v552_v61  ;;  %v750_v19 = vsel %vm749_vm8, %v748_v2, 0 }
  0xd8   :  { %v572_v5 = vsel %vm564_vm6, %v555_v62, %v571_v63  ;;  %v574_v6 = vsel %vm562_vm5, %v552_v61, %v555_v62  ;;  %v576_v7 = vsel %vm564_vm6, %v558_v51, %v575_v0  ;;  %v661_v18 = vshrl.u32 %v8830_v36, %v4658_v9 }
  0xd9   :  { %v573_v11 = vsel %vm563_vm7, %v570_v4, %v572_v5  ;;  %v577_v12 = vsel %vm563_vm7, %v574_v6, %v576_v7  ;;  %v4683_v24 = vshrl.u32 %v646_v58, 5  ;;  %v652_v25 = vshrl.u32 %v8827_v45, %v4658_v9 }
  0xda   :  { %v4672_v16 = vmul.u32.u64.low %v4666_v13, %v573_v11  ;;  %v4673_v17 = vmul.u32.u64.high %v4666_v13, %v573_v11, %v4672_v16  ;;  %v4680_v22 = vmul.u32.u64.low %v4666_v13, %v577_v12  ;;  %v4681_v23 = vmul.u32.u64.high %v4666_v13, %v577_v12, %v4680_v22 }
  0xdb   :  { %v655_v27 = vshrl.u32 %v8825_v47, %v4658_v9  ;;  %v660_v28 = vshll.u32 %v8821_v42, %v648_v1  ;;  %v664_v29 = vshrl.u32 %v8818_v39, %v4658_v9  ;;  %v567_v30 = vsel %vm565_vm4, %v555_v62, 2102212464 }
  0xdc   :  { %v658_v31 = vshrl.u32 %v8821_v42, %v4658_v9  ;;  %v752_v33 = vand.u32 31, %v750_v19  ;;  %v651_v35 = vshll.u32 %v8841_v52, %v648_v1  ;;  %v654_v37 = vshll.u32 %v8827_v45, %v648_v1 }
  0xdd   :  { %v662_v40 = vor.u32 %v661_v18, %v660_v28  ;;  %v663_v43 = vshll.u32 %v8830_v36, %v648_v1  ;;  %v566_v44 = vsel %vm562_vm5, %v546_v20, %v549_v60  ;;  %v642_v46 = vor.u32 8388608, %v641_v14 }
  0xde   :  { %v657_v48 = vshll.u32 %v8825_v47, %v648_v1  ;;  %v8820_v49 = vand.u32 2147483647, %v4623_v32  ;;  %v568_v50 = vsel %vm564_vm6, %v552_v61, %v567_v30  ;;  %v4705_v51 = vor.u32 %v652_v25, %v651_v35 }
  0xdf   :  { %v4707_v53 = vor.u32 %v655_v27, %v654_v37  ;;  %v665_v54 = vor.u32 %v664_v29, %v663_v43  ;;  %vm669_vm9 = vcmp.lt.s32.totalorder %v4683_v24, 4  ;;  %v4710_v56 = vsub.s32 32, %v752_v33  ;;  %v4776_v43 = vpop.f32.mrf.mxu0 }
  0xe0   :  { %v659_v55 = vor.u32 %v658_v31, %v657_v48  ;;  %v3986_v57 = vadd.s32 4294967169, %v846_v34  ;;  %v588_v58 = vadd.s32 1, %v4673_v17  ;;  %v675_v59 = vsel %vm669_vm9, %v662_v40, 920167782 }
  0xe1   :  { %v569_v60 = vsel %vm563_vm7, %v566_v44, %v568_v50  ;;  %vm587_vm10 = vc.u32 %v4681_v23, %v4672_v16  ;;  %v4721_v61 = vand.u32 8388607, %v8820_v49  ;;  %vm666_vm11 = vcmp.lt.s32.totalorder %v4683_v24, 1 }
  0xe2   :  { %vm668_vm12 = vcmp.lt.s32.totalorder %v4683_v24, 3  ;;  %v679_v62 = vsel %vm669_vm9, %v665_v54, 1326507024  ;;  %v4727_v63 = vshll.u32 %v642_v46, 8  ;;  %v674_v41 = vsel %vm666_vm11, %v4705_v51, %v4707_v53 }
  0xe3   :  { %v676_v0 = vsel %vm668_vm12, %v659_v55, %v675_v59  ;;  %v765_v1 = vshrl.u32 %v8830_v36, %v4710_v56  ;;  %v852_v2 = vadd.s32 1, %v3986_v57  ;;  %v585_v3 = vmul.u32 %v4666_v13, %v569_v60 }
  0xe4   :  { %v589_v4 = vsel %vm587_vm10, %v588_v58, %v4673_v17  ;;  %vm667_vm13 = vcmp.lt.s32.totalorder %v4683_v24, 2  ;;  %v678_v5 = vsel %vm666_vm11, %v4707_v53, %v659_v55  ;;  %v680_v6 = vsel %vm668_vm12, %v662_v40, %v679_v62 }
  0xe5   :  { %v756_v7 = vshrl.u32 %v8827_v45, %v4710_v56  ;;  %v764_v11 = vshll.u32 %v8821_v42, %v752_v33  ;;  %v768_v12 = vshrl.u32 %v8818_v39, %v4710_v56  ;;  %v677_v13 = vsel %vm667_vm13, %v674_v41, %v676_v0 }
  0xe6   :  { %v4752_v14 = vshrl.u32 %v750_v19, 5  ;;  %v759_v15 = vshrl.u32 %v8825_v47, %v4710_v56  ;;  %v762_v17 = vshrl.u32 %v8821_v42, %v4710_v56  ;;  %v755_v18 = vshll.u32 %v8841_v52, %v752_v33 }
  0xe7   :  { %v766_v20 = vor.u32 %v765_v1, %v764_v11  ;;  %v767_v22 = vshll.u32 %v8830_v36, %v752_v33  ;;  %vm853_vm14 = vcmp.gt.s32.totalorder %v852_v2, 0  ;;  %v4760_v25 = vadd.s32 %v589_v4, %v585_v3 }
  0xe8   :  { %v681_v27 = vsel %vm667_vm13, %v678_v5, %v680_v6  ;;  %v758_v19 = vshll.u32 %v8827_v45, %v752_v33  ;;  %v761_v28 = vshll.u32 %v8825_v47, %v752_v33  ;;  %v4771_v31 = vor.u32 %v756_v7, %v755_v18 }
  0xe9   :  { %v4767_v29 = vmul.u32.u64.low %v4727_v63, %v677_v13  ;;  %v4768_v30 = vmul.u32.u64.high %v4727_v63, %v677_v13, %v4767_v29  ;;  %v769_v34 = vor.u32 %v768_v12, %v767_v22  ;;  %vm773_vm15 = vcmp.lt.s32.totalorder %v4752_v14, 4 }
  0xea   :  { %v4773_v35 = vor.u32 %v759_v15, %v758_v19  ;;  %v763_v37 = vor.u32 %v762_v17, %v761_v28  ;;  %v854_v40 = vsel %vm853_vm14, %v852_v2, 0  ;;  %v779_v33 = vsel %vm773_vm15, %v766_v20, 920167782 }
  0xeb   :  { %v4779_v44 = vmul.u32.u64.low %v4727_v63, %v681_v27  ;;  %v4780_v46 = vmul.u32.u64.high %v4727_v63, %v681_v27, %v4779_v44  ;;  %v650_v48 = vshrl.u32 %v8841_v52, %v4658_v9  ;;  %v671_v50 = vsel %vm669_vm9, %v659_v55, 2102212464 }
  0xec   :  { %vm770_vm0 = vcmp.lt.s32.totalorder %v4752_v14, 1  ;;  %vm772_vm1 = vcmp.lt.s32.totalorder %v4752_v14, 3  ;;  %v783_v54 = vsel %vm773_vm15, %v769_v34, 1326507024  ;;  %v856_v57 = vand.u32 31, %v854_v40 }
  0xed   :  { %v949_v58 = vand.u32 2139095040, %v4776_v43  ;;  %v591_v59 = vadd.s32 536870912, %v4760_v25  ;;  %v746_v60 = vor.u32 8388608, %v4721_v61  ;;  %v778_v9 = vsel %vm770_vm0, %v4771_v31, %v4773_v35 }
  0xee   :  { %v780_v55 = vsel %vm772_vm1, %v763_v37, %v779_v33  ;;  %v670_v62 = vsel %vm666_vm11, %v650_v48, %v4705_v51  ;;  %v672_v41 = vsel %vm668_vm12, %v4707_v53, %v671_v50  ;;  %vm771_vm2 = vcmp.lt.s32.totalorder %v4752_v14, 2 }
  0xef   :  { %v782_v61 = vsel %vm770_vm0, %v4773_v35, %v763_v37  ;;  %v784_v0 = vsel %vm772_vm1, %v766_v20, %v783_v54  ;;  %v781_v1 = vsel %vm771_vm2, %v778_v9, %v780_v55  ;;  %v4815_v2 = vsub.s32 32, %v856_v57 }
  0xf0   :  { %v950_v3 = vshrl.u32 %v949_v58, 23  ;;  %v4817_v51 = vshrl.u32 %v591_v59, 30  ;;  %v673_v53 = vsel %vm667_vm13, %v670_v62, %v672_v41  ;;  %v692_v4 = vadd.s32 1, %v4768_v30 }
  0xf1   :  { %v786_v5 = vshll.u32 %v746_v60, 8  ;;  %vm691_vm3 = vc.u32 %v4780_v46, %v4767_v29  ;;  %v785_v6 = vsel %vm771_vm2, %v782_v61, %v784_v0  ;;  %v8817_v12 = vand.u32 2147483647, %v4660_v10 }
  0xf2   :  { %v689_v13 = vmul.u32 %v4727_v63, %v673_v53  ;;  %v869_v24 = vshrl.u32 %v8830_v36, %v4815_v2  ;;  %v872_v15 = vshrl.u32 %v8818_v39, %v4815_v2  ;;  %v3990_v17 = vadd.s32 4294967169, %v950_v3 }
  0xf3   :  { %v4826_v7 = vmul.u32.u64.low %v786_v5, %v781_v1  ;;  %v4827_v11 = vmul.u32.u64.high %v786_v5, %v781_v1, %v4826_v7  ;;  %v593_v18 = vshll.u32 %v4817_v51, 30  ;;  %v693_v20 = vsel %vm691_vm3, %v692_v4, %v4768_v30 }
  0xf4   :  { %v4838_v22 = vmul.u32.u64.low %v786_v5, %v785_v6  ;;  %v4839_v27 = vmul.u32.u64.high %v786_v5, %v785_v6, %v4838_v22  ;;  %v860_v19 = vshrl.u32 %v8827_v45, %v4815_v2  ;;  %v863_v63 = vshrl.u32 %v8825_v47, %v4815_v2 }
  0xf5   :  { %v868_v28 = vshll.u32 %v8821_v42, %v856_v57  ;;  %v871_v34 = vshll.u32 %v8830_v36, %v856_v57  ;;  %v775_v44 = vsel %vm773_vm15, %v763_v37, 2102212464  ;;  %v4849_v33 = vshrl.u32 %v854_v40, 5 }
  0xf6   :  { %v859_v30 = vshll.u32 %v8841_v52, %v856_v57  ;;  %v866_v48 = vshrl.u32 %v8821_v42, %v4815_v2  ;;  %v862_v50 = vshll.u32 %v8827_v45, %v856_v57  ;;  %v956_v59 = vadd.s32 1, %v3990_v17 }
  0xf7   :  { %v870_v54 = vor.u32 %v869_v24, %v868_v28  ;;  %v873_v58 = vor.u32 %v872_v15, %v871_v34  ;;  %v4856_v60 = vsub.s32 %v4760_v25, %v593_v18  ;;  %v754_v9 = vshrl.u32 %v8841_v52, %v4710_v56 }
  0xf8   :  { %v849_v37 = vand.u32 8388607, %v8817_v12  ;;  %v865_v40 = vshll.u32 %v8825_v47, %v856_v57  ;;  %v4863_v55 = vadd.s32 %v693_v20, %v689_v13  ;;  %v861_v62 = vor.u32 %v860_v19, %v859_v30 }
  0xf9   :  { %v864_v41 = vor.u32 %v863_v63, %v862_v50  ;;  %vm957_vm4 = vcmp.gt.s32.totalorder %v956_v59, 0  ;;  %v774_v61 = vsel %vm770_vm0, %v754_v9, %v4771_v31  ;;  %v776_v25 = vsel %vm772_vm1, %v4773_v35, %v775_v44 }
  0xfa   :  { %v867_v0 = vor.u32 %v866_v48, %v865_v40  ;;  %vm877_vm5 = vcmp.lt.s32.totalorder %v4849_v33, 4  ;;  %v796_v56 = vadd.s32 1, %v4827_v11  ;;  %v958_v3 = vsel %vm957_vm4, %v956_v59, 0  ;;  %v4914_v59 = vpop.f32.mrf.mxu0 }
  0xfb   :  { %v883_v57 = vsel %vm877_vm5, %v870_v54, 920167782  ;;  %v887_v1 = vsel %vm877_vm5, %v873_v58, 1326507024  ;;  %vm795_vm6 = vc.u32 %v4839_v27, %v4826_v7  ;;  %vm874_vm7 = vcmp.lt.s32.totalorder %v4849_v33, 1 }
  0xfc   :  { %v777_v31 = vsel %vm771_vm2, %v774_v61, %v776_v25  ;;  %v850_v35 = vor.u32 8388608, %v849_v37  ;;  %vm876_vm8 = vcmp.lt.s32.totalorder %v4849_v33, 3  ;;  %v882_v53 = vsel %vm874_vm7, %v861_v62, %v864_v41 }
  0xfd   :  { %v884_v4 = vsel %vm876_vm8, %v867_v0, %v883_v57  ;;  %v886_v6 = vsel %vm874_vm7, %v864_v41, %v867_v0  ;;  %v888_v13 = vsel %vm876_vm8, %v870_v54, %v887_v1  ;;  %v960_v24 = vand.u32 31, %v958_v3 }
  0xfe   :  { %v596_v15 = vsub.s32 0, %v4856_v60  ;;  %v695_v14 = vadd.s32 536870912, %v4863_v55  ;;  %v797_v17 = vsel %vm795_vm6, %v796_v56, %v4827_v11  ;;  %v793_v18 = vmul.u32 %v786_v5, %v777_v31 }
  0xff   :  { %vm875_vm9 = vcmp.lt.s32.totalorder %v4849_v33, 2  ;;  %v890_v63 = vshll.u32 %v850_v35, 8  ;;  %v4899_v28 = vsub.s32 32, %v960_v24  ;;  %v8816_v54 = vand.u32 2147483647, %v4776_v43 }
 0x100   :  { %v885_v20 = vsel %vm875_vm9, %v882_v53, %v884_v4  ;;  %v889_v22 = vsel %vm875_vm9, %v886_v6, %v888_v13  ;;  %v798_v19 = vadd.s32 %v797_v17, %v793_v18  ;;  %v3975_v34 = vmin.u32 %v596_v15, %v4856_v60 }
 0x101   :  { %v4902_v44 = vshrl.u32 %v695_v14, 30  ;;  %v4904_v30 = vmul.u32.u64.low %v890_v63, %v889_v22  ;;  %v4905_v48 = vmul.u32.u64.high %v890_v63, %v889_v22, %v4904_v30  ;;  %v973_v58 = vshrl.u32 %v8830_v36, %v4899_v28 }
 0x102   :  { %v4907_v5 = vmul.u32.u64.low %v890_v63, %v885_v20  ;;  %v4908_v11 = vmul.u32.u64.high %v890_v63, %v885_v20, %v4907_v5  ;;  %v799_v50 = vadd.s32 536870912, %v798_v19  ;;  %v598_v9 = vclz %v3975_v34 }
 0x103   :  { %v697_v37 = vshll.u32 %v4902_v44, 30  ;;  %v858_v40 = vshrl.u32 %v8841_v52, %v4815_v2  ;;  %v976_v61 = vshrl.u32 %v8818_v39, %v4899_v28  ;;  %v879_v25 = vsel %vm877_vm5, %v867_v0, 2102212464 }
 0x104   :  { %v4923_v56 = vshrl.u32 %v958_v3, 5  ;;  %v964_v57 = vshrl.u32 %v8827_v45, %v4899_v28  ;;  %v972_v1 = vshll.u32 %v8821_v42, %v960_v24  ;;  %v967_v31 = vshrl.u32 %v8825_v47, %v4899_v28 }
 0x105   :  { %v970_v35 = vshrl.u32 %v8821_v42, %v4899_v28  ;;  %v975_v2 = vshll.u32 %v8830_v36, %v960_v24  ;;  %v1053_v53 = vand.u32 2139095040, %v4914_v59  ;;  %v4934_v4 = vshrl.u32 %v799_v50, 30 }
 0x106   :  { %v878_v0 = vsel %vm874_vm7, %v858_v40, %v861_v62  ;;  %v963_v3 = vshll.u32 %v8841_v52, %v960_v24  ;;  %v974_v6 = vor.u32 %v973_v58, %v972_v1  ;;  %v880_v13 = vsel %vm876_vm8, %v864_v41, %v879_v25 }
 0x107   :  { %v966_v15 = vshll.u32 %v8827_v45, %v960_v24  ;;  %v969_v14 = vshll.u32 %v8825_v47, %v960_v24  ;;  %v977_v17 = vor.u32 %v976_v61, %v975_v2  ;;  %vm899_vm10 = vc.u32 %v4905_v48, %v4907_v5 }
 0x108   :  { %v900_v18 = vadd.s32 1, %v4908_v11  ;;  %v953_v20 = vand.u32 8388607, %v8816_v54  ;;  %v965_v62 = vor.u32 %v964_v57, %v963_v3  ;;  %vm981_vm11 = vcmp.lt.s32.totalorder %v4923_v56, 4 }
 0x109   :  { %v968_v22 = vor.u32 %v967_v31, %v966_v15  ;;  %v971_v34 = vor.u32 %v970_v35, %v969_v14  ;;  %v1054_v30 = vshrl.u32 %v1053_v53, 23  ;;  %v881_v41 = vsel %vm875_vm9, %v878_v0, %v880_v13 }
 0x10a   :  { %v987_v24 = vsel %vm981_vm11, %v974_v6, 920167782  ;;  %v3976_v50 = vadd.s32 4294967294, %v598_v9  ;;  %v4954_v58 = vsub.s32 %v4863_v55, %v697_v37  ;;  %v801_v40 = vshll.u32 %v4934_v4, 30 }
 0x10b   :  { %v991_v61 = vsel %vm981_vm11, %v977_v17, 1326507024  ;;  %v901_v25 = vsel %vm899_vm10, %v900_v18, %v4908_v11  ;;  %vm978_vm12 = vcmp.lt.s32.totalorder %v4923_v56, 1  ;;  %vm980_vm13 = vcmp.lt.s32.totalorder %v4923_v56, 3 }
 0x10c   :  { %v3994_v33 = vadd.s32 4294967169, %v1054_v30  ;;  %v897_v57 = vmul.u32 %v890_v63, %v881_v41  ;;  %v954_v1 = vor.u32 8388608, %v953_v20  ;;  %v986_v9 = vsel %vm978_vm12, %v965_v62, %v968_v22 }
 0x10d   :  { %v988_v55 = vsel %vm980_vm13, %v971_v34, %v987_v24  ;;  %v990_v37 = vsel %vm978_vm12, %v968_v22, %v971_v34  ;;  %v992_v31 = vsel %vm980_vm13, %v974_v6, %v991_v61  ;;  %vm3977_vm14 = vcmp.lt.s32.totalorder %v3976_v50, 0 }
 0x10e   :  { %v700_v11 = vsub.s32 0, %v4954_v58  ;;  %v902_v35 = vadd.s32 %v901_v25, %v897_v57  ;;  %vm979_vm15 = vcmp.lt.s32.totalorder %v4923_v56, 2  ;;  %v4972_v63 = vsub.s32 %v798_v19, %v801_v40 }
 0x10f   :  { %v989_v2 = vsel %vm979_vm15, %v986_v9, %v988_v55  ;;  %v1060_v53 = vadd.s32 1, %v3994_v33  ;;  %v993_v0 = vsel %vm979_vm15, %v990_v37, %v992_v31  ;;  %v994_v3 = vshll.u32 %v954_v1, 8  ;;  %v4994_v33 = vpop.f32.mrf.mxu0 }
 0x110   :  { %v601_v13 = vsel %vm3977_vm14, 0, %v3976_v50  ;;  %v3979_v15 = vmin.u32 %v700_v11, %v4954_v58  ;;  %v903_v6 = vadd.s32 536870912, %v902_v35  ;;  %v804_v18 = vsub.s32 0, %v4972_v63 }
 0x111   :  { %v4979_v14 = vmul.u32.u64.low %v994_v3, %v989_v2  ;;  %v4980_v17 = vmul.u32.u64.high %v994_v3, %v989_v2, %v4979_v14  ;;  %v4984_v19 = vmul.u32.u64.low %v994_v3, %v993_v0  ;;  %v4985_v20 = vmul.u32.u64.high %v994_v3, %v993_v0, %v4984_v19 }
 0x112   :  { %vm1061_vm0 = vcmp.gt.s32.totalorder %v1060_v53, 0  ;;  %v606_v30 = vsub.s32 4294967266, %v601_v13  ;;  %v4987_v41 = vshrl.u32 %v903_v6, 30  ;;  %v983_v24 = vsel %vm981_vm11, %v971_v34, 2102212464 }
 0x113   :  { %v1062_v50 = vsel %vm1061_vm0, %v1060_v53, 0  ;;  %v702_v40 = vclz %v3979_v15  ;;  %v3983_v61 = vmin.u32 %v804_v18, %v4972_v63  ;;  %v962_v25 = vshrl.u32 %v8841_v52, %v4899_v28 }
 0x114   :  { %v602_v57 = vsub.s32 32, %v601_v13  ;;  %v984_v9 = vsel %vm980_vm13, %v968_v22, %v983_v24  ;;  %v1064_v55 = vand.u32 31, %v1062_v50  ;;  %v586_v34 = vadd.s32 %v4672_v16, %v4681_v23 }
 0x115   :  { %v982_v1 = vsel %vm978_vm12, %v962_v25, %v965_v62  ;;  %v607_v37 = vadd.s32 127, %v606_v30  ;;  %v905_v31 = vshll.u32 %v4987_v41, 30  ;;  %v1004_v11 = vadd.s32 1, %v4980_v17 }
 0x116   :  { %v3980_v2 = vadd.s32 4294967294, %v702_v40  ;;  %v806_v28 = vclz %v3983_v61  ;;  %vm1003_vm1 = vc.u32 %v4985_v20, %v4979_v14  ;;  %v1157_v53 = vand.u32 2139095040, %v4994_v33 }
 0x117   :  { %v985_v62 = vsel %vm979_vm15, %v982_v1, %v984_v9  ;;  %v604_v22 = vshrl.u32 %v586_v34, %v602_v57  ;;  %v5009_v0 = vsub.s32 32, %v1064_v55  ;;  %v603_v16 = vshll.u32 %v4856_v60, %v601_v13 }
 0x118   :  { %v608_v23 = vshll.u32 %v607_v37, 23  ;;  %v5012_v15 = vsub.s32 %v902_v35, %v905_v31  ;;  %v1005_v6 = vsel %vm1003_vm1, %v1004_v11, %v4980_v17  ;;  %vm3981_vm2 = vcmp.lt.s32.totalorder %v3980_v2, 0 }
 0x119   :  { %v3984_v18 = vadd.s32 4294967294, %v806_v28  ;;  %v1001_v19 = vmul.u32 %v994_v3, %v985_v62  ;;  %v1158_v30 = vshrl.u32 %v1157_v53, 23  ;;  %v616_v24 = vsub.s32 4, %v4817_v51 }
 0x11a   :  { %v690_v56 = vadd.s32 %v4767_v29, %v4780_v46  ;;  %v605_v40 = vor.u32 %v604_v22, %v603_v16  ;;  %v720_v61 = vsub.s32 4, %v4902_v44  ;;  %v1080_v60 = vshrl.u32 %v8818_v39, %v5009_v0 }
 0x11b   :  { %v5019_v25 = vadd.s32 %v1005_v6, %v1001_v19  ;;  %v609_v35 = vor.u32 4788187, %v608_v23  ;;  %v5023_v13 = vsel %vm3981_vm2, 0, %v3980_v2  ;;  %v908_v17 = vsub.s32 0, %v5012_v15 }
 0x11c   :  { %v1077_v3 = vshrl.u32 %v8830_v36, %v5009_v0  ;;  %vm3985_vm3 = vcmp.lt.s32.totalorder %v3984_v18, 0  ;;  %v8815_v57 = vand.u32 2147483647, %v4914_v59  ;;  %v1079_v29 = vshll.u32 %v8830_v36, %v1064_v55 }
 0x11d   :  { %v3998_v46 = vadd.s32 4294967169, %v1158_v30  ;;  %v5030_v1 = vshrl.u32 %v1062_v50, 5  ;;  %v1071_v9 = vshrl.u32 %v8825_v47, %v5009_v0  ;;  %v1074_v34 = vshrl.u32 %v8821_v42, %v5009_v0 }
 0x11e   :  { %v1076_v37 = vshll.u32 %v8821_v42, %v1064_v55  ;;  %v710_v31 = vsub.s32 4294967266, %v5023_v13  ;;  %v1007_v11 = vadd.s32 536870912, %v5019_v25  ;;  %v1068_v2 = vshrl.u32 %v8827_v45, %v5009_v0 }
 0x11f   :  { %v1081_v28 = vor.u32 %v1080_v60, %v1079_v29  ;;  %v3987_v53 = vmin.u32 %v908_v17, %v5012_v15  ;;  %v1070_v50 = vshll.u32 %v8827_v45, %v1064_v55  ;;  %v1073_v62 = vshll.u32 %v8825_v47, %v1064_v55 }
 0x120   :  { %v1078_v22 = vor.u32 %v1077_v3, %v1076_v37  ;;  %vm532_vm4 = vcmp.lt.s32.totalorder %v4617_v21, 0  ;;  %v610_v16 = vand.u32 2147483647, %v609_v35  ;;  %v5046_v23 = vsel %vm3985_vm3, 0, %v3984_v18 }
 0x121   :  { %v1067_v6 = vshll.u32 %v8841_v52, %v1064_v55  ;;  %v1164_v19 = vadd.s32 1, %v3998_v46  ;;  %vm636_vm5 = vcmp.lt.s32.totalorder %v4620_v26, 0  ;;  %v1057_v30 = vand.u32 8388607, %v8815_v57 }
 0x122   :  { %v5052_v60 = vor.u32 %v1071_v9, %v1070_v50  ;;  %v1075_v17 = vor.u32 %v1074_v34, %v1073_v62  ;;  %vm1085_vm6 = vcmp.lt.s32.totalorder %v5030_v1, 4  ;;  %v706_v3 = vsub.s32 32, %v5023_v13 }
 0x123   :  { %v5056_v29 = vshrl.u32 %v1007_v11, 30  ;;  %v5058_v35 = vor.u32 %v1068_v2, %v1067_v6  ;;  %v1095_v55 = vsel %vm1085_vm6, %v1081_v28, 1326507024  ;;  %v612_v18 = vcvt.s32.f32 %v605_v40 }
 0x124   :  { %v711_v46 = vadd.s32 127, %v710_v31  ;;  %v910_v37 = vclz %v3987_v53  ;;  %v1091_v57 = vsel %vm1085_vm6, %v1078_v22, 920167782  ;;  %vm5066_vm7 = vcmp.le.f32.partialorder %v530_v38, 0.7853982 }
 0x125   :  { %v814_v34 = vsub.s32 4294967266, %v5046_v23  ;;  %vm1082_vm8 = vcmp.lt.s32.totalorder %v5030_v1, 1  ;;  %vm1084_vm9 = vcmp.lt.s32.totalorder %v5030_v1, 3  ;;  %vm1165_vm10 = vcmp.gt.s32.totalorder %v1164_v19, 0 }
 0x126   :  { %v613_v11 = vmul.f32 %v612_v18, %v610_v16  ;;  %v1058_v40 = vor.u32 8388608, %v1057_v30  ;;  %v1094_v31 = vsel %vm1082_vm8, %v5052_v60, %v1075_v17  ;;  %v1096_v2 = vsel %vm1084_vm9, %v1078_v22, %v1095_v55 }
 0x127   :  { %v708_v38 = vshrl.u32 %v690_v56, %v706_v3  ;;  %v1009_v28 = vshll.u32 %v5056_v29, 30  ;;  %v1090_v53 = vsel %vm1082_vm8, %v5058_v35, %v5052_v60  ;;  %v1092_v50 = vsel %vm1084_vm9, %v1075_v17, %v1091_v57 }
 0x128   :  { %v712_v62 = vshll.u32 %v711_v46, 23  ;;  %v3988_v16 = vadd.s32 4294967294, %v910_v37  ;;  %vm1083_vm11 = vcmp.lt.s32.totalorder %v5030_v1, 2  ;;  %v1166_v6 = vsel %vm1165_vm10, %v1164_v19, 0 }
 0x129   :  { %vm5088_vm12 = vcmp.le.f32.partialorder %v634_v8, 0.7853982  ;;  %v707_v56 = vshll.u32 %v4954_v58, %v5023_v13  ;;  %v815_v30 = vadd.s32 127, %v814_v34  ;;  %v1097_v3 = vsel %vm1083_vm11, %v1094_v31, %v1096_v2  ;;  %v5125_v34 = vpop.f32.mrf.mxu0 }
 0x12a   :  { %v614_v55 = vxor.u32 2147483648, %v613_v11  ;;  %v5101_v57 = vsel %vm532_vm4, %v616_v24, %v4817_v51  ;;  %v1093_v8 = vsel %vm1083_vm11, %v1090_v53, %v1092_v50  ;;  %v5105_v19 = vshll.u32 %v1058_v40, 8 }
 0x12b   :  { %v5107_v18 = vor.u32 %v708_v38, %v707_v56  ;;  %v5114_v58 = vsel %vm636_vm5, %v720_v61, %v4902_v44  ;;  %v5117_v13 = vsub.s32 %v5019_v25, %v1009_v28  ;;  %v1168_v46 = vand.u32 31, %v1166_v6 }
 0x12c   :  { %v5119_v51 = vor.u32 4788187, %v712_v62  ;;  %vm3989_vm13 = vcmp.lt.s32.totalorder %v3988_v16, 0  ;;  %v5122_v24 = vmul.u32.u64.low %v5105_v19, %v1097_v3  ;;  %v5123_v37 = vmul.u32.u64.high %v5105_v19, %v1097_v3, %v5122_v24 }
 0x12d   :  { %v810_v40 = vsub.s32 32, %v5046_v23  ;;  %v816_v31 = vshll.u32 %v815_v30, 23  ;;  %v5129_v2 = vmul.u32.u64.low %v5105_v19, %v1093_v8  ;;  %v5130_v44 = vmul.u32.u64.high %v5105_v19, %v1093_v8, %v5129_v2 }
 0x12e   :  { %v5135_v61 = vsel %vm532_vm4, %v614_v55, %v613_v11  ;;  %v794_v28 = vadd.s32 %v4826_v7, %v4839_v27  ;;  %v913_v53 = vsel %vm3989_vm13, 0, %v3988_v16  ;;  %v1012_v50 = vsub.s32 0, %v5117_v13 }
 0x12f   :  { %v5146_v62 = vsub.s32 32, %v1168_v46  ;;  %v1261_v56 = vand.u32 2139095040, %v5125_v34  ;;  %v714_v11 = vand.u32 2147483647, %v5119_v51  ;;  %v716_v30 = vcvt.s32.f32 %v5107_v18 }
 0x130   :  { %v811_v3 = vshll.u32 %v4972_v63, %v5046_v23  ;;  %v812_v8 = vshrl.u32 %v794_v28, %v810_v40  ;;  %v5154_v24 = vor.u32 4788187, %v816_v31  ;;  %v898_v7 = vadd.s32 %v4907_v5, %v4905_v48 }
 0x131   :  { %v1087_v27 = vsel %vm1085_vm6, %v1075_v17, 2102212464  ;;  %v914_v16 = vsub.s32 32, %v913_v53  ;;  %v915_v54 = vshll.u32 %v5012_v15, %v913_v53  ;;  %v918_v51 = vsub.s32 4294967266, %v913_v53 }
 0x132   :  { %v1066_v18 = vshrl.u32 %v8841_v52, %v5009_v0  ;;  %v3991_v63 = vmin.u32 %v1012_v50, %v5117_v13  ;;  %v8824_v23 = vand.u32 2147483647, %v4994_v33  ;;  %v1181_v40 = vshrl.u32 %v8830_v36, %v5146_v62 }
 0x133   :  { %v1262_v31 = vshrl.u32 %v1261_v56, 23  ;;  %v1088_v5 = vsel %vm1084_vm9, %v5052_v60, %v1087_v27  ;;  %vm1107_vm14 = vc.u32 %v5123_v37, %v5129_v2  ;;  %v1184_v0 = vshrl.u32 %v8818_v39, %v5146_v62 }
 0x134   :  { %v1086_v48 = vsel %vm1082_vm8, %v1066_v18, %v5058_v35  ;;  %v1108_v15 = vadd.s32 1, %v5130_v44  ;;  %v5178_v17 = vshrl.u32 %v1166_v6, 5  ;;  %v1172_v28 = vshrl.u32 %v8827_v45, %v5146_v62 }
 0x135   :  { %v1180_v53 = vshll.u32 %v8821_v42, %v1168_v46  ;;  %v1175_v35 = vshrl.u32 %v8825_v47, %v5146_v62  ;;  %v1178_v60 = vshrl.u32 %v8821_v42, %v5146_v62  ;;  %v1183_v50 = vshll.u32 %v8830_v36, %v1168_v46 }
 0x136   :  { %v4002_v56 = vadd.s32 4294967169, %v1262_v31  ;;  %v919_v27 = vadd.s32 127, %v918_v51  ;;  %v1014_v18 = vclz %v3991_v63  ;;  %v1171_v12 = vshll.u32 %v8841_v52, %v1168_v46 }
 0x137   :  { %v1182_v6 = vor.u32 %v1181_v40, %v1180_v53  ;;  %v1089_v39 = vsel %vm1083_vm11, %v1086_v48, %v1088_v5  ;;  %v1174_v49 = vshll.u32 %v8827_v45, %v1168_v46  ;;  %v1177_v55 = vshll.u32 %v8825_v47, %v1168_v46 }
 0x138   :  { %v1185_v38 = vor.u32 %v1184_v0, %v1183_v50  ;;  %v916_v25 = vshrl.u32 %v898_v7, %v914_v16  ;;  %v1109_v42 = vsel %vm1107_vm14, %v1108_v15, %v5130_v44  ;;  %v1161_v51 = vand.u32 8388607, %v8824_v23 }
 0x139   :  { %v5199_v63 = vor.u32 %v1172_v28, %v1171_v12  ;;  %vm740_vm15 = vcmp.lt.s32.totalorder %v4623_v32, 0  ;;  %v5202_v1 = vor.u32 %v1175_v35, %v1174_v49  ;;  %v1179_v40 = vor.u32 %v1178_v60, %v1177_v55  ;;  %v5242_v35 = vpop.f32.mrf.mxu0 }
 0x13a   :  { %vm1189_vm0 = vcmp.lt.s32.totalorder %v5178_v17, 4  ;;  %v1268_v46 = vadd.s32 1, %v4002_v56  ;;  %v920_v31 = vshll.u32 %v919_v27, 23  ;;  %v3992_v7 = vadd.s32 4294967294, %v1014_v18 }
 0x13b   :  { %v1105_v16 = vmul.u32 %v5105_v19, %v1089_v39  ;;  %v1195_v44 = vsel %vm1189_vm0, %v1182_v6, 920167782  ;;  %v717_v48 = vmul.f32 %v716_v30, %v714_v11  ;;  %v813_v5 = vor.u32 %v812_v8, %v811_v3 }
 0x13c   :  { %v818_v12 = vand.u32 2147483647, %v5154_v24  ;;  %v1199_v0 = vsel %vm1189_vm0, %v1185_v38, 1326507024  ;;  %v917_v49 = vor.u32 %v916_v25, %v915_v54  ;;  %vm1186_vm1 = vcmp.lt.s32.totalorder %v5178_v17, 1 }
 0x13d   :  { %v5211_v15 = vadd.s32 %v1109_v42, %v1105_v16  ;;  %vm1188_vm2 = vcmp.lt.s32.totalorder %v5178_v17, 3  ;;  %v1162_v55 = vor.u32 8388608, %v1161_v51  ;;  %v1194_v39 = vsel %vm1186_vm1, %v5199_v63, %v5202_v1 }
 0x13e   :  { %v1196_v19 = vsel %vm1188_vm2, %v1179_v40, %v1195_v44  ;;  %vm1269_vm3 = vcmp.gt.s32.totalorder %v1268_v46, 0  ;;  %v921_v11 = vor.u32 4788187, %v920_v31  ;;  %vm3993_vm4 = vcmp.lt.s32.totalorder %v3992_v7, 0 }
 0x13f   :  { %v1198_v42 = vsel %vm1186_vm1, %v5202_v1, %v1179_v40  ;;  %v1200_v54 = vsel %vm1188_vm2, %v1182_v6, %v1199_v0  ;;  %v8878_v25 = vsel %vm5066_vm7, 0, %v5101_v57  ;;  %v8879_v30 = vsel %vm5088_vm12, 0, %v5114_v58 }
 0x140   :  { %v623_v38 = vadd.s32 3, %v8878_v25  ;;  %v727_v3 = vadd.s32 3, %v8879_v30  ;;  %v820_v8 = vcvt.s32.f32 %v813_v5  ;;  %vm1187_vm6 = vcmp.lt.s32.totalorder %v5178_v17, 2 }
 0x141   :  { %v618_v24 = vsel %vm5066_vm7, %v4617_v21, %v5135_v61  ;;  %v1111_v28 = vadd.s32 536870912, %v5211_v15  ;;  %v1197_v53 = vsel %vm1187_vm6, %v1194_v39, %v1196_v19  ;;  %v1270_v57 = vsel %vm1269_vm3, %v1268_v46, 0 }
 0x142   :  { %v821_v60 = vmul.f32 %v820_v8, %v818_v12  ;;  %v5244_v50 = vsel %vm3993_vm4, 0, %v3992_v7  ;;  %v1201_v58 = vsel %vm1187_vm6, %v1198_v42, %v1200_v54  ;;  %v5248_v56 = vshll.u32 %v1162_v55, 8 }
 0x143   :  { %v718_v27 = vxor.u32 2147483648, %v717_v48  ;;  %v8880_v9 = vsub.s32 4, %v4934_v4  ;;  %v922_v18 = vand.u32 2147483647, %v921_v11  ;;  %v924_v6 = vcvt.s32.f32 %v917_v49 }
 0x144   :  { %v5256_v51 = vmul.u32.u64.low %v5248_v56, %v1197_v53  ;;  %v5257_v46 = vmul.u32.u64.high %v5248_v56, %v1197_v53, %v5256_v51  ;;  %v1272_v31 = vand.u32 31, %v1270_v57  ;;  %v1365_v7 = vand.u32 2139095040, %v5242_v35 }
 0x145   :  { %v825_v61 = vsel %vm740_vm15, %v8880_v9, %v4934_v4  ;;  %v1022_v16 = vsub.s32 4294967266, %v5244_v50  ;;  %v5262_v44 = vshrl.u32 %v1111_v28, 30  ;;  %v5268_v0 = vand.u32 3, %v623_v38 }
 0x146   :  { %v5265_v5 = vmul.u32.u64.low %v5248_v56, %v1201_v58  ;;  %v5266_v12 = vmul.u32.u64.high %v5248_v56, %v1201_v58, %v5265_v5  ;;  %v5270_v4 = vand.u32 3, %v727_v3  ;;  %v8881_v49 = vand.u32 2147483647, %v4623_v32 }
 0x147   :  { %v822_v39 = vxor.u32 2147483648, %v821_v60  ;;  %4240 = vcosq.f32 %v618_v24  ;;  %v719_v19 = vsel %vm636_vm5, %v718_v27, %v717_v48  ;;  %v925_v42 = vmul.f32 %v924_v6, %v922_v18 }
 0x148   :  { %vm5274_vm7 = vcmp.le.f32.partialorder %v8881_v49, 0.7853982  ;;  %v1018_v54 = vsub.s32 32, %v5244_v50  ;;  %v1191_v25 = vsel %vm1189_vm0, %v1179_v40, 2102212464  ;;  %v5285_v38 = vsub.s32 32, %v1272_v31 }
 0x149   :  { %v827_v11 = vsel %vm5274_vm7, 0, %v825_v61  ;;  %v1366_v30 = vshrl.u32 %v1365_v7, 23  ;;  %4242 = vsinq.f32 %v618_v24  ;;  %v1023_v3 = vadd.s32 127, %v1022_v16 }
 0x14a   :  { %v1113_v8 = vshll.u32 %v5262_v44, 30  ;;  %v1170_v28 = vshrl.u32 %v8841_v52, %v5146_v62  ;;  %v5293_v48 = vsel %vm5088_vm12, %v4620_v26, %v719_v19  ;;  %v823_v53 = vsel %vm740_vm15, %v822_v39, %v821_v60 }
 0x14b   :  { %v5297_v58 = vadd.s32 3, %v827_v11  ;;  %v1002_v40 = vadd.s32 %v4979_v14, %v4985_v20  ;;  %v926_v24 = vxor.u32 2147483648, %v925_v42  ;;  %v1192_v62 = vsel %vm1188_vm2, %v5202_v1, %v1191_v25 }
 0x14c   :  { %v1190_v27 = vsel %vm1186_vm1, %v1170_v28, %v5199_v63  ;;  %v8823_v22 = vand.u32 2147483647, %v5125_v34  ;;  %vm844_vm5 = vcmp.lt.s32.totalorder %v4660_v10, 0  ;;  %v1212_v60 = vadd.s32 1, %v5257_v46 }
 0x14d   :  { %v1020_v9 = vshrl.u32 %v1002_v40, %v1018_v54  ;;  %v1285_v61 = vshrl.u32 %v8830_v36, %v5285_v38  ;;  %v4006_v14 = vadd.s32 4294967169, %v1366_v30  ;;  %v1024_v20 = vshll.u32 %v1023_v3, 23 }
 0x14e   :  { %v5313_v18 = vsub.s32 %v5211_v15, %v1113_v8  ;;  %vm1211_vm8 = vc.u32 %v5266_v12, %v5256_v51  ;;  %v8884_v63 = vmov 1326507024   ;;  %v1193_v6 = vsel %vm1187_vm6, %v1190_v27, %v1192_v62 }
 0x14f   :  { %v1288_v1 = vshrl.u32 %v8884_v63, %v5285_v38  ;;  %v5321_v7 = vshrl.u32 %v1270_v57, 5  ;;  %v1276_v16 = vshrl.u32 %v8827_v45, %v5285_v38  ;;  %v8885_v5 = vmov 2102212464  }
 0x150   :  { %v1284_v49 = vshll.u32 %v8885_v5, %v1272_v31  ;;  %v1279_v15 = vshrl.u32 %v8825_v47, %v5285_v38  ;;  %v1282_v39 = vshrl.u32 %v8885_v5, %v5285_v38  ;;  %v1287_v19 = vshll.u32 %v8830_v36, %v1272_v31 }
 0x151   :  { %v1372_v11 = vadd.s32 1, %v4006_v14  ;;  %v1213_v54 = vsel %vm1211_vm8, %v1212_v60, %v5257_v46  ;;  %v1265_v17 = vand.u32 8388607, %v8823_v22  ;;  %v1275_v57 = vshll.u32 %v8841_v52, %v1272_v31 }
 0x152   :  { %v1286_v25 = vor.u32 %v1285_v61, %v1284_v49  ;;  %v1278_v30 = vshll.u32 %v8827_v45, %v1272_v31  ;;  %v1281_v3 = vshll.u32 %v8825_v47, %v1272_v31  ;;  %v1289_v8 = vor.u32 %v1288_v1, %v1287_v19 }
 0x153   :  { %vm1373_vm9 = vcmp.gt.s32.totalorder %v1372_v11, 0  ;;  %v8886_v28 = vand.u32 2147483647, %v4660_v10  ;;  %v1025_v27 = vor.u32 4788187, %v1024_v20  ;;  %v1116_v46 = vsub.s32 0, %v5313_v18 }
 0x154   :  { %v1209_v62 = vmul.u32 %v5248_v56, %v1193_v6  ;;  %v1374_v60 = vsel %vm1373_vm9, %v1372_v11, 0  ;;  %v5345_v14 = vor.u32 %v1276_v16, %v1275_v57  ;;  %v5347_v61 = vor.u32 %v1279_v15, %v1278_v30  ;;  %v5350_v31 = vpop.eup %4240 }
 0x155   :  { %vm5339_vm10 = vcmp.le.f32.partialorder %v8886_v28, 0.7853982  ;;  %v1283_v49 = vor.u32 %v1282_v39, %v1281_v3  ;;  %vm1293_vm11 = vcmp.lt.s32.totalorder %v5321_v7, 4  ;;  %v1019_v1 = vshll.u32 %v5117_v13, %v5244_v50 }
 0x156   :  { %v5354_v19 = vadd.s32 %v1213_v54, %v1209_v62  ;;  %v1299_v20 = vsel %vm1293_vm11, %v1286_v25, 920167782  ;;  %v1376_v28 = vand.u32 31, %v1374_v60  ;;  %4244 = vcosq.f32 %v5293_v48  ;;  %v5366_v15 = vpop.eup %4242 }
 0x157   :  { %v826_v56 = vsel %vm5274_vm7, %v4623_v32, %v823_v53  ;;  %v927_v6 = vsel %vm844_vm5, %v926_v24, %v925_v42  ;;  %v1303_v16 = vsel %vm1293_vm11, %v1289_v8, 1326507024  ;;  %v1021_v13 = vor.u32 %v1020_v9, %v1019_v1 }
 0x158   :  { %v1026_v50 = vand.u32 2147483647, %v1025_v27  ;;  %vm1290_vm12 = vcmp.lt.s32.totalorder %v5321_v7, 1  ;;  %vm1292_vm13 = vcmp.lt.s32.totalorder %v5321_v7, 3  ;;  %v3995_v39 = vmin.u32 %v1116_v46, %v5313_v18 }
 0x159   :  { %v1266_v11 = vor.u32 8388608, %v1265_v17  ;;  %v1298_v55 = vsel %vm1290_vm12, %v5345_v14, %v5347_v61  ;;  %v1300_v42 = vsel %vm1292_vm13, %v1283_v49, %v1299_v20  ;;  %v1215_v53 = vadd.s32 536870912, %v5354_v19 }
 0x15a   :  { %v1302_v24 = vsel %vm1290_vm12, %v5347_v61, %v1283_v49  ;;  %v1304_v9 = vsel %vm1292_vm13, %v1286_v25, %v1303_v16  ;;  %v5383_v54 = vsub.s32 32, %v1376_v28  ;;  %vm629_vm14 = vcmp.eq.s32.totalorder %v5268_v0, 2 }
 0x15b   :  { %v630_v17 = vxor.u32 2147483648, %v5350_v31  ;;  %4246 = vsinq.f32 %v5293_v48  ;;  %v5389_v57 = vand.u32 3, %v5297_v58  ;;  %vm1291_vm15 = vcmp.lt.s32.totalorder %v5321_v7, 2 }
 0x15c   :  { %4248 = vcosq.f32 %v826_v56  ;;  %v1028_v3 = vcvt.s32.f32 %v1021_v13  ;;  %v1301_v25 = vsel %vm1291_vm15, %v1298_v55, %v1300_v42  ;;  %v930_v8 = vsel %vm5339_vm10, %v4660_v10, %v927_v6 }
 0x15d   :  { %4250 = vsinq.f32 %v826_v56  ;;  %v1305_v48 = vsel %vm1291_vm15, %v1302_v24, %v1304_v9  ;;  %v5400_v27 = vshll.u32 %v1266_v11, 8  ;;  %v1118_v46 = vclz %v3995_v39 }
 0x15e   :  { %v1029_v58 = vmul.f32 %v1028_v3, %v1026_v50  ;;  %v5402_v62 = vshrl.u32 %v1215_v53, 30  ;;  %v1389_v1 = vshrl.u32 %v8830_v36, %v5383_v54  ;;  %v8829_v56 = vand.u32 2147483647, %v5242_v35 }
 0x15f   :  { %v5407_v20 = vmul.u32.u64.low %v5400_v27, %v1301_v25  ;;  %v5408_v16 = vmul.u32.u64.high %v5400_v27, %v1301_v25, %v5407_v20  ;;  %v1392_v6 = vshrl.u32 %v8884_v63, %v5383_v54  ;;  %v5418_v50 = vshrl.u32 %v1374_v60, 5 }
 0x160   :  { %v5415_v13 = vmul.u32.u64.low %v5400_v27, %v1305_v48  ;;  %v5416_v11 = vmul.u32.u64.high %v5400_v27, %v1305_v48, %v5415_v13  ;;  %v1388_v39 = vshll.u32 %v8885_v5, %v1376_v28  ;;  %v1380_v55 = vshrl.u32 %v8827_v45, %v5383_v54 }
 0x161   :  { %v1383_v42 = vshrl.u32 %v8825_v47, %v5383_v54  ;;  %v1386_v53 = vshrl.u32 %v8885_v5, %v5383_v54  ;;  %v1391_v24 = vshll.u32 %v8830_v36, %v1376_v28  ;;  %vm948_vm0 = vcmp.lt.s32.totalorder %v4776_v43, 0 }
 0x162   :  { %v3996_v9 = vadd.s32 4294967294, %v1118_v46  ;;  %v1217_v3 = vshll.u32 %v5402_v62, 30  ;;  %v1295_v60 = vsel %vm1293_vm11, %v1283_v49, 2102212464  ;;  %v1390_v25 = vor.u32 %v1389_v1, %v1388_v39 }
 0x163   :  { %v1379_v48 = vshll.u32 %v8841_v52, %v1376_v28  ;;  %v1382_v13 = vshll.u32 %v8827_v45, %v1376_v28  ;;  %v1385_v22 = vshll.u32 %v8825_v47, %v1376_v28  ;;  %v1393_v23 = vor.u32 %v1392_v6, %v1391_v24  ;;  %v5435_v30 = vpop.eup %4244 }
 0x164   :  { %vm626_vm1 = vcmp.eq.s32.totalorder %v5268_v0, 0  ;;  %v5441_v46 = vsel %vm629_vm14, %v630_v17, %v5366_v15  ;;  %4252 = vcosq.f32 %v930_v8  ;;  %v1274_v49 = vshrl.u32 %v8841_v52, %v5285_v38  ;;  %v5458_v17 = vpop.f32.mrf.mxu0 }
 0x165   :  { %v1369_v1 = vand.u32 8388607, %v8829_v56  ;;  %v8889_v39 = vand.u32 2147483647, %v4776_v43  ;;  %v5453_v6 = vor.u32 %v1380_v55, %v1379_v48  ;;  %v5455_v24 = vor.u32 %v1383_v42, %v1382_v13  ;;  %8892 = vst [vmem:[#allocation5_spill] sm:$0xff] %v5458_v17 }
 0x166   :  { %v1387_v47 = vor.u32 %v1386_v53, %v1385_v22  ;;  %vm1397_vm3 = vcmp.lt.s32.totalorder %v5418_v50, 4  ;;  %v1030_v45 = vxor.u32 2147483648, %v1029_v58  ;;  %v1294_v38 = vsel %vm1290_vm12, %v1274_v49, %v5345_v14 }
 0x167   :  { %vm5449_vm2 = vcmp.le.f32.partialorder %v8889_v39, 0.7853982  ;;  %v1296_v39 = vsel %vm1292_vm13, %v5347_v61, %v1295_v60  ;;  %v1403_v55 = vsel %vm1397_vm3, %v1390_v25, 920167782  ;;  %vm3997_vm4 = vcmp.lt.s32.totalorder %v3996_v9, 0 }
 0x168   :  { %v5469_v42 = vsub.s32 %v5354_v19, %v1217_v3  ;;  %v1316_v22 = vadd.s32 1, %v5408_v16  ;;  %v1407_v53 = vsel %vm1397_vm3, %v1393_v23, 1326507024  ;;  %v4247_v48 = vpop.eup %4246  ;;  %vm1315_vm6 = vc.u32 %v5416_v11, %v5407_v20 }
 0x169   :  { %vm1394_vm7 = vcmp.lt.s32.totalorder %v5418_v50, 1  ;;  %vm1396_vm8 = vcmp.lt.s32.totalorder %v5418_v50, 3  ;;  %v1469_v14 = vand.u32 2139095040, %v5458_v17  ;;  %v5479_v61 = vpop.eup %4248  ;;  %vm625_vm9 = vcmp.lt.s32.totalorder %v5268_v0, 2 }
 0x16a   :  { %v1297_v19 = vsel %vm1291_vm15, %v1294_v38, %v1296_v39  ;;  %v1370_v3 = vor.u32 8388608, %v1369_v1  ;;  %v1402_v23 = vsel %vm1394_vm7, %v5453_v6, %v5455_v24  ;;  %v1404_v60 = vsel %vm1396_vm8, %v1387_v47, %v1403_v55  ;;  %v5490_v13 = vpop.eup %4250 }
 0x16b   :  { %v928_v49 = vsub.s32 4, %v4987_v41  ;;  %4254 = vsinq.f32 %v930_v8  ;;  %v1406_v56 = vsel %vm1394_vm7, %v5455_v24, %v1387_v47  ;;  %v1408_v7 = vsel %vm1396_vm8, %v1390_v25, %v1407_v53 }
 0x16c   :  { %v1031_v1 = vsel %vm948_vm0, %v1030_v45, %v1029_v58  ;;  %v5501_v38 = vsel %vm3997_vm4, 0, %v3996_v9  ;;  %v1317_v39 = vsel %vm1315_vm6, %v1316_v22, %v5408_v16  ;;  %vm1395_vm11 = vcmp.lt.s32.totalorder %v5418_v50, 2 }
 0x16d   :  { %vm622_vm12 = vweird.f32 %v4617_v21  ;;  %v1220_v8 = vsub.s32 0, %v5469_v42  ;;  %v1313_v55 = vmul.u32 %v5400_v27, %v1297_v19  ;;  %v1405_v25 = vsel %vm1395_vm11, %v1402_v23, %v1404_v60 }
 0x16e   :  { %v1470_v45 = vshrl.u32 %v1469_v14, 23  ;;  %v8893_v58 = vxor.u32 2147483648, %v5366_v15  ;;  %v734_v16 = vxor.u32 2147483648, %v5435_v30  ;;  %v1409_v22 = vsel %vm1395_vm11, %v1406_v56, %v1408_v7 }
 0x16f   :  { %v5521_v53 = vshll.u32 %v1370_v3, 8  ;;  %v731_v36 = vxor.u32 2147483648, %v4247_v48  ;;  %v929_v27 = vsel %vm844_vm5, %v928_v49, %v4987_v41  ;;  %v1034_v15 = vsel %vm5449_vm2, %v4776_v43, %v1031_v1 }
 0x170   :  { %v628_v9 = vsel %vm626_vm1, %v5350_v31, %v8893_v58  ;;  %v5529_v14 = vadd.s32 %v1317_v39, %v1313_v55  ;;  %v1032_v31 = vsub.s32 4, %v5056_v29  ;;  %v1126_v19 = vsub.s32 4294967266, %v5501_v38 }
 0x171   :  { %v5534_v23 = vmul.u32.u64.low %v5521_v53, %v1405_v25  ;;  %v5535_v56 = vmul.u32.u64.high %v5521_v53, %v1405_v25, %v5534_v23  ;;  %v3999_v3 = vmin.u32 %v1220_v8, %v5469_v42  ;;  %v4010_v49 = vadd.s32 4294967169, %v1470_v45  ;;  %v5543_v7 = vpop.eup %4252 }
 0x172   :  { %v5540_v60 = vmul.u32.u64.low %v5521_v53, %v1409_v22  ;;  %v5541_v41 = vmul.u32.u64.high %v5521_v53, %v1409_v22, %v5540_v60  ;;  %vm729_vm5 = vcmp.lt.s32.totalorder %v5270_v4, 2  ;;  %vm730_vm13 = vcmp.eq.s32.totalorder %v5270_v4, 0 }
 0x173   :  { %vm733_vm14 = vcmp.eq.s32.totalorder %v5270_v4, 2  ;;  %4256 = vcosq.f32 %v1034_v15  ;;  %v632_v1 = vsel %vm625_vm9, %v628_v9, %v5441_v46  ;;  %v732_v39 = vsel %vm730_vm13, %v5435_v30, %v731_v36 }
 0x174   :  { %v735_v8 = vsel %vm733_vm14, %v734_v16, %v4247_v48  ;;  %v1319_v55 = vadd.s32 536870912, %v5529_v14  ;;  %v931_v25 = vsel %vm5339_vm10, 0, %v929_v27  ;;  %4258 = vsinq.f32 %v1034_v15 }
 0x175   :  { %v1127_v45 = vadd.s32 127, %v1126_v19  ;;  %v1399_v58 = vsel %vm1397_vm3, %v1387_v47, 2102212464  ;;  %vm834_vm15 = vcmp.eq.s32.totalorder %v5389_v57, 0  ;;  %vm837_vm1 = vcmp.eq.s32.totalorder %v5389_v57, 2 }
 0x176   :  { %v1033_v0 = vsel %vm948_vm0, %v1032_v31, %v5056_v29  ;;  %v1222_v36 = vclz %v3999_v3  ;;  %v1378_v30 = vshrl.u32 %v8841_v52, %v5383_v54  ;;  %v1476_v46 = vadd.s32 1, %v4010_v49  ;;  %v5582_v54 = vpop.f32.mrf.mxu0 }
 0x177   :  { %v5566_v40 = vsel %vm622_vm12, nan, %v632_v1  ;;  %v5570_v47 = vsel %vm729_vm5, %v732_v39, %v735_v8  ;;  %vm1052_vm10 = vcmp.lt.s32.totalorder %v4914_v59, 0  ;;  %v1122_v48 = vsub.s32 32, %v5501_v38  ;;  %8895 = vst [vmem:[#allocation7_spill] sm:$0xff] %v5582_v54 }
 0x178   :  { %8894 = vst [vmem:[#allocation6_spill] sm:$0xff] %v5566_v40  ;;  %v935_v9 = vadd.s32 3, %v931_v25  ;;  %v5574_v16 = vshrl.u32 %v1319_v55, 30  ;;  %v1398_v29 = vsel %vm1394_vm7, %v1378_v30, %v5453_v6  ;;  %v1400_v21 = vsel %vm1396_vm8, %v5455_v24, %v1399_v58  ;;  %v4255_v4 = vpop.eup %4254 }
 0x179   :  { %vm833_vm0 = vcmp.lt.s32.totalorder %v5389_v57, 2  ;;  %v1035_v22 = vsel %vm5449_vm2, 0, %v1033_v0  ;;  %v1106_v27 = vadd.s32 %v5129_v2, %v5123_v37  ;;  %v1128_v15 = vshll.u32 %v1127_v45, 23 }
 0x17a   :  { %v1420_v31 = vadd.s32 1, %v5535_v56  ;;  %v838_v6 = vxor.u32 2147483648, %v5479_v61  ;;  %v8896_v19 = vand.u32 2147483647, %v4914_v59  ;;  %v4000_v3 = vadd.s32 4294967294, %v1222_v36 }
 0x17b   :  { %vm1419_vm4 = vc.u32 %v5541_v41, %v5534_v23  ;;  %vm1477_vm6 = vcmp.gt.s32.totalorder %v1476_v46, 0  ;;  %v835_v28 = vxor.u32 2147483648, %v5490_v13  ;;  %v1124_v60 = vshrl.u32 %v1106_v27, %v1122_v48 }
 0x17c   :  { %vm5593_vm3 = vcmp.le.f32.partialorder %v8896_v19, 0.7853982  ;;  %v1401_v37 = vsel %vm1395_vm11, %v1398_v29, %v1400_v21  ;;  %v1573_v2 = vand.u32 2139095040, %v5582_v54  ;;  %vm726_vm2 = vweird.f32 %v4620_v26 }
 0x17d   :  { %v936_v49 = vand.u32 3, %v935_v9  ;;  %v1039_v1 = vadd.s32 3, %v1035_v22  ;;  %v1136_v39 = vsub.s32 4, %v5262_v44  ;;  %v1321_v8 = vshll.u32 %v5574_v16, 30 }
 0x17e   :  { %vm830_vm7 = vweird.f32 %v4623_v32  ;;  %v1123_v55 = vshll.u32 %v5313_v18, %v5501_v38  ;;  %v1129_v25 = vor.u32 4788187, %v1128_v15  ;;  %v1421_v45 = vsel %vm1419_vm4, %v1420_v31, %v5535_v56 }
 0x17f   :  { %v1478_v50 = vsel %vm1477_vm6, %v1476_v46, 0  ;;  %v939_v58 = vxor.u32 2147483648, %v4255_v4  ;;  %v942_v0 = vxor.u32 2147483648, %v5543_v7  ;;  %vm4001_vm8 = vcmp.lt.s32.totalorder %v4000_v3, 0 }
 0x180   :  { %v1417_v36 = vmul.u32 %v5521_v53, %v1401_v37  ;;  %v836_v30 = vsel %vm834_vm15, %v5479_v61, %v835_v28  ;;  %v839_v48 = vsel %vm837_vm1, %v838_v6, %v5490_v13  ;;  %v1125_v9 = vor.u32 %v1124_v60, %v1123_v55  ;;  %v4257_v38 = vpop.eup %4256 }
 0x181   :  { %v1574_v18 = vshrl.u32 %v1573_v2, 23  ;;  %v1137_v56 = vsel %vm1052_vm10, %v1136_v39, %v5262_v44  ;;  %v5622_v46 = vsub.s32 %v5529_v14, %v1321_v8  ;;  %v1480_v53 = vand.u32 31, %v1478_v50  ;;  %v4259_v22 = vpop.eup %4258 }
 0x182   :  { %v5624_v29 = vadd.s32 %v1421_v45, %v1417_v36  ;;  %vm938_vm9 = vcmp.eq.s32.totalorder %v936_v49, 0  ;;  %vm941_vm11 = vcmp.eq.s32.totalorder %v936_v49, 2  ;;  %v1130_v61 = vand.u32 2147483647, %v1129_v25 }
 0x183   :  { %v5626_v21 = vsel %vm4001_vm8, 0, %v4000_v3  ;;  %v840_v13 = vsel %vm833_vm0, %v836_v30, %v839_v48  ;;  %v940_v27 = vsel %vm938_vm9, %v5543_v7, %v939_v58  ;;  %v943_v15 = vsel %vm941_vm11, %v942_v0, %v4255_v4 }
 0x184   :  { %v5631_v31 = vand.u32 3, %v1039_v1  ;;  %v1046_v44 = vxor.u32 2147483648, %v4257_v38  ;;  %v1132_v14 = vcvt.s32.f32 %v1125_v9  ;;  %v1139_v6 = vsel %vm5593_vm3, 0, %v1137_v56 }
 0x185   :  { %v4014_v19 = vadd.s32 4294967169, %v1574_v18  ;;  %v1230_v28 = vsub.s32 4294967266, %v5626_v21  ;;  %v1324_v3 = vsub.s32 0, %v5622_v46  ;;  %v1423_v60 = vadd.s32 536870912, %v5624_v29 }
 0x186   :  { %v5638_v37 = vsub.s32 32, %v1480_v53  ;;  %v5643_v57 = vsel %vm726_vm2, nan, %v5570_v47  ;;  %vm937_vm12 = vcmp.lt.s32.totalorder %v936_v49, 2  ;;  %v1043_v7 = vxor.u32 2147483648, %v4259_v22 }
 0x187   :  { %8899 = vst [vmem:[#allocation8_spill] sm:$0xff] %v5643_v57  ;;  %v1133_v4 = vmul.f32 %v1132_v14, %v1130_v61  ;;  %v5647_v2 = vsel %vm830_vm7, nan, %v840_v13  ;;  %v5649_v1 = vsel %vm937_vm12, %v940_v27, %v943_v15  ;;  %vm1042_vm5 = vcmp.eq.s32.totalorder %v5631_v31, 0 }
 0x188   :  { %8900 = vst [vmem:[#allocation9_spill] sm:$0xff] %v5647_v2  ;;  %vm1045_vm13 = vcmp.eq.s32.totalorder %v5631_v31, 2  ;;  %v5655_v8 = vadd.s32 3, %v1139_v6  ;;  %v1210_v26 = vadd.s32 %v5256_v51, %v5266_v12  ;;  %v1580_v47 = vadd.s32 1, %v4014_v19 }
 0x189   :  { %v5653_v39 = vsel %vm1045_vm13, %v1046_v44, %v4259_v22  ;;  %v1231_v49 = vadd.s32 127, %v1230_v28  ;;  %v4003_v55 = vmin.u32 %v1324_v3, %v5622_v46  ;;  %v5660_v32 = vshrl.u32 %v1423_v60, 30 }
 0x18a   :  { %v8901_v25 = vmov 920167782   ;;  %v1044_v58 = vsel %vm1042_vm5, %v4257_v38, %v1043_v7  ;;  %v1134_v0 = vxor.u32 2147483648, %v1133_v4  ;;  %v1226_v36 = vsub.s32 32, %v5626_v21 }
 0x18b   :  { %v1493_v45 = vshrl.u32 %v8901_v25, %v5638_v37  ;;  %v1496_v30 = vshrl.u32 %v8884_v63, %v5638_v37  ;;  %v8832_v48 = vand.u32 2147483647, %v5458_v17  ;;  %v5668_v9 = vshrl.u32 %v1478_v50, 5 }
 0x18c   :  { %v8902_v51 = vmov 2475754826   ;;  %v1492_v18 = vshll.u32 %v8885_v5, %v1480_v53  ;;  %v8903_v56 = vmov 2131351028   ;;  %v1490_v38 = vshrl.u32 %v8885_v5, %v5638_v37 }
 0x18d   :  { %v1484_v12 = vshrl.u32 %v8902_v51, %v5638_v37  ;;  %v1487_v61 = vshrl.u32 %v8903_v56, %v5638_v37  ;;  %v1495_v22 = vshll.u32 %v8901_v25, %v1480_v53  ;;  %vm1581_vm14 = vcmp.gt.s32.totalorder %v1580_v47, 0 }
 0x18e   :  { %v1232_v13 = vshll.u32 %v1231_v49, 23  ;;  %v1326_v27 = vclz %v4003_v55  ;;  %v1425_v15 = vshll.u32 %v5660_v32, 30  ;;  %v1494_v50 = vor.u32 %v1493_v45, %v1492_v18  ;;  %v5688_v49 = vpop.f32.mrf.mxu0 }
 0x18f   :  { %vm934_vm15 = vweird.f32 %v4660_v10  ;;  %v1483_v44 = vshll.u32 %v8841_v52, %v1480_v53  ;;  %v1486_v14 = vshll.u32 %v8902_v51, %v1480_v53  ;;  %v1489_v6 = vshll.u32 %v8903_v56, %v1480_v53  ;;  %8904 = vst [vmem:[#allocation10_spill] sm:$0xff] %v5688_v49 }
 0x190   :  { %v1497_v19 = vor.u32 %v1496_v30, %v1495_v22  ;;  %vm1041_vm1 = vcmp.lt.s32.totalorder %v5631_v31, 2  ;;  %v1135_v28 = vsel %vm1052_vm10, %v1134_v0, %v1133_v4  ;;  %v1228_v3 = vshrl.u32 %v1210_v26, %v1226_v36 }
 0x191   :  { %v1473_v60 = vand.u32 8388607, %v8832_v48  ;;  %v1582_v7 = vsel %vm1581_vm14, %v1580_v47, 0  ;;  %vm1156_vm0 = vcmp.lt.s32.totalorder %v4994_v33, 0  ;;  %v5691_v55 = vor.u32 %v1484_v12, %v1483_v44 }
 0x192   :  { %v5693_v45 = vor.u32 %v1487_v61, %v1486_v14  ;;  %v1491_v53 = vor.u32 %v1490_v38, %v1489_v6  ;;  %vm1501_vm4 = vcmp.lt.s32.totalorder %v5668_v9, 4  ;;  %v1227_v30 = vshll.u32 %v5469_v42, %v5626_v21 }
 0x193   :  { %v1233_v4 = vor.u32 4788187, %v1232_v13  ;;  %v5699_v26 = vsub.s32 %v5624_v29, %v1425_v15  ;;  %v1507_v47 = vsel %vm1501_vm4, %v1494_v50, 920167782  ;;  %v4004_v0 = vadd.s32 4294967294, %v1326_v27 }
 0x194   :  { %v1511_v36 = vsel %vm1501_vm4, %v1497_v19, 1326507024  ;;  %v1584_v12 = vand.u32 31, %v1582_v7  ;;  %v1677_v18 = vand.u32 2139095040, %v5688_v49  ;;  %v1229_v61 = vor.u32 %v1228_v3, %v1227_v30 }
 0x195   :  { %v1240_v38 = vsub.s32 4, %v5402_v62  ;;  %vm1498_vm10 = vcmp.lt.s32.totalorder %v5668_v9, 1  ;;  %vm1500_vm6 = vcmp.lt.s32.totalorder %v5668_v9, 3  ;;  %v5712_v42 = vsel %vm5593_vm3, %v4914_v59, %v1135_v28 }
 0x196   :  { %v1474_v29 = vor.u32 8388608, %v1473_v60  ;;  %v1506_v21 = vsel %vm1498_vm10, %v5691_v55, %v5693_v45  ;;  %v1508_v22 = vsel %vm1500_vm6, %v1491_v53, %v1507_v47  ;;  %v1234_v13 = vand.u32 2147483647, %v1233_v4 }
 0x197   :  { %v1428_v27 = vsub.s32 0, %v5699_v26  ;;  %v1510_v15 = vsel %vm1498_vm10, %v5693_v45, %v1491_v53  ;;  %v1512_v24 = vsel %vm1500_vm6, %v1494_v50, %v1511_v36  ;;  %vm4005_vm3 = vcmp.lt.s32.totalorder %v4004_v0, 0 }
 0x198   :  { %vm1499_vm2 = vcmp.lt.s32.totalorder %v5668_v9, 2  ;;  %v5727_v44 = vsub.s32 32, %v1584_v12  ;;  %v1678_v14 = vshrl.u32 %v1677_v18, 23  ;;  %v5732_v6 = vsel %vm934_vm15, nan, %v5649_v1 }
 0x199   :  { %8905 = vst [vmem:[#allocation11_spill] sm:$0xff] %v5732_v6  ;;  %v5735_v19 = vand.u32 3, %v5655_v8  ;;  %v1236_v28 = vcvt.s32.f32 %v1229_v61  ;;  %v1509_v3 = vsel %vm1499_vm2, %v1506_v21, %v1508_v22  ;;  %v5742_v50 = vsel %vm1041_vm1, %v1044_v58, %v5653_v39 }
 0x19a   :  { %4260 = vcosq.f32 %v5712_v42  ;;  %v1513_v60 = vsel %vm1499_vm2, %v1510_v15, %v1512_v24  ;;  %v5747_v10 = vshll.u32 %v1474_v29, 8  ;;  %v8906_v1 = vand.u32 2147483647, %v4994_v33 }
 0x19b   :  { %v5755_v30 = vmul.f32 %v1236_v28, %v1234_v13  ;;  %v1241_v31 = vsel %vm1156_vm0, %v1240_v38, %v5402_v62  ;;  %v5760_v39 = vsel %vm4005_vm3, 0, %v4004_v0  ;;  %v4007_v58 = vmin.u32 %v1428_v27, %v5699_v26 }
 0x19c   :  { %vm5751_vm7 = vcmp.le.f32.partialorder %v8906_v1, 0.7853982  ;;  %v5764_v4 = vmul.u32.u64.low %v5747_v10, %v1509_v3  ;;  %v5765_v47 = vmul.u32.u64.high %v5747_v10, %v1509_v3, %v5764_v4  ;;  %v1597_v36 = vshrl.u32 %v8901_v25, %v5727_v44 }
 0x19d   :  { %v4018_v18 = vadd.s32 4294967169, %v1678_v14  ;;  %v5771_v61 = vmul.u32.u64.low %v5747_v10, %v1513_v60  ;;  %v5772_v29 = vmul.u32.u64.high %v5747_v10, %v1513_v60, %v5771_v61  ;;  %v8833_v21 = vand.u32 2147483647, %v5582_v54 }
 0x19e   :  { %v1600_v62 = vshrl.u32 %v8884_v63, %v5727_v44  ;;  %v1503_v0 = vsel %vm1501_vm4, %v1491_v53, 2102212464  ;;  %v5779_v38 = vshrl.u32 %v1582_v7, 5  ;;  %v1588_v22 = vshrl.u32 %v8902_v51, %v5727_v44 }
 0x19f   :  { %v1596_v13 = vshll.u32 %v8885_v5, %v1584_v12  ;;  %v1591_v27 = vshrl.u32 %v8903_v56, %v5727_v44  ;;  %v1594_v15 = vshrl.u32 %v8885_v5, %v5727_v44  ;;  %v1599_v24 = vshll.u32 %v8901_v25, %v1584_v12 }
 0x1a0   :  { %v1684_v14 = vadd.s32 1, %v4018_v18  ;;  %v1430_v28 = vclz %v4007_v58  ;;  %v1482_v53 = vshrl.u32 %v8841_v52, %v5638_v37  ;;  %v1587_v7 = vshll.u32 %v8841_v52, %v1584_v12 }
 0x1a1   :  { %v1598_v3 = vor.u32 %v1597_v36, %v1596_v13  ;;  %v1577_v60 = vand.u32 8388607, %v8833_v21  ;;  %v1590_v1 = vshll.u32 %v8902_v51, %v1584_v12  ;;  %v1593_v61 = vshll.u32 %v8903_v56, %v1584_v12 }
 0x1a2   :  { %v1601_v48 = vor.u32 %v1600_v62, %v1599_v24  ;;  %v1502_v6 = vsel %vm1498_vm10, %v1482_v53, %v5691_v55  ;;  %v1504_v58 = vsel %vm1500_vm6, %v5693_v45, %v1503_v0  ;;  %v5802_v37 = vor.u32 %v1588_v22, %v1587_v7 }
 0x1a3   :  { %vm1685_vm8 = vcmp.gt.s32.totalorder %v1684_v14, 0  ;;  %v5804_v36 = vor.u32 %v1591_v27, %v1590_v1  ;;  %v1595_v18 = vor.u32 %v1594_v15, %v1593_v61  ;;  %vm1605_vm9 = vcmp.lt.s32.totalorder %v5779_v38, 4 }
 0x1a4   :  { %v1686_v13 = vsel %vm1685_vm8, %v1684_v14, 0  ;;  %v1243_v12 = vsel %vm5751_vm7, 0, %v1241_v31  ;;  %v4008_v62 = vadd.s32 4294967294, %v1430_v28  ;;  %v1524_v24 = vadd.s32 1, %v5765_v47 }
 0x1a5   :  { %v1611_v55 = vsel %vm1605_vm9, %v1598_v3, 920167782  ;;  %v1238_v45 = vxor.u32 2147483648, %v5755_v30  ;;  %vm1523_vm11 = vc.u32 %v5772_v29, %v5764_v4  ;;  %v1615_v0 = vsel %vm1605_vm9, %v1601_v48, 1326507024 }
 0x1a6   :  { %v1688_v22 = vand.u32 31, %v1686_v13  ;;  %v1330_v27 = vsub.s32 32, %v5760_v39  ;;  %v1505_v31 = vsel %vm1499_vm2, %v1502_v6, %v1504_v58  ;;  %vm1602_vm12 = vcmp.lt.s32.totalorder %v5779_v38, 1 }
 0x1a7   :  { %vm1604_vm5 = vcmp.lt.s32.totalorder %v5779_v38, 3  ;;  %v5822_v15 = vpop.eup %4260  ;;  %v1334_v14 = vsub.s32 4294967266, %v5760_v39  ;;  %v1578_v28 = vor.u32 8388608, %v1577_v60  ;;  %v1610_v48 = vsel %vm1602_vm12, %v5802_v37, %v5804_v36 }
 0x1a8   :  { %v1612_v53 = vsel %vm1604_vm5, %v1595_v18, %v1611_v55  ;;  %vm4009_vm13 = vcmp.lt.s32.totalorder %v4008_v62, 0  ;;  %v1525_v9 = vsel %vm1523_vm11, %v1524_v24, %v5765_v47  ;;  %v1614_v6 = vsel %vm1602_vm12, %v5804_v36, %v1595_v18  ;;  %v5849_v55 = vpop.f32.mrf.mxu0 }
 0x1a9   :  { %v1616_v7 = vsel %vm1604_vm5, %v1598_v3, %v1615_v0  ;;  %v5837_v1 = vadd.s32 3, %v1243_v12  ;;  %v1521_v60 = vmul.u32 %v5747_v10, %v1505_v31  ;;  %vm1603_vm14 = vcmp.lt.s32.totalorder %v5779_v38, 2 }
 0x1aa   :  { %v5841_v61 = vsub.s32 32, %v1688_v22  ;;  %4262 = vsinq.f32 %v5712_v42  ;;  %v1314_v47 = vadd.s32 %v5407_v20, %v5416_v11  ;;  %v1613_v24 = vsel %vm1603_vm14, %v1610_v48, %v1612_v53 }
 0x1ab   :  { %v5851_v3 = vsel %vm4009_vm13, 0, %v4008_v62  ;;  %v5853_v12 = vadd.s32 %v1525_v9, %v1521_v60  ;;  %v1617_v10 = vsel %vm1603_vm14, %v1614_v6, %v1616_v7  ;;  %v5857_v0 = vshll.u32 %v1578_v28, 8 }
 0x1ac   :  { %v5862_v42 = vsel %vm1156_vm0, %v1238_v45, %v5755_v30  ;;  %v5866_v11 = vshrl.u32 %v1314_v47, %v1330_v27  ;;  %v5868_v31 = vadd.s32 127, %v1334_v14  ;;  %v1701_v28 = vshrl.u32 %v8901_v25, %v5841_v61 }
 0x1ad   :  { %v5871_v62 = vmul.u32.u64.low %v5857_v0, %v1613_v24  ;;  %v5872_v48 = vmul.u32.u64.high %v5857_v0, %v1613_v24, %v5871_v62  ;;  %v1781_v53 = vand.u32 2139095040, %v5849_v55  ;;  %v1438_v30 = vsub.s32 4294967266, %v5851_v3 }
 0x1ae   :  { %v5880_v45 = vmul.u32.u64.low %v5857_v0, %v1617_v10  ;;  %v5881_v9 = vmul.u32.u64.high %v5857_v0, %v1617_v10, %v5880_v45  ;;  %v8838_v27 = vand.u32 2147483647, %v5688_v49  ;;  %v1527_v14 = vadd.s32 536870912, %v5853_v12 }
 0x1af   :  { %v1607_v6 = vsel %vm1605_vm9, %v1595_v18, 2102212464  ;;  %v1700_v7 = vshll.u32 %v8885_v5, %v1688_v22  ;;  %v1704_v60 = vshrl.u32 %v8884_v63, %v5841_v61  ;;  %v5890_v47 = vshrl.u32 %v1686_v13, 5 }
 0x1b0   :  { %v1692_v24 = vshrl.u32 %v8902_v51, %v5841_v61  ;;  %v1695_v10 = vshrl.u32 %v8903_v56, %v5841_v61  ;;  %v1698_v45 = vshrl.u32 %v8885_v5, %v5841_v61  ;;  %v1586_v21 = vshrl.u32 %v8841_v52, %v5727_v44 }
 0x1b1   :  { %v1702_v18 = vor.u32 %v1701_v28, %v1700_v7  ;;  %v1703_v58 = vshll.u32 %v8901_v25, %v1688_v22  ;;  %v1782_v20 = vshrl.u32 %v1781_v53, 23  ;;  %v1681_v13 = vand.u32 8388607, %v8838_v27 }
 0x1b2   :  { %v1691_v2 = vshll.u32 %v8841_v52, %v1688_v22  ;;  %v1694_v57 = vshll.u32 %v8902_v51, %v1688_v22  ;;  %v1697_v40 = vshll.u32 %v8903_v56, %v1688_v22  ;;  %v5906_v54 = vshrl.u32 %v1527_v14, 30 }
 0x1b3   :  { %v1606_v17 = vsel %vm1602_vm12, %v1586_v21, %v5802_v37  ;;  %v1608_v44 = vsel %vm1604_vm5, %v5804_v36, %v1607_v6  ;;  %v1705_v28 = vor.u32 %v1704_v60, %v1703_v58  ;;  %vm1709_vm15 = vcmp.lt.s32.totalorder %v5890_v47, 4 }
 0x1b4   :  { %v5914_v53 = vor.u32 %v1692_v24, %v1691_v2  ;;  %v5916_v7 = vor.u32 %v1695_v10, %v1694_v57  ;;  %v5918_v27 = vor.u32 %v1698_v45, %v1697_v40  ;;  %v1434_v22 = vsub.s32 32, %v5851_v3 }
 0x1b5   :  { %v1628_v14 = vadd.s32 1, %v5872_v48  ;;  %v1715_v21 = vsel %vm1709_vm15, %v1702_v18, 920167782  ;;  %v4022_v37 = vadd.s32 4294967169, %v1782_v20  ;;  %v1418_v36 = vadd.s32 %v5534_v23, %v5541_v41 }
 0x1b6   :  { %v1439_v58 = vadd.s32 127, %v1438_v30  ;;  %v1609_v57 = vsel %vm1603_vm14, %v1606_v17, %v1608_v44  ;;  %vm1627_vm1 = vc.u32 %v5881_v9, %v5871_v62  ;;  %v1529_v2 = vshll.u32 %v5906_v54, 30 }
 0x1b7   :  { %v4263_v40 = vpop.eup %4262  ;;  %vm1706_vm0 = vcmp.lt.s32.totalorder %v5890_v47, 1  ;;  %vm1708_vm4 = vcmp.lt.s32.totalorder %v5890_v47, 3  ;;  %v1719_v20 = vsel %vm1709_vm15, %v1705_v28, 1326507024  ;;  %vm1146_vm10 = vcmp.eq.s32.totalorder %v5735_v19, 0 }
 0x1b8   :  { %vm1149_vm6 = vcmp.eq.s32.totalorder %v5735_v19, 2  ;;  %v1682_v23 = vor.u32 8388608, %v1681_v13  ;;  %v1714_v17 = vsel %vm1706_vm0, %v5914_v53, %v5916_v7  ;;  %v1716_v41 = vsel %vm1708_vm4, %v5918_v27, %v1715_v21 }
 0x1b9   :  { %v1788_v38 = vadd.s32 1, %v4022_v37  ;;  %v1336_v30 = vshll.u32 %v5868_v31, 23  ;;  %v1436_v6 = vshrl.u32 %v1418_v36, %v1434_v22  ;;  %v1625_v60 = vmul.u32 %v5857_v0, %v1609_v57 }
 0x1ba   :  { %v1629_v24 = vsel %vm1627_vm1, %v1628_v14, %v5872_v48  ;;  %vm1707_vm3 = vcmp.lt.s32.totalorder %v5890_v47, 2  ;;  %v1718_v10 = vsel %vm1706_vm0, %v5916_v7, %v5918_v27  ;;  %v1720_v45 = vsel %vm1708_vm4, %v1702_v18, %v1719_v20 }
 0x1bb   :  { %vm1789_vm2 = vcmp.gt.s32.totalorder %v1788_v38, 0  ;;  %v1440_v13 = vshll.u32 %v1439_v58, 23  ;;  %v5956_v44 = vsub.s32 %v5853_v12, %v1529_v2  ;;  %v1717_v0 = vsel %vm1707_vm3, %v1714_v17, %v1716_v41 }
 0x1bc   :  { %v1790_v31 = vsel %vm1789_vm2, %v1788_v38, 0  ;;  %v1242_v48 = vsel %vm5751_vm7, %v4994_v33, %v5862_v42  ;;  %v1435_v28 = vshll.u32 %v5699_v26, %v5851_v3  ;;  %v5966_v22 = vadd.s32 %v1629_v24, %v1625_v60 }
 0x1bd   :  { %v5968_v18 = vshll.u32 %v1682_v23, 8  ;;  %v1147_v14 = vxor.u32 2147483648, %v4263_v40  ;;  %v8909_v12 = vshll.u32 %v5622_v46, %v5760_v39  ;;  %v1721_v37 = vsel %vm1707_vm3, %v1718_v10, %v1720_v45 }
 0x1be   :  { %v1792_v36 = vand.u32 31, %v1790_v31  ;;  %v1337_v58 = vor.u32 4788187, %v1336_v30  ;;  %v1437_v8 = vor.u32 %v1436_v6, %v1435_v28  ;;  %4264 = vcosq.f32 %v1242_v48 }
 0x1bf   :  { %v1333_v21 = vor.u32 %v5866_v11, %v8909_v12  ;;  %v5977_v42 = vmul.u32.u64.low %v5968_v18, %v1717_v0  ;;  %v5978_v57 = vmul.u32.u64.high %v5968_v18, %v1717_v0, %v5977_v42  ;;  %v5982_v26 = vand.u32 3, %v5837_v1  ;;  %v6030_v12 = vpop.f32.mrf.mxu0 }
 0x1c0   :  { %v1441_v3 = vor.u32 4788187, %v1440_v13  ;;  %v1532_v46 = vsub.s32 0, %v5956_v44  ;;  %v1631_v39 = vadd.s32 536870912, %v5966_v22  ;;  %v5990_v20 = vsub.s32 32, %v1792_v36  ;;  %8911 = vst [vmem:[#allocation12_spill] sm:$0xff] %v6030_v12 }
 0x1c1   :  { %v5987_v11 = vmul.u32.u64.low %v5968_v18, %v1721_v37  ;;  %v5988_v2 = vmul.u32.u64.high %v5968_v18, %v1721_v37, %v5987_v11  ;;  %v5995_v23 = vsel %vm1146_vm10, %v5822_v15, %v1147_v14  ;;  %v8910_v17 = vxor.u32 2147483648, %v5822_v15 }
 0x1c2   :  { %4266 = vsinq.f32 %v1242_v48  ;;  %vm1260_vm7 = vcmp.lt.s32.totalorder %v5125_v34, 0  ;;  %v1344_v41 = vsub.s32 4, %v5574_v16  ;;  %v1338_v38 = vand.u32 2147483647, %v1337_v58 }
 0x1c3   :  { %v6001_v1 = vsel %vm1149_vm6, %v8910_v17, %v4263_v40  ;;  %v1340_v30 = vcvt.s32.f32 %v1333_v21  ;;  %v1444_v6 = vcvt.s32.f32 %v1437_v8  ;;  %v1690_v60 = vshrl.u32 %v8841_v52, %v5841_v61 }
 0x1c4   :  { %v1442_v24 = vand.u32 2147483647, %v1441_v3  ;;  %v6008_v10 = vmin.u32 %v1532_v46, %v5956_v44  ;;  %v1711_v15 = vsel %vm1709_vm15, %v5918_v27, 2102212464  ;;  %v8843_v40 = vand.u32 2147483647, %v5849_v55 }
 0x1c5   :  { %v6014_v45 = vshrl.u32 %v1631_v39, 30  ;;  %v1710_v13 = vsel %vm1706_vm0, %v1690_v60, %v5914_v53  ;;  %v6019_v0 = vshrl.u32 %v1790_v31, 5  ;;  %v1796_v61 = vshrl.u32 %v8902_v51, %v5990_v20 }
 0x1c6   :  { %v1799_v48 = vshrl.u32 %v8903_v56, %v5990_v20  ;;  %v1802_v28 = vshrl.u32 %v8885_v5, %v5990_v20  ;;  %v1804_v27 = vshll.u32 %v8885_v5, %v1792_v36  ;;  %v1805_v14 = vshrl.u32 %v8901_v25, %v5990_v20 }
 0x1c7   :  { %v1712_v53 = vsel %vm1708_vm4, %v5916_v7, %v1711_v15  ;;  %v1732_v31 = vadd.s32 1, %v5978_v57  ;;  %v1807_v21 = vshll.u32 %v8901_v25, %v1792_v36  ;;  %v1808_v37 = vshrl.u32 %v8884_v63, %v5990_v20 }
 0x1c8   :  { %vm1145_vm8 = vcmp.lt.s32.totalorder %v5735_v19, 2  ;;  %v8912_v58 = vand.u32 2147483647, %v5125_v34  ;;  %v1795_v3 = vshll.u32 %v8841_v52, %v1792_v36  ;;  %v1798_v46 = vshll.u32 %v8902_v51, %v1792_v36 }
 0x1c9   :  { %v1801_v7 = vshll.u32 %v8903_v56, %v1792_v36  ;;  %v1806_v39 = vor.u32 %v1805_v14, %v1804_v27  ;;  %vm1731_vm11 = vc.u32 %v5988_v2, %v5977_v42  ;;  %v1785_v11 = vand.u32 8388607, %v8843_v40 }
 0x1ca   :  { %vm6042_vm9 = vcmp.le.f32.partialorder %v8912_v58, 0.7853982  ;;  %v1809_v17 = vor.u32 %v1808_v37, %v1807_v21  ;;  %v1885_v60 = vand.u32 2139095040, %v6030_v12  ;;  %v6054_v15 = vor.u32 %v1796_v61, %v1795_v3 }
 0x1cb   :  { %v6056_v58 = vor.u32 %v1799_v48, %v1798_v46  ;;  %v6058_v49 = vor.u32 %v1802_v28, %v1801_v7  ;;  %vm1813_vm12 = vcmp.lt.s32.totalorder %v6019_v0, 4  ;;  %v1341_v52 = vmul.f32 %v1340_v30, %v1338_v38  ;;  %v4265_v30 = vpop.eup %4264 }
 0x1cc   :  { %v1345_v36 = vsel %vm1260_vm7, %v1344_v41, %v5574_v16  ;;  %v1713_v27 = vsel %vm1707_vm3, %v1710_v13, %v1712_v53  ;;  %v1819_v14 = vsel %vm1813_vm12, %v1806_v39, 920167782  ;;  %vm1364_vm5 = vcmp.lt.s32.totalorder %v5242_v35, 0 }
 0x1cd   :  { %v1445_v61 = vmul.f32 %v1444_v6, %v1442_v24  ;;  %v1534_v48 = vclz %v6008_v10  ;;  %v1633_v28 = vshll.u32 %v6014_v45, 30  ;;  %v1733_v38 = vsel %vm1731_vm11, %v1732_v31, %v5978_v57 }
 0x1ce   :  { %vm1810_vm13 = vcmp.lt.s32.totalorder %v6019_v0, 1  ;;  %vm1812_vm14 = vcmp.lt.s32.totalorder %v6019_v0, 3  ;;  %v1823_v16 = vsel %vm1813_vm12, %v1809_v17, 1326507024  ;;  %v1886_v47 = vshrl.u32 %v1885_v60, 23 }
 0x1cf   :  { %vm1038_vm15 = vweird.f32 %v4776_v43  ;;  %vm1250_vm1 = vcmp.eq.s32.totalorder %v5982_v26, 0  ;;  %v1729_v41 = vmul.u32 %v5968_v18, %v1713_v27  ;;  %v1786_v6 = vor.u32 8388608, %v1785_v11  ;;  %v4267_v10 = vpop.eup %4266 }
 0x1d0   :  { %v1818_v57 = vsel %vm1810_vm13, %v6054_v15, %v6056_v58  ;;  %v1820_v24 = vsel %vm1812_vm14, %v6058_v49, %v1819_v14  ;;  %vm1253_vm0 = vcmp.eq.s32.totalorder %v5982_v26, 2  ;;  %v1342_v13 = vxor.u32 2147483648, %v1341_v52 }
 0x1d1   :  { %v8915_v53 = vand.u32 2147483647, %v5242_v35  ;;  %v1822_v18 = vsel %vm1810_vm13, %v6056_v58, %v6058_v49  ;;  %v1824_v21 = vsel %vm1812_vm14, %v1806_v39, %v1823_v16  ;;  %vm1142_vm10 = vweird.f32 %v4914_v59 }
 0x1d2   :  { %v6104_v37 = vsub.s32 %v5966_v22, %v1633_v28  ;;  %v6106_v3 = vadd.s32 %v1733_v38, %v1729_v41  ;;  %vm1811_vm6 = vcmp.lt.s32.totalorder %v6019_v0, 2  ;;  %v4026_v46 = vadd.s32 4294967169, %v1886_v47 }
 0x1d3   :  { %vm6092_vm4 = vcmp.le.f32.partialorder %v8915_v53, 0.7853982  ;;  %v1152_v7 = vsel %vm1145_vm8, %v5995_v23, %v6001_v1  ;;  %v1347_v11 = vsel %vm6042_vm9, 0, %v1345_v36  ;;  %v1446_v17 = vxor.u32 2147483648, %v1445_v61 }
 0x1d4   :  { %v1821_v39 = vsel %vm1811_vm6, %v1818_v57, %v1820_v24  ;;  %v4012_v60 = vadd.s32 4294967294, %v1534_v48  ;;  %v1825_v22 = vsel %vm1811_vm6, %v1822_v18, %v1824_v21  ;;  %v6119_v27 = vshll.u32 %v1786_v6, 8 }
 0x1d5   :  { %v1892_v14 = vadd.s32 1, %v4026_v46  ;;  %v1251_v28 = vxor.u32 2147483648, %v4267_v10  ;;  %v1254_v38 = vxor.u32 2147483648, %v4265_v30  ;;  %v1343_v19 = vsel %vm1260_vm7, %v1342_v13, %v1341_v52 }
 0x1d6   :  { %v1448_v23 = vsub.s32 4, %v5660_v32  ;;  %v1636_v1 = vsub.s32 0, %v6104_v37  ;;  %v1735_v36 = vadd.s32 536870912, %v6106_v3  ;;  %v1447_v47 = vsel %vm1364_vm5, %v1446_v17, %v1445_v61 }
 0x1d7   :  { %v6127_v16 = vmul.u32.u64.low %v6119_v27, %v1821_v39  ;;  %v6128_v48 = vmul.u32.u64.high %v6119_v27, %v1821_v39, %v6127_v16  ;;  %v6134_v41 = vmul.u32.u64.low %v6119_v27, %v1825_v22  ;;  %v6135_v6 = vmul.u32.u64.high %v6119_v27, %v1825_v22, %v6134_v41  ;;  %v6181_v39 = vpop.f32.mrf.mxu0 }
 0x1d8   :  { %vm1893_vm3 = vcmp.gt.s32.totalorder %v1892_v14, 0  ;;  %v1346_v52 = vsel %vm6042_vm9, %v5125_v34, %v1343_v19  ;;  %v1351_v57 = vadd.s32 3, %v1347_v11  ;;  %vm4013_vm2 = vcmp.lt.s32.totalorder %v4012_v60, 0 }
 0x1d9   :  { %v1894_v24 = vsel %vm1893_vm3, %v1892_v14, 0  ;;  %v6143_v13 = vsel %vm1038_vm15, nan, %v5742_v50  ;;  %v1252_v61 = vsel %vm1250_vm1, %v4265_v30, %v1251_v28  ;;  %v1255_v53 = vsel %vm1253_vm0, %v1254_v38, %v4267_v10 }
 0x1da   :  { %8918 = vst [vmem:[#allocation13_spill] sm:$0xff] %v6143_v13  ;;  %v1896_v18 = vand.u32 31, %v1894_v24  ;;  %v6152_v8 = vsel %vm1364_vm5, %v1448_v23, %v5660_v32  ;;  %v1450_v21 = vsel %vm6092_vm4, %v5242_v35, %v1447_v47  ;;  %v4015_v43 = vmin.u32 %v1636_v1, %v6104_v37 }
 0x1db   :  { %v6158_v50 = vshrl.u32 %v1735_v36, 30  ;;  %v6162_v30 = vsel %vm1142_vm10, nan, %v1152_v7  ;;  %vm1249_vm7 = vcmp.lt.s32.totalorder %v5982_v26, 2  ;;  %4268 = vcosq.f32 %v1346_v52 }
 0x1dc   :  { %8919 = vst [vmem:[#allocation14_spill] sm:$0xff] %v6162_v30  ;;  %v6165_v10 = vsel %vm4013_vm2, 0, %v4012_v60  ;;  %4270 = vsinq.f32 %v1346_v52  ;;  %v6167_v32 = vand.u32 3, %v1351_v57  ;;  %v1815_v46 = vsel %vm1813_vm12, %v6058_v49, 2102212464 }
 0x1dd   :  { %v6172_v11 = vsub.s32 32, %v1896_v18  ;;  %v6174_v17 = vsel %vm1249_vm7, %v1252_v61, %v1255_v53  ;;  %4272 = vcosq.f32 %v1450_v21  ;;  %v8920_v26 = vmov 683565275  }
 0x1de   :  { %v1794_v7 = vshrl.u32 %v8920_v26, %v5990_v20  ;;  %v1542_v60 = vsub.s32 4294967266, %v6165_v10  ;;  %v1638_v22 = vclz %v4015_v43  ;;  %v1737_v14 = vshll.u32 %v6158_v50, 30 }
 0x1df   :  { %v8844_v49 = vand.u32 2147483647, %v6030_v12  ;;  %v1816_v38 = vsel %vm1812_vm14, %v6056_v58, %v1815_v46  ;;  %vm1835_vm8 = vc.u32 %v6135_v6, %v6127_v16  ;;  %v1836_v20 = vadd.s32 1, %v6128_v48 }
 0x1e0   :  { %v1814_v28 = vsel %vm1810_vm13, %v1794_v7, %v6054_v15  ;;  %v1900_v19 = vshrl.u32 %v8902_v51, %v6172_v11  ;;  %v1903_v23 = vshrl.u32 %v8903_v56, %v6172_v11  ;;  %v1909_v1 = vshrl.u32 %v8901_v25, %v6172_v11 }
 0x1e1   :  { %v1989_v15 = vand.u32 2139095040, %v6181_v39  ;;  %v1906_v36 = vshrl.u32 %v8885_v5, %v6172_v11  ;;  %v1908_v58 = vshll.u32 %v8885_v5, %v1896_v18  ;;  %v1911_v47 = vshll.u32 %v8901_v25, %v1896_v18 }
 0x1e2   :  { %v1912_v41 = vshrl.u32 %v8884_v63, %v6172_v11  ;;  %v6209_v52 = vsub.s32 %v6106_v3, %v1737_v14  ;;  %v1817_v57 = vsel %vm1811_vm6, %v1814_v28, %v1816_v38  ;;  %v6213_v61 = vshrl.u32 %v1894_v24, 5  ;;  %v8921_v24 = vld [vmem:[#allocation5_spill] sm:$0xff] }
 0x1e3   :  { %v1899_v53 = vshll.u32 %v8920_v26, %v1896_v18  ;;  %v1902_v43 = vshll.u32 %v8902_v51, %v1896_v18  ;;  %v1905_v46 = vshll.u32 %v8903_v56, %v1896_v18  ;;  %v1910_v7 = vor.u32 %v1909_v1, %v1908_v58 }
 0x1e4   :  { %v1913_v40 = vor.u32 %v1912_v41, %v1911_v47  ;;  %4274 = vsinq.f32 %v1450_v21  ;;  %v1522_v59 = vadd.s32 %v5764_v4, %v5772_v29  ;;  %v1837_v0 = vsel %vm1835_vm8, %v1836_v20, %v6128_v48 }
 0x1e5   :  { %v1889_v3 = vand.u32 8388607, %v8844_v49  ;;  %vm1468_vm9 = vcmp.lt.s32.totalorder %v8921_v24, 0  ;;  %v6227_v14 = vor.u32 %v1900_v19, %v1899_v53  ;;  %v6229_v28 = vor.u32 %v1903_v23, %v1902_v43 }
 0x1e6   :  { %v1907_v18 = vor.u32 %v1906_v36, %v1905_v46  ;;  %v1990_v38 = vshrl.u32 %v1989_v15, 23  ;;  %v1538_v21 = vsub.s32 32, %v6165_v10  ;;  %v1543_v1 = vadd.s32 127, %v1542_v60 }
 0x1e7   :  { %v1833_v4 = vmul.u32 %v6119_v27, %v1817_v57  ;;  %vm1917_vm11 = vcmp.lt.s32.totalorder %v6213_v61, 4  ;;  %v4016_v29 = vadd.s32 4294967294, %v1638_v22  ;;  %v1740_v48 = vsub.s32 0, %v6209_v52 }
 0x1e8   :  { %v1923_v20 = vsel %vm1917_vm11, %v1910_v7, 920167782  ;;  %v1927_v19 = vsel %vm1917_vm11, %v1913_v40, 1326507024  ;;  %v4269_v23 = vpop.eup %4268  ;;  %vm1354_vm12 = vcmp.eq.s32.totalorder %v6167_v32, 0  ;;  %vm1357_vm5 = vcmp.eq.s32.totalorder %v6167_v32, 2 }
 0x1e9   :  { %v8922_v60 = vand.u32 2147483647, %v8921_v24  ;;  %v1552_v22 = vsub.s32 4, %v5906_v54  ;;  %v6248_v15 = vadd.s32 %v1837_v0, %v1833_v4  ;;  %vm1914_vm14 = vcmp.lt.s32.totalorder %v6213_v61, 1  ;;  %v4271_v40 = vpop.eup %4270 }
 0x1ea   :  { %vm1916_vm15 = vcmp.lt.s32.totalorder %v6213_v61, 3  ;;  %v1890_v36 = vor.u32 8388608, %v1889_v3  ;;  %v1922_v58 = vsel %vm1914_vm14, %v6227_v14, %v6229_v28  ;;  %v4030_v41 = vadd.s32 4294967169, %v1990_v38  ;;  %v6258_v57 = vpop.eup %4272 }
 0x1eb   :  { %vm6243_vm13 = vcmp.le.f32.partialorder %v8922_v60, 0.7853982  ;;  %v1924_v47 = vsel %vm1916_vm15, %v1907_v18, %v1923_v20  ;;  %vm1246_vm1 = vweird.f32 %v4994_v33  ;;  %v1540_v53 = vshrl.u32 %v1522_v59, %v1538_v21 }
 0x1ec   :  { %v1544_v43 = vshll.u32 %v1543_v1, 23  ;;  %v1926_v46 = vsel %vm1914_vm14, %v6229_v28, %v1907_v18  ;;  %v1928_v0 = vsel %vm1916_vm15, %v1910_v7, %v1927_v19  ;;  %v8925_v3 = vsel %vm6092_vm4, 0, %v6152_v8 }
 0x1ed   :  { %v1455_v4 = vadd.s32 3, %v8925_v3  ;;  %vm4017_vm0 = vcmp.lt.s32.totalorder %v4016_v29, 0  ;;  %v4019_v38 = vmin.u32 %v1740_v48, %v6209_v52  ;;  %vm1915_vm10 = vcmp.lt.s32.totalorder %v6213_v61, 2 }
 0x1ee   :  { %v1539_v59 = vshll.u32 %v5956_v44, %v6165_v10  ;;  %v1839_v21 = vadd.s32 536870912, %v6248_v15  ;;  %v1925_v1 = vsel %vm1915_vm10, %v1922_v58, %v1924_v47  ;;  %v1996_v20 = vadd.s32 1, %v4030_v41 }
 0x1ef   :  { %v1355_v7 = vxor.u32 2147483648, %v4271_v40  ;;  %v1358_v19 = vxor.u32 2147483648, %v4269_v23  ;;  %v1929_v31 = vsel %vm1915_vm10, %v1926_v46, %v1928_v0  ;;  %v6279_v8 = vshll.u32 %v1890_v36, 8 }
 0x1f0   :  { %v1541_v60 = vor.u32 %v1540_v53, %v1539_v59  ;;  %v1545_v48 = vor.u32 4788187, %v1544_v43  ;;  %v1553_v3 = vsel %vm1468_vm9, %v1552_v22, %v5906_v54  ;;  %v6284_v44 = vsel %vm4017_vm0, 0, %v4016_v29 }
 0x1f1   :  { %v1742_v10 = vclz %v4019_v38  ;;  %v6287_v49 = vmul.u32.u64.low %v6279_v8, %v1925_v1  ;;  %v6288_v58 = vmul.u32.u64.high %v6279_v8, %v1925_v1, %v6287_v49  ;;  %vm1997_vm4 = vcmp.gt.s32.totalorder %v1996_v20, 0  ;;  %v6297_v43 = vpop.eup %4274 }
 0x1f2   :  { %v6291_v47 = vshrl.u32 %v1839_v21, 30  ;;  %v6294_v36 = vmul.u32.u64.low %v6279_v8, %v1929_v31  ;;  %v6295_v41 = vmul.u32.u64.high %v6279_v8, %v1929_v31, %v6294_v36  ;;  %v1998_v53 = vsel %vm1997_vm4, %v1996_v20, 0 }
 0x1f3   :  { %8926 = vst [vmem:[#allocation5_spill] sm:$0xff] %v6287_v49  ;;  %v1356_v54 = vsel %vm1354_vm12, %v4269_v23, %v1355_v7  ;;  %v1359_v29 = vsel %vm1357_vm5, %v1358_v19, %v4271_v40  ;;  %v1555_v22 = vsel %vm6243_vm13, 0, %v1553_v3  ;;  %v2000_v46 = vand.u32 31, %v1998_v53 }
 0x1f4   :  { %8927 = vst [vmem:[#allocation15_spill] sm:$0xff] %v6295_v41  ;;  %vm1353_vm6 = vcmp.lt.s32.totalorder %v6167_v32, 2  ;;  %v6306_v0 = vand.u32 3, %v1455_v4  ;;  %v1546_v38 = vand.u32 2147483647, %v1545_v48  ;;  %v6313_v21 = vsel %vm1246_vm1, nan, %v6174_v17 }
 0x1f5   :  { %v1919_v59 = vsel %vm1917_vm11, %v1907_v18, 2102212464  ;;  %8928 = vst [vmem:[#allocation16_spill] sm:$0xff] %v6313_v21  ;;  %v1646_v23 = vsub.s32 4294967266, %v6284_v44  ;;  %v4020_v40 = vadd.s32 4294967294, %v1742_v10  ;;  %v1898_v1 = vshrl.u32 %v8920_v26, %v6172_v11  ;;  %v6333_v11 = vpop.f32.mrf.mxu0 }
 0x1f6   :  { %v6318_v20 = vsel %vm1353_vm6, %v1356_v54, %v1359_v29  ;;  %v1548_v32 = vcvt.s32.f32 %v1541_v60  ;;  %v6320_v4 = vadd.s32 3, %v1555_v22  ;;  %v1841_v7 = vshll.u32 %v6291_v47, 30 }
 0x1f7   :  { %v1626_v18 = vadd.s32 %v5871_v62, %v5881_v9  ;;  %v1918_v33 = vsel %vm1914_vm14, %v1898_v1, %v6227_v14  ;;  %v1920_v17 = vsel %vm1916_vm15, %v6229_v28, %v1919_v59  ;;  %v6331_v19 = vsub.s32 32, %v2000_v46 }
 0x1f8   :  { %v1459_v31 = vxor.u32 2147483648, %v6297_v43  ;;  %vm1461_vm3 = vcmp.eq.s32.totalorder %v6306_v0, 2  ;;  %v1462_v60 = vxor.u32 2147483648, %v6258_v57  ;;  %v1549_v48 = vmul.f32 %v1548_v32, %v1546_v38 }
 0x1f9   :  { %v1642_v62 = vsub.s32 32, %v6284_v44  ;;  %v1647_v9 = vadd.s32 127, %v1646_v23  ;;  %vm4021_vm2 = vcmp.lt.s32.totalorder %v4020_v40, 0  ;;  %v1940_v14 = vadd.s32 1, %v6288_v58 }
 0x1fa   :  { %v6342_v28 = vsub.s32 %v6248_v15, %v1841_v7  ;;  %v1921_v10 = vsel %vm1915_vm10, %v1918_v33, %v1920_v17  ;;  %vm1939_vm7 = vc.u32 %v6295_v41, %v6287_v49  ;;  %v2093_v36 = vand.u32 2139095040, %v6333_v11 }
 0x1fb   :  { %v6349_v54 = vshrl.u32 %v1998_v53, 5  ;;  %v2012_v29 = vshll.u32 %v8885_v5, %v2000_v46  ;;  %v2013_v22 = vshrl.u32 %v8901_v25, %v6331_v19  ;;  %v2016_v38 = vshrl.u32 %v8884_v63, %v6331_v19 }
 0x1fc   :  { %v2004_v15 = vshrl.u32 %v8902_v51, %v6331_v19  ;;  %v2007_v61 = vshrl.u32 %v8903_v56, %v6331_v19  ;;  %v2010_v59 = vshrl.u32 %v8885_v5, %v6331_v19  ;;  %v2015_v53 = vshll.u32 %v8901_v25, %v2000_v46 }
 0x1fd   :  { %vm1458_vm8 = vcmp.eq.s32.totalorder %v6306_v0, 0  ;;  %v1648_v23 = vshll.u32 %v1647_v9, 23  ;;  %v6365_v1 = vsel %vm4021_vm2, 0, %v4020_v40  ;;  %v1941_v32 = vsel %vm1939_vm7, %v1940_v14, %v6288_v58 }
 0x1fe   :  { %v2014_v7 = vor.u32 %v2013_v22, %v2012_v29  ;;  %v2003_v33 = vshll.u32 %v8920_v26, %v2000_v46  ;;  %v2006_v17 = vshll.u32 %v8902_v51, %v2000_v46  ;;  %v2009_v3 = vshll.u32 %v8903_v56, %v2000_v46 }
 0x1ff   :  { %v2017_v21 = vor.u32 %v2016_v38, %v2015_v53  ;;  %v1844_v30 = vsub.s32 0, %v6342_v28  ;;  %v1937_v13 = vmul.u32 %v6279_v8, %v1921_v10  ;;  %v8929_v12 = vand.u32 2147483647, %v6181_v39 }
 0x200   :  { %v2094_v49 = vshrl.u32 %v2093_v36, 23  ;;  %v6375_v40 = vor.u32 %v2004_v15, %v2003_v33  ;;  %v6377_v41 = vor.u32 %v2007_v61, %v2006_v17  ;;  %v6379_v58 = vor.u32 %v2010_v59, %v2009_v3  ;;  %v8930_v15 = vld [vmem:[#allocation7_spill] sm:$0xff] }
 0x201   :  { %v1993_v9 = vand.u32 8388607, %v8929_v12  ;;  %vm2021_vm11 = vcmp.lt.s32.totalorder %v6349_v54, 4  ;;  %v1463_v46 = vsel %vm1461_vm3, %v1462_v60, %v6297_v43  ;;  %v1644_v14 = vshrl.u32 %v1626_v18, %v1642_v62 }
 0x202   :  { %v6385_v29 = vadd.s32 %v1941_v32, %v1937_v13  ;;  %v2027_v8 = vsel %vm2021_vm11, %v2014_v7, 920167782  ;;  %v1550_v12 = vxor.u32 2147483648, %v1549_v48  ;;  %v1643_v10 = vshll.u32 %v6104_v37, %v6284_v44 }
 0x203   :  { %v1649_v36 = vor.u32 4788187, %v1648_v23  ;;  %v2031_v3 = vsel %vm2021_vm11, %v2017_v21, 1326507024  ;;  %v1750_v22 = vsub.s32 4294967266, %v6365_v1  ;;  %vm2018_vm12 = vcmp.lt.s32.totalorder %v6349_v54, 1 }
 0x204   :  { %vm2020_vm5 = vcmp.lt.s32.totalorder %v6349_v54, 3  ;;  %v4034_v43 = vadd.s32 4294967169, %v2094_v49  ;;  %vm1350_vm14 = vweird.f32 %v5125_v34  ;;  %v4023_v13 = vmin.u32 %v1844_v30, %v6342_v28 }
 0x205   :  { %v1994_v18 = vor.u32 8388608, %v1993_v9  ;;  %v2026_v37 = vsel %vm2018_vm12, %v6375_v40, %v6377_v41  ;;  %v2028_v44 = vsel %vm2020_vm5, %v6379_v58, %v2027_v8  ;;  %vm1457_vm15 = vcmp.lt.s32.totalorder %v6306_v0, 2 }
 0x206   :  { %v1645_v21 = vor.u32 %v1644_v14, %v1643_v10  ;;  %v1943_v60 = vadd.s32 536870912, %v6385_v29  ;;  %v2030_v30 = vsel %vm2018_vm12, %v6377_v41, %v6379_v58  ;;  %v2032_v49 = vsel %vm2020_vm5, %v2014_v7, %v2031_v3 }
 0x207   :  { %v1460_v62 = vsel %vm1458_vm8, %v6258_v57, %v1459_v31  ;;  %v1551_v38 = vsel %vm1468_vm9, %v1550_v12, %v1549_v48  ;;  %vm1572_vm1 = vcmp.lt.s32.totalorder %v8930_v15, 0  ;;  %vm2019_vm0 = vcmp.lt.s32.totalorder %v6349_v54, 2 }
 0x208   :  { %v2100_v61 = vadd.s32 1, %v4034_v43  ;;  %v1650_v59 = vand.u32 2147483647, %v1649_v36  ;;  %v1656_v53 = vsub.s32 4, %v6014_v45  ;;  %v1746_v23 = vsub.s32 32, %v6365_v1 }
 0x209   :  { %v2029_v32 = vsel %vm2019_vm0, %v2026_v37, %v2028_v44  ;;  %v1751_v7 = vadd.s32 127, %v1750_v22  ;;  %v1846_v33 = vclz %v4023_v13  ;;  %v2033_v57 = vsel %vm2019_vm0, %v2030_v30, %v2032_v49 }
 0x20a   :  { %v6426_v31 = vshll.u32 %v1994_v18, 8  ;;  %v1554_v48 = vsel %vm6243_vm13, %v8921_v24, %v1551_v38  ;;  %v1652_v17 = vcvt.s32.f32 %v1645_v21  ;;  %v6431_v9 = vshrl.u32 %v1943_v60, 30 }
 0x20b   :  { %vm2101_vm9 = vcmp.gt.s32.totalorder %v2100_v61, 0  ;;  %v1730_v14 = vadd.s32 %v5977_v42, %v5988_v2  ;;  %v1752_v13 = vshll.u32 %v1751_v7, 23  ;;  %v4024_v18 = vadd.s32 4294967294, %v1846_v33 }
 0x20c   :  { %v6436_v8 = vmul.u32.u64.low %v6426_v31, %v2029_v32  ;;  %v6437_v12 = vmul.u32.u64.high %v6426_v31, %v2029_v32, %v6436_v8  ;;  %v2102_v10 = vsel %vm2101_vm9, %v2100_v61, 0  ;;  %v1653_v36 = vmul.f32 %v1652_v17, %v1650_v59 }
 0x20d   :  { %v6441_v3 = vmul.u32.u64.low %v6426_v31, %v2033_v57  ;;  %v6442_v22 = vmul.u32.u64.high %v6426_v31, %v2033_v57, %v6441_v3  ;;  %v2104_v27 = vand.u32 31, %v2102_v10  ;;  %v1748_v43 = vshrl.u32 %v1730_v14, %v1746_v23 }
 0x20e   :  { %v8850_v37 = vand.u32 2147483647, %v6333_v11  ;;  %v6448_v42 = vsel %vm1350_vm14, nan, %v6318_v20  ;;  %4276 = vcosq.f32 %v1554_v48  ;;  %v8932_v2 = vand.u32 2147483647, %v8930_v15 }
 0x20f   :  { %8931 = vst [vmem:[#allocation7_spill] sm:$0xff] %v6448_v42  ;;  %v1945_v21 = vshll.u32 %v6431_v9, 30  ;;  %v6457_v60 = vsub.s32 32, %v2104_v27  ;;  %v6461_v30 = vsel %vm1457_vm15, %v1460_v62, %v1463_v46  ;;  %4278 = vsinq.f32 %v1554_v48  ;;  %v6476_v46 = vpop.f32.mrf.mxu0 }
 0x210   :  { %vm6452_vm13 = vcmp.le.f32.partialorder %v8932_v2, 0.7853982  ;;  %v6464_v34 = vand.u32 3, %v6320_v4  ;;  %v1747_v20 = vshll.u32 %v6209_v52, %v6365_v1  ;;  %v1654_v49 = vxor.u32 2147483648, %v1653_v36 }
 0x211   :  { %v1657_v38 = vsel %vm1572_vm1, %v1656_v53, %v6014_v45  ;;  %v2002_v61 = vshrl.u32 %v8920_v26, %v6331_v19  ;;  %v2023_v0 = vsel %vm2021_vm11, %v6379_v58, 2102212464  ;;  %v1753_v4 = vor.u32 4788187, %v1752_v13 }
 0x212   :  { %v1749_v62 = vor.u32 %v1748_v43, %v1747_v20  ;;  %vm4025_vm10 = vcmp.lt.s32.totalorder %v4024_v18, 0  ;;  %v2097_v52 = vand.u32 8388607, %v8850_v37  ;;  %v6481_v1 = vsub.s32 %v6385_v29, %v1945_v21 }
 0x213   :  { %v2022_v45 = vsel %vm2018_vm12, %v2002_v61, %v6375_v40  ;;  %v2108_v19 = vshrl.u32 %v8902_v51, %v6457_v60  ;;  %v2111_v58 = vshrl.u32 %v8903_v56, %v6457_v60  ;;  %v2024_v59 = vsel %vm2020_vm5, %v6377_v41, %v2023_v0 }
 0x214   :  { %v2044_v53 = vadd.s32 1, %v6437_v12  ;;  %v2114_v29 = vshrl.u32 %v8885_v5, %v6457_v60  ;;  %v2197_v23 = vand.u32 2139095040, %v6476_v46  ;;  %vm2043_vm4 = vc.u32 %v6442_v22, %v6436_v8 }
 0x215   :  { %v2107_v40 = vshll.u32 %v8920_v26, %v2104_v27  ;;  %v2110_v32 = vshll.u32 %v8902_v51, %v2104_v27  ;;  %v2117_v7 = vshrl.u32 %v8901_v25, %v6457_v60  ;;  %v6503_v33 = vshrl.u32 %v2102_v10, 5 }
 0x216   :  { %v2113_v41 = vshll.u32 %v8903_v56, %v2104_v27  ;;  %v2116_v57 = vshll.u32 %v8885_v5, %v2104_v27  ;;  %v2120_v48 = vshrl.u32 %v8884_v63, %v6457_v60  ;;  %v2025_v17 = vsel %vm2019_vm0, %v2022_v45, %v2024_v59 }
 0x217   :  { %v6511_v14 = vor.u32 %v2108_v19, %v2107_v40  ;;  %v6513_v3 = vor.u32 %v2111_v58, %v2110_v32  ;;  %v2119_v43 = vshll.u32 %v8901_v25, %v2104_v27  ;;  %v1655_v10 = vsel %vm1572_vm1, %v1654_v49, %v1653_v36  ;;  %v8935_v58 = vld [vmem:[#allocation10_spill] sm:$0xff] }
 0x218   :  { %v1659_v13 = vsel %vm6452_vm13, 0, %v1657_v38  ;;  %v2115_v2 = vor.u32 %v2114_v29, %v2113_v41  ;;  %v2118_v21 = vor.u32 %v2117_v7, %v2116_v57  ;;  %v1754_v20 = vand.u32 2147483647, %v1753_v4 }
 0x219   :  { %v1756_v61 = vcvt.s32.f32 %v1749_v62  ;;  %v2045_v54 = vsel %vm2043_vm4, %v2044_v53, %v6437_v12  ;;  %v2121_v0 = vor.u32 %v2120_v48, %v2119_v43  ;;  %vm1454_vm6 = vweird.f32 %v5242_v35 }
 0x21a   :  { %v6526_v27 = vsel %vm4025_vm10, 0, %v4024_v18  ;;  %v2041_v36 = vmul.u32 %v6426_v31, %v2025_v17  ;;  %vm2122_vm3 = vcmp.lt.s32.totalorder %v6503_v33, 1  ;;  %v2198_v49 = vshrl.u32 %v2197_v23, 23 }
 0x21b   :  { %v1948_v38 = vsub.s32 0, %v6481_v1  ;;  %v2098_v4 = vor.u32 8388608, %v2097_v52  ;;  %vm2125_vm2 = vcmp.lt.s32.totalorder %v6503_v33, 4  ;;  %v2130_v12 = vsel %vm2122_vm3, %v6511_v14, %v6513_v3  ;;  %v4277_v62 = vpop.eup %4276 }
 0x21c   :  { %vm1562_vm7 = vcmp.eq.s32.totalorder %v6464_v34, 0  ;;  %v6537_v18 = vadd.s32 %v2045_v54, %v2041_v36  ;;  %vm2124_vm8 = vcmp.lt.s32.totalorder %v6503_v33, 3  ;;  %v2131_v31 = vsel %vm2125_vm2, %v2118_v21, 920167782  ;;  %v4279_v45 = vpop.eup %4278 }
 0x21d   :  { %v2134_v52 = vsel %vm2122_vm3, %v6513_v3, %v2115_v2  ;;  %v1658_v19 = vsel %vm6452_vm13, %v8930_v15, %v1655_v10  ;;  %vm1676_vm11 = vcmp.lt.s32.totalorder %v8935_v58, 0  ;;  %vm2123_vm12 = vcmp.lt.s32.totalorder %v6503_v33, 2 }
 0x21e   :  { %v2132_v59 = vsel %vm2124_vm8, %v2115_v2, %v2131_v31  ;;  %v2135_v53 = vsel %vm2125_vm2, %v2121_v0, 1326507024  ;;  %v1757_v29 = vmul.f32 %v1756_v61, %v1754_v20  ;;  %v4038_v32 = vadd.s32 4294967169, %v2198_v49 }
 0x21f   :  { %v2133_v23 = vsel %vm2123_vm12, %v2130_v12, %v2132_v59  ;;  %v2136_v40 = vsel %vm2124_vm8, %v2118_v21, %v2135_v53  ;;  %v1663_v44 = vadd.s32 3, %v1659_v13  ;;  %v1854_v7 = vsub.s32 4294967266, %v6526_v27 }
 0x220   :  { %v2137_v41 = vsel %vm2123_vm12, %v2134_v52, %v2136_v40  ;;  %v6561_v57 = vshll.u32 %v2098_v4, 8  ;;  %vm1561_vm5 = vcmp.lt.s32.totalorder %v6464_v34, 2  ;;  %v1563_v48 = vxor.u32 2147483648, %v4279_v45 }
 0x221   :  { %v1566_v17 = vxor.u32 2147483648, %v4277_v62  ;;  %v8936_v43 = vand.u32 2147483647, %v8935_v58  ;;  %v4027_v21 = vmin.u32 %v1948_v38, %v6481_v1  ;;  %v2047_v13 = vadd.s32 536870912, %v6537_v18 }
 0x222   :  { %4280 = vcosq.f32 %v1658_v19  ;;  %v6573_v20 = vmul.u32.u64.low %v6561_v57, %v2133_v23  ;;  %v6574_v61 = vmul.u32.u64.high %v6561_v57, %v2133_v23, %v6573_v20  ;;  %v2204_v54 = vadd.s32 1, %v4038_v32 }
 0x223   :  { %vm6566_vm14 = vcmp.le.f32.partialorder %v8936_v43, 0.7853982  ;;  %v1758_v0 = vxor.u32 2147483648, %v1757_v29  ;;  %v1760_v36 = vsub.s32 4, %v6158_v50  ;;  %v6585_v38 = vsel %vm1454_vm6, nan, %v6461_v30 }
 0x224   :  { %v6579_v49 = vmul.u32.u64.low %v6561_v57, %v2137_v41  ;;  %v6580_v4 = vmul.u32.u64.high %v6561_v57, %v2137_v41, %v6579_v49  ;;  %8939 = vst [vmem:[#allocation10_spill] sm:$0xff] %v6585_v38  ;;  %vm1565_vm15 = vcmp.eq.s32.totalorder %v6464_v34, 2  ;;  %v1855_v12 = vadd.s32 127, %v1854_v7 }
 0x225   :  { %vm2205_vm1 = vcmp.gt.s32.totalorder %v2204_v54, 0  ;;  %v1950_v31 = vclz %v4027_v21  ;;  %v6588_v52 = vshrl.u32 %v2047_v13, 30  ;;  %v2127_v59 = vsel %vm2125_vm2, %v2115_v2, 2102212464 }
 0x226   :  { %v2206_v53 = vsel %vm2205_vm1, %v2204_v54, 0  ;;  %v1564_v23 = vsel %vm1562_vm7, %v4277_v62, %v1563_v48  ;;  %v1567_v40 = vsel %vm1565_vm15, %v1566_v17, %v4279_v45  ;;  %v6594_v32 = vand.u32 3, %v1663_v44 }
 0x227   :  { %v2106_v35 = vshrl.u32 %v8920_v26, %v6457_v60  ;;  %4282 = vsinq.f32 %v1658_v19  ;;  %v1759_v30 = vsel %vm1676_vm11, %v1758_v0, %v1757_v29  ;;  %v6603_v7 = vsel %vm1676_vm11, %v1760_v36, %v6158_v50 }
 0x228   :  { %v2208_v2 = vand.u32 31, %v2206_v53  ;;  %v1850_v41 = vsub.s32 32, %v6526_v27  ;;  %v1856_v43 = vshll.u32 %v1855_v12, 23  ;;  %v2128_v60 = vsel %vm2124_vm8, %v6513_v3, %v2127_v59 }
 0x229   :  { %v2126_v62 = vsel %vm2122_vm3, %v2106_v35, %v6511_v14  ;;  %v4028_v45 = vadd.s32 4294967294, %v1950_v31  ;;  %v2049_v19 = vshll.u32 %v6588_v52, 30  ;;  %v8849_v29 = vand.u32 2147483647, %v6476_v46  ;;  %v6658_v35 = vpop.f32.mrf.mxu0 }
 0x22a   :  { %v6614_v44 = vsub.s32 32, %v2208_v2  ;;  %v6618_v50 = vsel %vm1561_vm5, %v1564_v23, %v1567_v40  ;;  %v1763_v48 = vsel %vm6566_vm14, 0, %v6603_v7  ;;  %v1834_v14 = vadd.s32 %v6127_v16, %v6135_v6  ;;  %8940 = vst [vmem:[#allocation17_spill] sm:$0xff] %v6658_v35  ;;  %v8944_v7 = vld [vmem:[#allocation15_spill] sm:$0xff] }
 0x22b   :  { %v2148_v3 = vadd.s32 1, %v6574_v61  ;;  %v6629_v17 = vsel %vm6566_vm14, %v8935_v58, %v1759_v30  ;;  %v1851_v21 = vshll.u32 %v6342_v28, %v6526_v27  ;;  %v2129_v34 = vsel %vm2123_vm12, %v2126_v62, %v2128_v60 }
 0x22c   :  { %vm2147_vm0 = vc.u32 %v6580_v4, %v6573_v20  ;;  %v1852_v13 = vshrl.u32 %v1834_v14, %v1850_v41  ;;  %v1857_v54 = vor.u32 4788187, %v1856_v43  ;;  %v2212_v16 = vshrl.u32 %v8902_v51, %v6614_v44 }
 0x22d   :  { %v2215_v6 = vshrl.u32 %v8903_v56, %v6614_v44  ;;  %vm4029_vm9 = vcmp.lt.s32.totalorder %v4028_v45, 0  ;;  %v6642_v0 = vsub.s32 %v6537_v18, %v2049_v19  ;;  %v2201_v28 = vand.u32 8388607, %v8849_v29 }
 0x22e   :  { %v2218_v33 = vshrl.u32 %v8885_v5, %v6614_v44  ;;  %v2145_v27 = vmul.u32 %v6561_v57, %v2129_v34  ;;  %v2149_v36 = vsel %vm2147_vm0, %v2148_v3, %v6574_v61  ;;  %v2211_v49 = vshll.u32 %v8920_v26, %v2208_v2 }
 0x22f   :  { %v2214_v12 = vshll.u32 %v8902_v51, %v2208_v2  ;;  %v4281_v31 = vpop.eup %4280  ;;  %v6652_v59 = vshrl.u32 %v2206_v53, 5  ;;  %v2217_v18 = vshll.u32 %v8903_v56, %v2208_v2  ;;  %v2220_v23 = vshll.u32 %v8885_v5, %v2208_v2 }
 0x230   :  { %v2221_v40 = vshrl.u32 %v8901_v25, %v6614_v44  ;;  %v6660_v30 = vor.u32 %v2212_v16, %v2211_v49  ;;  %v2223_v61 = vshll.u32 %v8901_v25, %v2208_v2  ;;  %v2224_v41 = vshrl.u32 %v8884_v63, %v6614_v44 }
 0x231   :  { %v6662_v57 = vor.u32 %v2215_v6, %v2214_v12  ;;  %vm1669_vm13 = vcmp.eq.s32.totalorder %v6594_v32, 2  ;;  %v2052_v53 = vsub.s32 0, %v6642_v0  ;;  %v6669_v43 = vadd.s32 %v2149_v36, %v2145_v27 }
 0x232   :  { %v2219_v62 = vor.u32 %v2218_v33, %v2217_v18  ;;  %v2222_v60 = vor.u32 %v2221_v40, %v2220_v23  ;;  %v1670_v19 = vxor.u32 2147483648, %v4281_v31  ;;  %4284 = vcosq.f32 %v6629_v17 }
 0x233   :  { %v2225_v14 = vor.u32 %v2224_v41, %v2223_v61  ;;  %v2301_v3 = vand.u32 2139095040, %v6658_v35  ;;  %vm1666_vm10 = vcmp.eq.s32.totalorder %v6594_v32, 0  ;;  %vm1780_vm4 = vcmp.lt.s32.totalorder %v5849_v55, 0 }
 0x234   :  { %v1853_v2 = vor.u32 %v1852_v13, %v1851_v21  ;;  %v1858_v34 = vand.u32 2147483647, %v1857_v54  ;;  %vm2226_vm6 = vcmp.lt.s32.totalorder %v6652_v59, 1  ;;  %vm2229_vm3 = vcmp.lt.s32.totalorder %v6652_v59, 4  ;;  %v4283_v16 = vpop.eup %4282 }
 0x235   :  { %v6678_v6 = vsel %vm4029_vm9, 0, %v4028_v45  ;;  %v2202_v33 = vor.u32 8388608, %v2201_v28  ;;  %v2234_v27 = vsel %vm2226_vm6, %v6660_v30, %v6662_v57  ;;  %v2235_v36 = vsel %vm2229_vm3, %v2222_v60, 920167782 }
 0x236   :  { %vm1558_vm2 = vweird.f32 %v8921_v24  ;;  %v4031_v21 = vmin.u32 %v2052_v53, %v6642_v0  ;;  %v2151_v13 = vadd.s32 536870912, %v6669_v43  ;;  %vm2228_vm7 = vcmp.lt.s32.totalorder %v6652_v59, 3 }
 0x237   :  { %v2238_v45 = vsel %vm2226_vm6, %v6662_v57, %v2219_v62  ;;  %vm1665_vm8 = vcmp.lt.s32.totalorder %v6594_v32, 2  ;;  %v8941_v54 = vand.u32 2147483647, %v5849_v55  ;;  %vm2227_vm12 = vcmp.lt.s32.totalorder %v6652_v59, 2 }
 0x238   :  { %v2236_v49 = vsel %vm2228_vm7, %v2219_v62, %v2235_v36  ;;  %v2239_v12 = vsel %vm2229_vm3, %v2225_v14, 1326507024  ;;  %v2302_v18 = vshrl.u32 %v2301_v3, 23  ;;  %v1667_v23 = vxor.u32 2147483648, %v4283_v16 }
 0x239   :  { %vm6696_vm11 = vcmp.le.f32.partialorder %v8941_v54, 0.7853982  ;;  %v1860_v40 = vcvt.s32.f32 %v1853_v2  ;;  %v2237_v61 = vsel %vm2227_vm12, %v2234_v27, %v2236_v49  ;;  %v2240_v41 = vsel %vm2228_vm7, %v2222_v60, %v2239_v12 }
 0x23a   :  { %v1864_v53 = vsub.s32 4, %v6291_v47  ;;  %v1958_v54 = vsub.s32 4294967266, %v6678_v6  ;;  %v2241_v29 = vsel %vm2227_vm12, %v2238_v45, %v2240_v41  ;;  %v6713_v36 = vshll.u32 %v2202_v33, 8 }
 0x23b   :  { %v1861_v37 = vmul.f32 %v1860_v40, %v1858_v34  ;;  %v2054_v14 = vclz %v4031_v21  ;;  %v6715_v3 = vshrl.u32 %v2151_v13, 30  ;;  %v4042_v2 = vadd.s32 4294967169, %v2302_v18 }
 0x23c   :  { %v1671_v27 = vsel %vm1669_vm13, %v1670_v19, %v4283_v16  ;;  %v1767_v60 = vadd.s32 3, %v1763_v48  ;;  %v6724_v49 = vmul.u32.u64.low %v6713_v36, %v2237_v61  ;;  %v6725_v12 = vmul.u32.u64.high %v6713_v36, %v2237_v61, %v6724_v49  ;;  %v8945_v48 = vld [vmem:[#allocation5_spill] sm:$0xff] }
 0x23d   :  { %v1954_v33 = vsub.s32 32, %v6678_v6  ;;  %v6730_v34 = vmul.u32.u64.low %v6713_v36, %v2241_v29  ;;  %v6731_v21 = vmul.u32.u64.high %v6713_v36, %v2241_v29, %v6730_v34  ;;  %v2308_v13 = vadd.s32 1, %v4042_v2 }
 0x23e   :  { %v1668_v19 = vsel %vm1666_vm10, %v4281_v31, %v1667_v23  ;;  %v1865_v10 = vsel %vm1780_vm4, %v1864_v53, %v6291_v47  ;;  %v1938_v16 = vadd.s32 %v8945_v48, %v8944_v7  ;;  %v1959_v45 = vadd.s32 127, %v1958_v54 }
 0x23f   :  { %v1862_v18 = vxor.u32 2147483648, %v1861_v37  ;;  %v4032_v40 = vadd.s32 4294967294, %v2054_v14  ;;  %v2153_v61 = vshll.u32 %v6715_v3, 30  ;;  %v2231_v29 = vsel %vm2229_vm3, %v2219_v62, 2102212464  ;;  %v6752_v23 = vpop.eup %4284 }
 0x240   :  { %v6746_v41 = vsel %vm1558_vm2, nan, %v6618_v50  ;;  %v6748_v31 = vand.u32 3, %v1767_v60  ;;  %v2210_v47 = vshrl.u32 %v8920_v26, %v6614_v44  ;;  %vm2309_vm5 = vcmp.gt.s32.totalorder %v2308_v13, 0 }
 0x241   :  { %8946 = vst [vmem:[#allocation15_spill] sm:$0xff] %v6746_v41  ;;  %v6756_v53 = vsel %vm1665_vm8, %v1668_v19, %v1671_v27  ;;  %v1867_v62 = vsel %vm6696_vm11, 0, %v1865_v10  ;;  %v1956_v54 = vshrl.u32 %v1938_v16, %v1954_v33  ;;  %v2310_v14 = vsel %vm2309_vm5, %v2308_v13, 0 }
 0x242   :  { %v1960_v24 = vshll.u32 %v1959_v45, 23  ;;  %v2230_v50 = vsel %vm2226_vm6, %v2210_v47, %v6660_v30  ;;  %v2232_v44 = vsel %vm2228_vm7, %v6662_v57, %v2231_v29  ;;  %v2312_v2 = vand.u32 31, %v2310_v14  ;;  %v8948_v57 = vld [vmem:[#allocation12_spill] sm:$0xff] }
 0x243   :  { %v1863_v32 = vsel %vm1780_vm4, %v1862_v18, %v1861_v37  ;;  %vm4033_vm14 = vcmp.lt.s32.totalorder %v4032_v40, 0  ;;  %v6769_v27 = vsub.s32 %v6669_v43, %v2153_v61  ;;  %v8851_v60 = vand.u32 2147483647, %v6658_v35  ;;  %v6785_v43 = vpop.f32.mrf.mxu0 }
 0x244   :  { %v6772_v33 = vadd.s32 3, %v1867_v62  ;;  %v1955_v34 = vshll.u32 %v6481_v1, %v6678_v6  ;;  %v2252_v30 = vadd.s32 1, %v6725_v12  ;;  %v6777_v13 = vsub.s32 32, %v2312_v2  ;;  %8947 = vst [vmem:[#allocation5_spill] sm:$0xff] %v6785_v43 }
 0x245   :  { %4286 = vsinq.f32 %v6629_v17  ;;  %v2233_v37 = vsel %vm2227_vm12, %v2230_v50, %v2232_v44  ;;  %vm2251_vm15 = vc.u32 %v6731_v21, %v6724_v49  ;;  %v1866_v1 = vsel %vm6696_vm11, %v5849_v55, %v1863_v32 }
 0x246   :  { %v1957_v6 = vor.u32 %v1956_v54, %v1955_v34  ;;  %v1961_v19 = vor.u32 4788187, %v1960_v24  ;;  %v6790_v10 = vsel %vm4033_vm14, 0, %v4032_v40  ;;  %v2156_v17 = vsub.s32 0, %v6769_v27 }
 0x247   :  { %v2305_v7 = vand.u32 8388607, %v8851_v60  ;;  %v2316_v59 = vshrl.u32 %v8902_v51, %v6777_v13  ;;  %v2319_v48 = vshrl.u32 %v8903_v56, %v6777_v13  ;;  %v2249_v16 = vmul.u32 %v6713_v36, %v2233_v37 }
 0x248   :  { %v2253_v28 = vsel %vm2251_vm15, %v2252_v30, %v6725_v12  ;;  %v2322_v45 = vshrl.u32 %v8885_v5, %v6777_v13  ;;  %v2405_v18 = vand.u32 2139095040, %v6785_v43  ;;  %v6804_v40 = vshrl.u32 %v2310_v14, 5 }
 0x249   :  { %v2315_v61 = vshll.u32 %v8920_v26, %v2312_v2  ;;  %v2318_v29 = vshll.u32 %v8902_v51, %v2312_v2  ;;  %v2325_v47 = vshrl.u32 %v8901_v25, %v6777_v13  ;;  %v2321_v62 = vshll.u32 %v8903_v56, %v2312_v2 }
 0x24a   :  { %v2324_v36 = vshll.u32 %v8885_v5, %v2312_v2  ;;  %v2327_v12 = vshll.u32 %v8901_v25, %v2312_v2  ;;  %v2328_v54 = vshrl.u32 %v8884_v63, %v6777_v13  ;;  %vm1662_vm1 = vweird.f32 %v8930_v15 }
 0x24b   :  { %v4035_v14 = vmin.u32 %v2156_v17, %v6769_v27  ;;  %v6817_v24 = vadd.s32 %v2253_v28, %v2249_v16  ;;  %v2317_v50 = vor.u32 %v2316_v59, %v2315_v61  ;;  %v2320_v44 = vor.u32 %v2319_v48, %v2318_v29 }
 0x24c   :  { %4288 = vcosq.f32 %v1866_v1  ;;  %v2323_v32 = vor.u32 %v2322_v45, %v2321_v62  ;;  %v2326_v34 = vor.u32 %v2325_v47, %v2324_v36  ;;  %v2329_v30 = vor.u32 %v2328_v54, %v2327_v12 }
 0x24d   :  { %4290 = vsinq.f32 %v1866_v1  ;;  %v1964_v37 = vcvt.s32.f32 %v1957_v6  ;;  %v1968_v60 = vsub.s32 4, %v6431_v9  ;;  %v2306_v2 = vor.u32 8388608, %v2305_v7 }
 0x24e   :  { %vm1884_vm0 = vcmp.lt.s32.totalorder %v8948_v57, 0  ;;  %v1962_v41 = vand.u32 2147483647, %v1961_v19  ;;  %v2062_v38 = vsub.s32 4294967266, %v6790_v10  ;;  %vm2330_vm9 = vcmp.lt.s32.totalorder %v6804_v40, 1 }
 0x24f   :  { %v2406_v17 = vshrl.u32 %v2405_v18, 23  ;;  %v2158_v16 = vclz %v4035_v14  ;;  %v2255_v59 = vadd.s32 536870912, %v6817_v24  ;;  %vm2333_vm13 = vcmp.lt.s32.totalorder %v6804_v40, 4 }
 0x250   :  { %v2338_v1 = vsel %vm2330_vm9, %v2317_v50, %v2320_v44  ;;  %vm1770_vm10 = vcmp.eq.s32.totalorder %v6748_v31, 0  ;;  %vm2332_vm4 = vcmp.lt.s32.totalorder %v6804_v40, 3  ;;  %v2339_v6 = vsel %vm2333_vm13, %v2326_v34, 920167782 }
 0x251   :  { %v2342_v19 = vsel %vm2330_vm9, %v2320_v44, %v2323_v32  ;;  %v2343_v7 = vsel %vm2333_vm13, %v2329_v30, 1326507024  ;;  %vm2331_vm6 = vcmp.lt.s32.totalorder %v6804_v40, 2  ;;  %v2340_v48 = vsel %vm2332_vm4, %v2323_v32, %v2339_v6 }
 0x252   :  { %v2344_v28 = vsel %vm2332_vm4, %v2326_v34, %v2343_v7  ;;  %v6840_v45 = vshll.u32 %v2306_v2, 8  ;;  %v4287_v18 = vpop.eup %4286  ;;  %v8949_v61 = vand.u32 2147483647, %v8948_v57  ;;  %v2063_v47 = vadd.s32 127, %v2062_v38 }
 0x253   :  { %v2341_v62 = vsel %vm2331_vm6, %v2338_v1, %v2340_v48  ;;  %v2345_v36 = vsel %vm2331_vm6, %v2342_v19, %v2344_v28  ;;  %v4046_v12 = vadd.s32 4294967169, %v2406_v17  ;;  %v1965_v54 = vmul.f32 %v1964_v37, %v1962_v41 }
 0x254   :  { %vm6844_vm3 = vcmp.le.f32.partialorder %v8949_v61, 0.7853982  ;;  %v6852_v14 = vshrl.u32 %v2255_v59, 30  ;;  %v6855_v34 = vmul.u32.u64.low %v6840_v45, %v2345_v36  ;;  %v6856_v30 = vmul.u32.u64.high %v6840_v45, %v2345_v36, %v6855_v34 }
 0x255   :  { %v6861_v2 = vsel %vm1662_vm1, nan, %v6756_v53  ;;  %vm1773_vm2 = vcmp.eq.s32.totalorder %v6748_v31, 2  ;;  %v6865_v38 = vmul.u32.u64.low %v6840_v45, %v2341_v62  ;;  %v6866_v1 = vmul.u32.u64.high %v6840_v45, %v2341_v62, %v6865_v38 }
 0x256   :  { %8952 = vst [vmem:[#allocation12_spill] sm:$0xff] %v6861_v2  ;;  %v1771_v17 = vxor.u32 2147483648, %v4287_v18  ;;  %v4036_v41 = vadd.s32 4294967294, %v2158_v16  ;;  %v2335_v37 = vsel %vm2333_vm13, %v2323_v32, 2102212464  ;;  %v2412_v59 = vadd.s32 1, %v4046_v12 }
 0x257   :  { %v6872_v6 = vand.u32 3, %v6772_v33  ;;  %v2058_v15 = vsub.s32 32, %v6790_v10  ;;  %v2064_v53 = vshll.u32 %v2063_v47, 23  ;;  %v2314_v19 = vshrl.u32 %v8920_v26, %v6777_v13 }
 0x258   :  { %v8953_v7 = vxor.u32 2147483648, %v6752_v23  ;;  %v1966_v28 = vxor.u32 2147483648, %v1965_v54  ;;  %v6884_v16 = vsel %vm1884_vm0, %v1968_v60, %v6431_v9  ;;  %v2257_v32 = vshll.u32 %v6852_v14, 30 }
 0x259   :  { %v2042_v33 = vadd.s32 %v6436_v8, %v6442_v22  ;;  %v2334_v61 = vsel %vm2330_vm9, %v2314_v19, %v2317_v50  ;;  %v2336_v13 = vsel %vm2332_vm4, %v2320_v44, %v2335_v37  ;;  %vm2413_vm7 = vcmp.gt.s32.totalorder %v2412_v59, 0 }
 0x25a   :  { %v6879_v48 = vsel %vm1773_vm2, %v8953_v7, %v4287_v18  ;;  %v6893_v18 = vpop.eup %4288  ;;  %v6898_v47 = vsel %vm1770_vm10, %v6752_v23, %v1771_v17  ;;  %vm4037_vm8 = vcmp.lt.s32.totalorder %v4036_v41, 0  ;;  %v2356_v9 = vadd.s32 1, %v6866_v1 }
 0x25b   :  { %v2414_v60 = vsel %vm2413_vm7, %v2412_v59, 0  ;;  %v6901_v62 = vpop.eup %4290  ;;  %v2060_v8 = vshrl.u32 %v2042_v33, %v2058_v15  ;;  %v2065_v22 = vor.u32 4788187, %v2064_v53  ;;  %vm2355_vm11 = vc.u32 %v6856_v30, %v6865_v38  ;;  %v6927_v53 = vpop.f32.mrf.mxu0 }
 0x25c   :  { %v2416_v50 = vand.u32 31, %v2414_v60  ;;  %v1967_v44 = vsel %vm1884_vm0, %v1966_v28, %v1965_v54  ;;  %v6911_v36 = vsub.s32 %v6817_v24, %v2257_v32  ;;  %v2337_v12 = vsel %vm2331_vm6, %v2334_v61, %v2336_v13 }
 0x25d   :  { %vm1988_vm12 = vcmp.lt.s32.totalorder %v6181_v39, 0  ;;  %v2059_v34 = vshll.u32 %v6642_v0, %v6790_v10  ;;  %v6918_v17 = vsel %vm4037_vm8, 0, %v4036_v41  ;;  %v8852_v37 = vand.u32 2147483647, %v6785_v43 }
 0x25e   :  { %v6921_v54 = vsub.s32 32, %v2416_v50  ;;  %v2072_v24 = vsub.s32 4, %v6588_v52  ;;  %v2357_v40 = vsel %vm2355_vm11, %v2356_v9, %v6866_v1  ;;  %v6932_v0 = vsel %vm6844_vm3, %v8948_v57, %v1967_v44 }
 0x25f   :  { %v2061_v10 = vor.u32 %v2060_v8, %v2059_v34  ;;  %v2066_v41 = vand.u32 2147483647, %v2065_v22  ;;  %v2353_v19 = vmul.u32 %v6840_v45, %v2337_v12  ;;  %v2166_v7 = vsub.s32 4294967266, %v6918_v17 }
 0x260   :  { %v2260_v28 = vsub.s32 0, %v6911_v36  ;;  %v2420_v32 = vshrl.u32 %v8902_v51, %v6921_v54  ;;  %v2423_v1 = vshrl.u32 %v8903_v56, %v6921_v54  ;;  %v2409_v61 = vand.u32 8388607, %v8852_v37 }
 0x261   :  { %v6941_v33 = vadd.s32 %v2357_v40, %v2353_v19  ;;  %v2426_v13 = vshrl.u32 %v8885_v5, %v6921_v54  ;;  %v2509_v45 = vand.u32 2139095040, %v6927_v53  ;;  %v6948_v9 = vshrl.u32 %v2414_v60, 5 }
 0x262   :  { %v2419_v8 = vshll.u32 %v8920_v26, %v2416_v50  ;;  %v2422_v22 = vshll.u32 %v8902_v51, %v2416_v50  ;;  %v2425_v44 = vshll.u32 %v8903_v56, %v2416_v50  ;;  %v2428_v12 = vshll.u32 %v8885_v5, %v2416_v50 }
 0x263   :  { %v2429_v34 = vshrl.u32 %v8901_v25, %v6921_v54  ;;  %v2431_v40 = vshll.u32 %v8901_v25, %v2416_v50  ;;  %v2432_v19 = vshrl.u32 %v8884_v63, %v6921_v54  ;;  %v2068_v37 = vcvt.s32.f32 %v2061_v10 }
 0x264   :  { %v4039_v60 = vmin.u32 %v2260_v28, %v6911_v36  ;;  %v2421_v59 = vor.u32 %v2420_v32, %v2419_v8  ;;  %v2424_v15 = vor.u32 %v2423_v1, %v2422_v22  ;;  %vm1769_vm5 = vcmp.lt.s32.totalorder %v6748_v31, 2 }
 0x265   :  { %v2359_v23 = vadd.s32 536870912, %v6941_v33  ;;  %v2427_v2 = vor.u32 %v2426_v13, %v2425_v44  ;;  %v2430_v42 = vor.u32 %v2429_v34, %v2428_v12  ;;  %v2433_v43 = vor.u32 %v2432_v19, %v2431_v40 }
 0x266   :  { %4292 = vcosq.f32 %v6932_v0  ;;  %v8954_v35 = vand.u32 2147483647, %v6181_v39  ;;  %v2069_v10 = vmul.f32 %v2068_v37, %v2066_v41  ;;  %v2073_v28 = vsel %vm1988_vm12, %v2072_v24, %v6588_v52 }
 0x267   :  { %v2410_v32 = vor.u32 8388608, %v2409_v61  ;;  %vm1874_vm15 = vcmp.eq.s32.totalorder %v6872_v6, 0  ;;  %v2167_v1 = vadd.s32 127, %v2166_v7  ;;  %vm2434_vm1 = vcmp.lt.s32.totalorder %v6948_v9, 1 }
 0x268   :  { %vm6965_vm14 = vcmp.le.f32.partialorder %v8954_v35, 0.7853982  ;;  %vm2437_vm0 = vcmp.lt.s32.totalorder %v6948_v9, 4  ;;  %v2510_v13 = vshrl.u32 %v2509_v45, 23  ;;  %v2262_v8 = vclz %v4039_v60 }
 0x269   :  { %vm2436_vm9 = vcmp.lt.s32.totalorder %v6948_v9, 3  ;;  %v2442_v35 = vsel %vm2434_vm1, %v2421_v59, %v2424_v15  ;;  %v2443_v37 = vsel %vm2437_vm0, %v2430_v42, 920167782  ;;  %v6980_v41 = vshrl.u32 %v2359_v23, 30 }
 0x26a   :  { %v2444_v52 = vsel %vm2436_vm9, %v2427_v2, %v2443_v37  ;;  %v2446_v24 = vsel %vm2434_vm1, %v2424_v15, %v2427_v2  ;;  %v2447_v7 = vsel %vm2437_vm0, %v2433_v43, 1326507024  ;;  %v2070_v61 = vxor.u32 2147483648, %v2069_v10 }
 0x26b   :  { %v2146_v45 = vadd.s32 %v6573_v20, %v6580_v4  ;;  %vm2435_vm13 = vcmp.lt.s32.totalorder %v6948_v9, 2  ;;  %v6991_v22 = vshll.u32 %v2410_v32, 8  ;;  %vm1766_vm10 = vweird.f32 %v8935_v58 }
 0x26c   :  { %vm1873_vm4 = vcmp.lt.s32.totalorder %v6872_v6, 2  ;;  %v2162_v23 = vsub.s32 32, %v6918_v17  ;;  %v2445_v44 = vsel %vm2435_vm13, %v2442_v35, %v2444_v52  ;;  %v2448_v43 = vsel %vm2436_vm9, %v2430_v42, %v2447_v7 }
 0x26d   :  { %v4050_v12 = vadd.s32 4294967169, %v2510_v13  ;;  %v4040_v34 = vadd.s32 4294967294, %v2262_v8  ;;  %v2449_v20 = vsel %vm2435_vm13, %v2446_v24, %v2448_v43  ;;  %v2168_v19 = vshll.u32 %v2167_v1, 23 }
 0x26e   :  { %v7003_v4 = vmul.u32.u64.low %v6991_v22, %v2445_v44  ;;  %v7004_v40 = vmul.u32.u64.high %v6991_v22, %v2445_v44, %v7003_v4  ;;  %v2361_v60 = vshll.u32 %v6980_v41, 30  ;;  %v1776_v42 = vsel %vm1769_vm5, %v6898_v47, %v6879_v48 }
 0x26f   :  { %v7009_v32 = vmul.u32.u64.low %v6991_v22, %v2449_v20  ;;  %v7010_v37 = vmul.u32.u64.high %v6991_v22, %v2449_v20, %v7009_v32  ;;  %vm1870_vm6 = vweird.f32 %v5849_v55  ;;  %vm1877_vm2 = vcmp.eq.s32.totalorder %v6872_v6, 2 }
 0x270   :  { %v8957_v13 = vsel %vm6844_vm3, 0, %v6884_v16  ;;  %v2516_v8 = vadd.s32 1, %v4050_v12  ;;  %v8958_v35 = vxor.u32 2147483648, %v6893_v18  ;;  %v2075_v24 = vsel %vm6965_vm14, 0, %v2073_v28 }
 0x271   :  { %v1975_v1 = vadd.s32 3, %v8957_v13  ;;  %v2164_v7 = vshrl.u32 %v2146_v45, %v2162_v23  ;;  %v2439_v31 = vsel %vm2437_vm0, %v2427_v2, 2102212464  ;;  %v8959_v48 = vxor.u32 2147483648, %v6901_v62 }
 0x272   :  { %v1879_v52 = vsel %vm1877_vm2, %v8958_v35, %v6901_v62  ;;  %v2071_v16 = vsel %vm1988_vm12, %v2070_v61, %v2069_v10  ;;  %vm4041_vm3 = vcmp.lt.s32.totalorder %v4040_v34, 0  ;;  %v2418_v47 = vshrl.u32 %v8920_v26, %v6921_v54 }
 0x273   :  { %v1876_v29 = vsel %vm1874_vm15, %v6893_v18, %v8959_v48  ;;  %v2163_v28 = vshll.u32 %v6769_v27, %v6918_v17  ;;  %v2169_v45 = vor.u32 4788187, %v2168_v19  ;;  %v7041_v23 = vsub.s32 %v6941_v33, %v2361_v60  ;;  %v7047_v61 = vpop.eup %4292 }
 0x274   :  { %vm2517_vm7 = vcmp.gt.s32.totalorder %v2516_v8, 0  ;;  %v2079_v2 = vadd.s32 3, %v2075_v24  ;;  %v2438_v62 = vsel %vm2434_vm1, %v2418_v47, %v2421_v59  ;;  %v2440_v18 = vsel %vm2436_vm9, %v2424_v15, %v2439_v31 }
 0x275   :  { %v2518_v10 = vsel %vm2517_vm7, %v2516_v8, 0  ;;  %v2165_v44 = vor.u32 %v2164_v7, %v2163_v28  ;;  %v7049_v54 = vsel %vm4041_vm3, 0, %v4040_v34  ;;  %v2460_v27 = vadd.s32 1, %v7004_v40 }
 0x276   :  { %v2520_v17 = vand.u32 31, %v2518_v10  ;;  %v7054_v33 = vsel %vm1766_vm10, nan, %v1776_v42  ;;  %v1880_v43 = vsel %vm1873_vm4, %v1876_v29, %v1879_v52  ;;  %v2074_v59 = vsel %vm6965_vm14, %v6181_v39, %v2071_v16 }
 0x277   :  { %8960 = vst [vmem:[#allocation18_spill] sm:$0xff] %v7054_v33  ;;  %vm2459_vm8 = vc.u32 %v7010_v37, %v7003_v4  ;;  %vm2092_vm11 = vcmp.lt.s32.totalorder %v6333_v11, 0  ;;  %v2170_v15 = vand.u32 2147483647, %v2169_v45  ;;  %v2364_v12 = vsub.s32 0, %v7041_v23 }
 0x278   :  { %v2441_v58 = vsel %vm2435_vm13, %v2438_v62, %v2440_v18  ;;  %v7067_v34 = vsub.s32 32, %v2520_v17  ;;  %4294 = vsinq.f32 %v6932_v0  ;;  %v7070_v6 = vand.u32 3, %v1975_v1  ;;  %v7084_v1 = vpop.f32.mrf.mxu0 }
 0x279   :  { %v2270_v50 = vsub.s32 4294967266, %v7049_v54  ;;  %v8858_v20 = vand.u32 2147483647, %v6927_v53  ;;  %v7076_v19 = vsel %vm1870_vm6, nan, %v1880_v43  ;;  %v7078_v60 = vand.u32 3, %v2079_v2 }
 0x27a   :  { %8961 = vst [vmem:[#allocation19_spill] sm:$0xff] %v7076_v19  ;;  %v2172_v32 = vcvt.s32.f32 %v2165_v44  ;;  %v2461_v9 = vsel %vm2459_vm8, %v2460_v27, %v7004_v40  ;;  %v1982_v42 = vxor.u32 2147483648, %v7047_v61  ;;  %4296 = vcosq.f32 %v2074_v59 }
 0x27b   :  { %v2176_v0 = vsub.s32 4, %v6715_v3  ;;  %v2457_v13 = vmul.u32 %v6991_v22, %v2441_v58  ;;  %v4043_v55 = vmin.u32 %v2364_v12, %v7041_v23  ;;  %v2524_v35 = vshrl.u32 %v8902_v51, %v7067_v34 }
 0x27c   :  { %v7086_v8 = vmul.f32 %v2172_v32, %v2170_v15  ;;  %v2527_v52 = vshrl.u32 %v8903_v56, %v7067_v34  ;;  %v7093_v40 = vadd.s32 127, %v2270_v50  ;;  %v2513_v7 = vand.u32 8388607, %v8858_v20 }
 0x27d   :  { %v7095_v24 = vadd.s32 %v2461_v9, %v2457_v13  ;;  %v2530_v22 = vshrl.u32 %v8885_v5, %v7067_v34  ;;  %v2523_v31 = vshll.u32 %v8920_v26, %v2520_v17  ;;  %v2526_v48 = vshll.u32 %v8902_v51, %v2520_v17 }
 0x27e   :  { %v2533_v29 = vshrl.u32 %v8901_v25, %v7067_v34  ;;  %v2613_v16 = vand.u32 2139095040, %v7084_v1  ;;  %v7106_v47 = vshrl.u32 %v2518_v10, 5  ;;  %v2529_v28 = vshll.u32 %v8903_v56, %v2520_v17 }
 0x27f   :  { %v2532_v45 = vshll.u32 %v8885_v5, %v2520_v17  ;;  %v2536_v2 = vshrl.u32 %v8884_v63, %v7067_v34  ;;  %v2366_v62 = vclz %v4043_v55  ;;  %v2525_v18 = vor.u32 %v2524_v35, %v2523_v31 }
 0x280   :  { %v2528_v44 = vor.u32 %v2527_v52, %v2526_v48  ;;  %v2535_v27 = vshll.u32 %v8901_v25, %v2520_v17  ;;  %v7116_v43 = vsel %vm2092_vm11, %v2176_v0, %v6715_v3  ;;  %v2463_v10 = vadd.s32 536870912, %v7095_v24 }
 0x281   :  { %v2531_v15 = vor.u32 %v2530_v22, %v2529_v28  ;;  %v2534_v12 = vor.u32 %v2533_v29, %v2532_v45  ;;  %vm1981_vm12 = vcmp.eq.s32.totalorder %v7070_v6, 2  ;;  %4298 = vsinq.f32 %v2074_v59 }
 0x282   :  { %v8962_v58 = vand.u32 2147483647, %v6333_v11  ;;  %v2250_v17 = vadd.s32 %v6724_v49, %v6731_v21  ;;  %v2514_v32 = vor.u32 8388608, %v2513_v7  ;;  %v2537_v9 = vor.u32 %v2536_v2, %v2535_v27 }
 0x283   :  { %v2174_v3 = vxor.u32 2147483648, %v7086_v8  ;;  %v2266_v0 = vsub.s32 32, %v7049_v54  ;;  %vm2538_vm14 = vcmp.lt.s32.totalorder %v7106_v47, 1  ;;  %v2614_v13 = vshrl.u32 %v2613_v16, 23 }
 0x284   :  { %vm7122_vm5 = vcmp.le.f32.partialorder %v8962_v58, 0.7853982  ;;  %v2272_v59 = vshll.u32 %v7093_v40, 23  ;;  %v4044_v55 = vadd.s32 4294967294, %v2366_v62  ;;  %vm2541_vm15 = vcmp.lt.s32.totalorder %v7106_v47, 4 }
 0x285   :  { %v2546_v35 = vsel %vm2538_vm14, %v2525_v18, %v2528_v44  ;;  %vm1978_vm1 = vcmp.eq.s32.totalorder %v7070_v6, 0  ;;  %v7136_v49 = vshrl.u32 %v2463_v10, 30  ;;  %vm2540_vm0 = vcmp.lt.s32.totalorder %v7106_v47, 3  ;;  %v4295_v7 = vpop.eup %4294 }
 0x286   :  { %v2547_v21 = vsel %vm2541_vm15, %v2534_v12, 920167782  ;;  %v2550_v52 = vsel %vm2538_vm14, %v2528_v44, %v2531_v15  ;;  %vm2539_vm9 = vcmp.lt.s32.totalorder %v7106_v47, 2  ;;  %v2551_v22 = vsel %vm2541_vm15, %v2537_v9, 1326507024 }
 0x287   :  { %v2548_v40 = vsel %vm2540_vm0, %v2531_v15, %v2547_v21  ;;  %v2554_v31 = vshll.u32 %v2514_v32, 8  ;;  %v2543_v48 = vsel %vm2541_vm15, %v2531_v15, 2102212464  ;;  %v2552_v16 = vsel %vm2540_vm0, %v2534_v12, %v2551_v22  ;;  %v7148_v45 = vpop.eup %4296 }
 0x288   :  { %v2549_v29 = vsel %vm2539_vm9, %v2546_v35, %v2548_v40  ;;  %v4054_v28 = vadd.s32 4294967169, %v2614_v13  ;;  %v2522_v2 = vshrl.u32 %v8920_v26, %v7067_v34  ;;  %v2553_v62 = vsel %vm2539_vm9, %v2550_v52, %v2552_v16 }
 0x289   :  { %v7154_v27 = vmul.u32.u64.low %v2554_v31, %v2549_v29  ;;  %v7155_v10 = vmul.u32.u64.high %v2554_v31, %v2549_v29, %v7154_v27  ;;  %v1979_v15 = vxor.u32 2147483648, %v4295_v7  ;;  %v2465_v58 = vshll.u32 %v7136_v49, 30 }
 0x28a   :  { %v7159_v32 = vmul.u32.u64.low %v2554_v31, %v2553_v62  ;;  %v7160_v9 = vmul.u32.u64.high %v2554_v31, %v2553_v62, %v7159_v32  ;;  %vm2196_vm13 = vcmp.lt.s32.totalorder %v6476_v46, 0  ;;  %v2268_v12 = vshrl.u32 %v2250_v17, %v2266_v0 }
 0x28b   :  { %v2542_v13 = vsel %vm2538_vm14, %v2522_v2, %v2525_v18  ;;  %v2544_v34 = vsel %vm2540_vm0, %v2528_v44, %v2543_v48  ;;  %v2620_v35 = vadd.s32 1, %v4054_v28  ;;  %v7171_v21 = vsel %vm1981_vm12, %v1982_v42, %v4295_v7 }
 0x28c   :  { %v2175_v52 = vsel %vm2092_vm11, %v2174_v3, %v7086_v8  ;;  %v2179_v17 = vsel %vm7122_vm5, 0, %v7116_v43  ;;  %vm4045_vm10 = vcmp.lt.s32.totalorder %v4044_v55, 0  ;;  %v2267_v18 = vshll.u32 %v6911_v36, %v7049_v54 }
 0x28d   :  { %v2273_v44 = vor.u32 4788187, %v2272_v59  ;;  %v2564_v0 = vadd.s32 1, %v7155_v10  ;;  %vm2621_vm4 = vcmp.gt.s32.totalorder %v2620_v35, 0  ;;  %v7183_v40 = vsub.s32 %v7095_v24, %v2465_v58 }
 0x28e   :  { %v2545_v42 = vsel %vm2539_vm9, %v2542_v13, %v2544_v34  ;;  %vm2563_vm6 = vc.u32 %v7160_v9, %v7154_v27  ;;  %v2622_v8 = vsel %vm2621_vm4, %v2620_v35, 0  ;;  %v7192_v43 = vsel %vm1978_vm1, %v7047_v61, %v1979_v15  ;;  %v7195_v59 = vpop.eup %4298 }
 0x28f   :  { %v2269_v36 = vor.u32 %v2268_v12, %v2267_v18  ;;  %v2369_v54 = vsel %vm4045_vm10, 0, %v4044_v55  ;;  %v8857_v3 = vand.u32 2147483647, %v7084_v1  ;;  %v7197_v24 = vadd.s32 3, %v2179_v17 }
 0x290   :  { %v2280_v47 = vsub.s32 4, %v6852_v14  ;;  %v2565_v7 = vsel %vm2563_vm6, %v2564_v0, %v7155_v10  ;;  %v2624_v22 = vand.u32 31, %v2622_v8  ;;  %v2178_v61 = vsel %vm7122_vm5, %v6333_v11, %v2175_v52 }
 0x291   :  { %v8965_v29 = vand.u32 2147483647, %v6476_v46  ;;  %v2274_v16 = vand.u32 2147483647, %v2273_v44  ;;  %v2561_v28 = vmul.u32 %v2554_v31, %v2545_v42  ;;  %v2370_v2 = vsub.s32 32, %v2369_v54 }
 0x292   :  { %v2374_v62 = vsub.s32 4294967266, %v2369_v54  ;;  %v2468_v15 = vsub.s32 0, %v7183_v40  ;;  %v2625_v10 = vsub.s32 32, %v2624_v22  ;;  %v2276_v32 = vcvt.s32.f32 %v2269_v36 }
 0x293   :  { %vm7207_vm2 = vcmp.le.f32.partialorder %v8965_v29, 0.7853982  ;;  %v7213_v12 = vadd.s32 %v2565_v7, %v2561_v28  ;;  %v2617_v50 = vand.u32 8388607, %v8857_v3  ;;  %4300 = vcosq.f32 %v2178_v61 }
 0x294   :  { %v7220_v13 = vsel %vm2196_vm13, %v2280_v47, %v6852_v14  ;;  %v2354_v31 = vadd.s32 %v6865_v38, %v6856_v30  ;;  %v2628_v34 = vshrl.u32 %v8902_v51, %v2625_v10  ;;  %v7225_v35 = vmul.f32 %v2276_v32, %v2274_v16  ;;  %v7237_v16 = vpop.f32.mrf.mxu0 }
 0x295   :  { %v2371_v52 = vshll.u32 %v7041_v23, %v2369_v54  ;;  %v2631_v17 = vshrl.u32 %v8903_v56, %v2625_v10  ;;  %v2634_v18 = vshrl.u32 %v8885_v5, %v2625_v10  ;;  %v2375_v0 = vadd.s32 127, %v2374_v62 }
 0x296   :  { %v2372_v44 = vshrl.u32 %v2354_v31, %v2370_v2  ;;  %v4047_v42 = vmin.u32 %v2468_v15, %v7183_v40  ;;  %v2627_v14 = vshll.u32 %v8920_v26, %v2624_v22  ;;  %v2567_v36 = vadd.s32 536870912, %v7213_v12 }
 0x297   :  { %v2618_v47 = vor.u32 8388608, %v2617_v50  ;;  %v2630_v30 = vshll.u32 %v8902_v51, %v2624_v22  ;;  %v2633_v38 = vshll.u32 %v8903_v56, %v2624_v22  ;;  %v2623_v7 = vshrl.u32 %v2622_v8, 5 }
 0x298   :  { %v2629_v29 = vor.u32 %v2628_v34, %v2627_v14  ;;  %v2636_v23 = vshll.u32 %v8885_v5, %v2624_v22  ;;  %v2637_v54 = vshrl.u32 %v8901_v25, %v2625_v10  ;;  %v2639_v62 = vshll.u32 %v8901_v25, %v2624_v22 }
 0x299   :  { %v2632_v28 = vor.u32 %v2631_v17, %v2630_v30  ;;  %v2635_v2 = vor.u32 %v2634_v18, %v2633_v38  ;;  %v2640_v15 = vshrl.u32 %v8884_v63, %v2625_v10  ;;  %vm1977_vm3 = vcmp.lt.s32.totalorder %v7070_v6, 2 }
 0x29a   :  { %4302 = vsinq.f32 %v2178_v61  ;;  %v2278_v32 = vxor.u32 2147483648, %v7225_v35  ;;  %v2283_v8 = vsel %vm7207_vm2, 0, %v7220_v13  ;;  %v2638_v50 = vor.u32 %v2637_v54, %v2636_v23 }
 0x29b   :  { %vm2082_vm7 = vcmp.eq.s32.totalorder %v7078_v60, 0  ;;  %v7247_v31 = vor.u32 %v2372_v44, %v2371_v52  ;;  %v7249_v34 = vshrl.u32 %v2567_v36, 30  ;;  %v2641_v17 = vor.u32 %v2640_v15, %v2639_v62 }
 0x29c   :  { %v2717_v22 = vand.u32 2139095040, %v7237_v16  ;;  %v2376_v18 = vshll.u32 %v2375_v0, 23  ;;  %v2470_v14 = vclz %v4047_v42  ;;  %vm2642_vm8 = vcmp.lt.s32.totalorder %v2623_v7, 1 }
 0x29d   :  { %vm2645_vm11 = vcmp.lt.s32.totalorder %v2623_v7, 4  ;;  %v2650_v30 = vsel %vm2642_vm8, %v2629_v29, %v2632_v28  ;;  %v2658_v3 = vshll.u32 %v2618_v47, 8  ;;  %v2626_v13 = vshrl.u32 %v8920_v26, %v2625_v10 }
 0x29e   :  { %v2647_v61 = vsel %vm2645_vm11, %v2635_v2, 2102212464  ;;  %v2651_v38 = vsel %vm2645_vm11, %v2638_v50, 920167782  ;;  %vm2643_vm12 = vcmp.lt.s32.totalorder %v2623_v7, 2  ;;  %vm2644_vm5 = vcmp.lt.s32.totalorder %v2623_v7, 3 }
 0x29f   :  { %v2654_v23 = vsel %vm2642_vm8, %v2632_v28, %v2635_v2  ;;  %vm1974_vm14 = vweird.f32 %v8948_v57  ;;  %v2569_v52 = vshll.u32 %v7249_v34, 30  ;;  %v2652_v44 = vsel %vm2644_vm5, %v2635_v2, %v2651_v38 }
 0x2a0   :  { %v2655_v36 = vsel %vm2645_vm11, %v2641_v17, 1326507024  ;;  %v2718_v54 = vshrl.u32 %v2717_v22, 23  ;;  %v2646_v0 = vsel %vm2642_vm8, %v2626_v13, %v2629_v29  ;;  %v2648_v42 = vsel %vm2644_vm5, %v2632_v28, %v2647_v61  ;;  %v7256_v20 = vpop.eup %4300 }
 0x2a1   :  { %v2653_v62 = vsel %vm2643_vm12, %v2650_v30, %v2652_v44  ;;  %v2656_v15 = vsel %vm2644_vm5, %v2638_v50, %v2655_v36  ;;  %vm2081_vm15 = vcmp.lt.s32.totalorder %v7078_v60, 2  ;;  %v2377_v10 = vor.u32 4788187, %v2376_v18 }
 0x2a2   :  { %v2657_v47 = vsel %vm2643_vm12, %v2654_v23, %v2656_v15  ;;  %v7260_v48 = vmul.u32.u64.low %v2658_v3, %v2653_v62  ;;  %v7261_v58 = vmul.u32.u64.high %v2658_v3, %v2653_v62, %v7260_v48  ;;  %v4048_v19 = vadd.s32 4294967294, %v2470_v14 }
 0x2a3   :  { %v7264_v2 = vmul.u32.u64.low %v2658_v3, %v2657_v47  ;;  %v7265_v17 = vmul.u32.u64.high %v2658_v3, %v2657_v47, %v7264_v2  ;;  %v4058_v29 = vadd.s32 4294967169, %v2718_v54  ;;  %v1984_v28 = vsel %vm1977_vm3, %v7192_v43, %v7171_v21  ;;  %v8970_v21 = vld [vmem:[#allocation17_spill] sm:$0xff] }
 0x2a4   :  { %vm2085_vm1 = vcmp.eq.s32.totalorder %v7078_v60, 2  ;;  %v7273_v50 = vsub.s32 %v7213_v12, %v2569_v52  ;;  %v2649_v22 = vsel %vm2643_vm12, %v2646_v0, %v2648_v42  ;;  %v8968_v18 = vxor.u32 2147483648, %v7195_v59 }
 0x2a5   :  { %v8969_v61 = vxor.u32 2147483648, %v7148_v45  ;;  %v7285_v6 = vand.u32 3, %v7197_v24  ;;  %vm2300_vm0 = vcmp.lt.s32.totalorder %v8970_v21, 0  ;;  %v2724_v43 = vadd.s32 1, %v4058_v29 }
 0x2a6   :  { %v2084_v14 = vsel %vm2082_vm7, %v7148_v45, %v8968_v18  ;;  %v2279_v12 = vsel %vm2196_vm13, %v2278_v32, %v7225_v35  ;;  %v2287_v7 = vadd.s32 3, %v2283_v8  ;;  %v2378_v38 = vand.u32 2147483647, %v2377_v10 }
 0x2a7   :  { %v2087_v30 = vsel %vm2085_vm1, %v8969_v61, %v7195_v59  ;;  %v2668_v13 = vadd.s32 1, %v7261_v58  ;;  %v2380_v23 = vcvt.s32.f32 %v7247_v31  ;;  %vm4049_vm9 = vcmp.lt.s32.totalorder %v4048_v19, 0  ;;  %v4303_v45 = vpop.eup %4302 }
 0x2a8   :  { %v2665_v52 = vmul.u32 %v2658_v3, %v2649_v22  ;;  %vm2667_vm10 = vc.u32 %v7265_v17, %v7260_v48  ;;  %v2572_v59 = vsub.s32 0, %v7273_v50  ;;  %v8859_v44 = vand.u32 2147483647, %v7237_v16 }
 0x2a9   :  { %v2669_v24 = vsel %vm2667_vm10, %v2668_v13, %v7261_v58  ;;  %vm2725_vm4 = vcmp.gt.s32.totalorder %v2724_v43, 0  ;;  %v7300_v35 = vsel %vm1974_vm14, nan, %v1984_v28  ;;  %v2190_v32 = vxor.u32 2147483648, %v7256_v20  ;;  %v7331_v28 = vpop.f32.mrf.mxu0 }
 0x2aa   :  { %8971 = vst [vmem:[#allocation17_spill] sm:$0xff] %v7300_v35  ;;  %v2670_v8 = vadd.s32 %v2669_v24, %v2665_v52  ;;  %v2726_v31 = vsel %vm2725_vm4, %v2724_v43, 0  ;;  %v2282_v3 = vsel %vm7207_vm2, %v6476_v46, %v2279_v12  ;;  %v2381_v36 = vmul.f32 %v2380_v23, %v2378_v38 }
 0x2ab   :  { %v2384_v54 = vsub.s32 4, %v6980_v41  ;;  %v2728_v0 = vand.u32 31, %v2726_v31  ;;  %v7309_v58 = vsel %vm2081_vm15, %v2084_v14, %v2087_v30  ;;  %vm2186_vm13 = vcmp.eq.s32.totalorder %v7285_v6, 0 }
 0x2ac   :  { %vm2189_vm6 = vcmp.eq.s32.totalorder %v7285_v6, 2  ;;  %v7314_v57 = vsel %vm4049_vm9, 0, %v4048_v19  ;;  %v2671_v42 = vadd.s32 536870912, %v2670_v8  ;;  %v7316_v62 = vand.u32 3, %v2287_v7 }
 0x2ad   :  { %v8972_v55 = vand.u32 2147483647, %v8970_v21  ;;  %v4051_v60 = vmin.u32 %v2572_v59, %v7273_v50  ;;  %v2721_v10 = vand.u32 8388607, %v8859_v44  ;;  %v2729_v47 = vsub.s32 32, %v2728_v0 }
 0x2ae   :  { %v2187_v2 = vxor.u32 2147483648, %v4303_v45  ;;  %v7327_v29 = vsel %vm2189_vm6, %v2190_v32, %v4303_v45  ;;  %4304 = vcosq.f32 %v2282_v3  ;;  %v7329_v19 = vshrl.u32 %v2671_v42, 30 }
 0x2af   :  { %vm7320_vm2 = vcmp.le.f32.partialorder %v8972_v55, 0.7853982  ;;  %4306 = vsinq.f32 %v2282_v3  ;;  %v2382_v22 = vxor.u32 2147483648, %v2381_v36  ;;  %v7336_v18 = vsel %vm2300_vm0, %v2384_v54, %v6980_v41 }
 0x2b0   :  { %v2474_v14 = vsub.s32 32, %v7314_v57  ;;  %v2478_v61 = vsub.s32 4294967266, %v7314_v57  ;;  %v2673_v30 = vshll.u32 %v7329_v19, 30  ;;  %v2732_v43 = vshrl.u32 %v8902_v51, %v2729_v47 }
 0x2b1   :  { %v2735_v12 = vshrl.u32 %v8903_v56, %v2729_v47  ;;  %v2574_v7 = vclz %v4051_v60  ;;  %v2722_v38 = vor.u32 8388608, %v2721_v10  ;;  %v2738_v13 = vshrl.u32 %v8885_v5, %v2729_v47 }
 0x2b2   :  { %v2821_v23 = vand.u32 2139095040, %v7331_v28  ;;  %v2727_v52 = vshrl.u32 %v2726_v31, 5  ;;  %v2731_v41 = vshll.u32 %v8920_v26, %v2728_v0  ;;  %v2734_v45 = vshll.u32 %v8902_v51, %v2728_v0 }
 0x2b3   :  { %v2741_v59 = vshrl.u32 %v8901_v25, %v2729_v47  ;;  %v2737_v24 = vshll.u32 %v8903_v56, %v2728_v0  ;;  %v2740_v32 = vshll.u32 %v8885_v5, %v2728_v0  ;;  %v2743_v3 = vshll.u32 %v8901_v25, %v2728_v0 }
 0x2b4   :  { %v2744_v54 = vshrl.u32 %v8884_v63, %v2729_v47  ;;  %v2458_v42 = vadd.s32 %v7003_v4, %v7010_v37  ;;  %v7354_v55 = vsub.s32 %v2670_v8, %v2673_v30  ;;  %v2733_v31 = vor.u32 %v2732_v43, %v2731_v41 }
 0x2b5   :  { %v2736_v60 = vor.u32 %v2735_v12, %v2734_v45  ;;  %vm2078_vm3 = vweird.f32 %v6181_v39  ;;  %v2188_v10 = vsel %vm2186_vm13, %v7256_v20, %v2187_v2  ;;  %v2739_v44 = vor.u32 %v2738_v13, %v2737_v24 }
 0x2b6   :  { %v2742_v35 = vor.u32 %v2741_v59, %v2740_v32  ;;  %v2745_v33 = vor.u32 %v2744_v54, %v2743_v3  ;;  %vm2185_vm7 = vcmp.lt.s32.totalorder %v7285_v6, 2  ;;  %v2383_v0 = vsel %vm2300_vm0, %v2382_v22, %v2381_v36 }
 0x2b7   :  { %v2387_v4 = vsel %vm7320_vm2, 0, %v7336_v18  ;;  %v2476_v37 = vshrl.u32 %v2458_v42, %v2474_v14  ;;  %v2479_v8 = vadd.s32 127, %v2478_v61  ;;  %v4052_v30 = vadd.s32 4294967294, %v2574_v7 }
 0x2b8   :  { %vm2746_vm8 = vcmp.lt.s32.totalorder %v2727_v52, 1  ;;  %v2762_v43 = vshll.u32 %v2722_v38, 8  ;;  %v2822_v12 = vshrl.u32 %v2821_v23, 23  ;;  %v2676_v20 = vsub.s32 0, %v7354_v55 }
 0x2b9   :  { %vm2748_vm11 = vcmp.lt.s32.totalorder %v2727_v52, 3  ;;  %vm2749_vm12 = vcmp.lt.s32.totalorder %v2727_v52, 4  ;;  %v2754_v2 = vsel %vm2746_vm8, %v2733_v31, %v2736_v60  ;;  %v2758_v36 = vsel %vm2746_vm8, %v2736_v60, %v2739_v44 }
 0x2ba   :  { %v2751_v13 = vsel %vm2749_vm12, %v2739_v44, 2102212464  ;;  %v2755_v41 = vsel %vm2749_vm12, %v2742_v35, 920167782  ;;  %v2759_v22 = vsel %vm2749_vm12, %v2745_v33, 1326507024  ;;  %v2730_v45 = vshrl.u32 %v8920_v26, %v2729_v47 }
 0x2bb   :  { %vm2747_vm5 = vcmp.lt.s32.totalorder %v2727_v52, 2  ;;  %v2756_v18 = vsel %vm2748_vm11, %v2739_v44, %v2755_v41  ;;  %v2760_v14 = vsel %vm2748_vm11, %v2742_v35, %v2759_v22  ;;  %v4305_v61 = vpop.eup %4304  ;;  %vm2182_vm14 = vweird.f32 %v6333_v11 }
 0x2bc   :  { %v2480_v7 = vshll.u32 %v2479_v8, 23  ;;  %v2757_v38 = vsel %vm2747_vm5, %v2754_v2, %v2756_v18  ;;  %v2761_v23 = vsel %vm2747_vm5, %v2758_v36, %v2760_v14  ;;  %v4062_v59 = vadd.s32 4294967169, %v2822_v12  ;;  %v4307_v24 = vpop.eup %4306 }
 0x2bd   :  { %v2750_v32 = vsel %vm2746_vm8, %v2730_v45, %v2733_v31  ;;  %v2752_v33 = vsel %vm2748_vm11, %v2736_v60, %v2751_v13  ;;  %v7377_v47 = vmul.u32.u64.low %v2762_v43, %v2761_v23  ;;  %v7378_v3 = vmul.u32.u64.high %v2762_v43, %v2761_v23, %v7377_v47 }
 0x2be   :  { %vm4053_vm15 = vcmp.lt.s32.totalorder %v4052_v30, 0  ;;  %v4055_v44 = vmin.u32 %v2676_v20, %v7354_v55  ;;  %v7381_v35 = vmul.u32.u64.low %v2762_v43, %v2757_v38  ;;  %v7382_v54 = vmul.u32.u64.high %v2762_v43, %v2757_v38, %v7381_v35  ;;  %v7423_v38 = vpop.f32.mrf.mxu0 }
 0x2bf   :  { %v7388_v42 = vsel %vm2078_vm3, nan, %v7309_v58  ;;  %vm2290_vm1 = vcmp.eq.s32.totalorder %v7316_v62, 0  ;;  %vm2293_vm0 = vcmp.eq.s32.totalorder %v7316_v62, 2  ;;  %v2828_v31 = vadd.s32 1, %v4062_v59 }
 0x2c0   :  { %8975 = vst [vmem:[#allocation20_spill] sm:$0xff] %v7388_v42  ;;  %v2192_v60 = vsel %vm2185_vm7, %v2188_v10, %v7327_v29  ;;  %v2475_v8 = vshll.u32 %v7183_v40, %v7314_v57  ;;  %v2481_v12 = vor.u32 4788187, %v2480_v7  ;;  %v2753_v20 = vsel %vm2747_vm5, %v2750_v32, %v2752_v33 }
 0x2c1   :  { %v2386_v39 = vsel %vm7320_vm2, %v8970_v21, %v2383_v0  ;;  %v2391_v58 = vadd.s32 3, %v2387_v4  ;;  %v7401_v2 = vsel %vm4053_vm15, 0, %v4052_v30  ;;  %vm2771_vm9 = vc.u32 %v7378_v3, %v7381_v35 }
 0x2c2   :  { %v2477_v13 = vor.u32 %v2476_v37, %v2475_v8  ;;  %v2678_v41 = vclz %v4055_v44  ;;  %v2772_v6 = vadd.s32 1, %v7382_v54  ;;  %vm2829_vm10 = vcmp.gt.s32.totalorder %v2828_v31, 0 }
 0x2c3   :  { %v2291_v29 = vxor.u32 2147483648, %v4307_v24  ;;  %v2294_v40 = vxor.u32 2147483648, %v4305_v61  ;;  %v2769_v57 = vmul.u32 %v2762_v43, %v2753_v20  ;;  %v2830_v52 = vsel %vm2829_vm10, %v2828_v31, 0 }
 0x2c4   :  { %v2482_v10 = vand.u32 2147483647, %v2481_v12  ;;  %v2582_v36 = vsub.s32 4294967266, %v7401_v2  ;;  %v2773_v15 = vsel %vm2771_vm9, %v2772_v6, %v7382_v54  ;;  %v2832_v0 = vand.u32 31, %v2830_v52 }
 0x2c5   :  { %v7410_v4 = vsel %vm2182_vm14, nan, %v2192_v60  ;;  %4308 = vcosq.f32 %v2386_v39  ;;  %v7412_v37 = vand.u32 3, %v2391_v58  ;;  %v2774_v30 = vadd.s32 %v2773_v15, %v2769_v57  ;;  %v8977_v15 = vld [vmem:[#allocation5_spill] sm:$0xff] }
 0x2c6   :  { %8976 = vst [vmem:[#allocation21_spill] sm:$0xff] %v7410_v4  ;;  %v2484_v22 = vcvt.s32.f32 %v2477_v13  ;;  %v4056_v45 = vadd.s32 4294967294, %v2678_v41  ;;  %v8860_v18 = vand.u32 2147483647, %v7331_v28  ;;  %v2833_v43 = vsub.s32 32, %v2832_v0 }
 0x2c7   :  { %v7417_v14 = vsel %vm2290_vm1, %v4305_v61, %v2291_v29  ;;  %v7421_v7 = vsel %vm2293_vm0, %v2294_v40, %v4307_v24  ;;  %4310 = vsinq.f32 %v2386_v39  ;;  %v2775_v11 = vadd.s32 536870912, %v2774_v30 }
 0x2c8   :  { %v7425_v23 = vmul.f32 %v2484_v22, %v2482_v10  ;;  %v2562_v59 = vadd.s32 %v7154_v27, %v7160_v9  ;;  %v2578_v32 = vsub.s32 32, %v7401_v2  ;;  %v7430_v33 = vadd.s32 127, %v2582_v36 }
 0x2c9   :  { %v7432_v47 = vshrl.u32 %v2775_v11, 30  ;;  %v2836_v61 = vshrl.u32 %v8902_v51, %v2833_v43  ;;  %v2839_v24 = vshrl.u32 %v8903_v56, %v2833_v43  ;;  %v2842_v44 = vshrl.u32 %v8885_v5, %v2833_v43 }
 0x2ca   :  { %vm4057_vm4 = vcmp.lt.s32.totalorder %v4056_v45, 0  ;;  %v2825_v54 = vand.u32 8388607, %v8860_v18  ;;  %v2831_v31 = vshrl.u32 %v2830_v52, 5  ;;  %v2925_v60 = vand.u32 2139095040, %v7423_v38 }
 0x2cb   :  { %v2777_v27 = vshll.u32 %v7432_v47, 30  ;;  %v2835_v9 = vshll.u32 %v8920_v26, %v2832_v0  ;;  %v2838_v8 = vshll.u32 %v8902_v51, %v2832_v0  ;;  %v2841_v12 = vshll.u32 %v8903_v56, %v2832_v0 }
 0x2cc   :  { %v2844_v20 = vshll.u32 %v8885_v5, %v2832_v0  ;;  %v2845_v39 = vshrl.u32 %v8901_v25, %v2833_v43  ;;  %v2847_v58 = vshll.u32 %v8901_v25, %v2832_v0  ;;  %v2848_v13 = vshrl.u32 %v8884_v63, %v2833_v43 }
 0x2cd   :  { %v2488_v41 = vsub.s32 4, %v7136_v49  ;;  %v2837_v6 = vor.u32 %v2836_v61, %v2835_v9  ;;  %v2840_v29 = vor.u32 %v2839_v24, %v2838_v8  ;;  %v2843_v40 = vor.u32 %v2842_v44, %v2841_v12 }
 0x2ce   :  { %v2486_v57 = vxor.u32 2147483648, %v7425_v23  ;;  %v2580_v52 = vshrl.u32 %v2562_v59, %v2578_v32  ;;  %v2846_v10 = vor.u32 %v2845_v39, %v2844_v20  ;;  %v2849_v36 = vor.u32 %v2848_v13, %v2847_v58 }
 0x2cf   :  { %vm2404_vm13 = vcmp.lt.s32.totalorder %v8977_v15, 0  ;;  %v2584_v22 = vshll.u32 %v7430_v33, 23  ;;  %v7453_v11 = vsel %vm4057_vm4, 0, %v4056_v45  ;;  %v7455_v0 = vsub.s32 %v2774_v30, %v2777_v27 }
 0x2d0   :  { %v2826_v18 = vor.u32 8388608, %v2825_v54  ;;  %v2834_v4 = vshrl.u32 %v8920_v26, %v2833_v43  ;;  %vm2850_vm6 = vcmp.lt.s32.totalorder %v2831_v31, 1  ;;  %vm2853_vm2 = vcmp.lt.s32.totalorder %v2831_v31, 4 }
 0x2d1   :  { %v2926_v61 = vshrl.u32 %v2925_v60, 23  ;;  %vm2852_vm3 = vcmp.lt.s32.totalorder %v2831_v31, 3  ;;  %v2855_v24 = vsel %vm2853_vm2, %v2843_v40, 2102212464  ;;  %v2858_v59 = vsel %vm2850_vm6, %v2837_v6, %v2840_v29 }
 0x2d2   :  { %v2859_v32 = vsel %vm2853_vm2, %v2846_v10, 920167782  ;;  %v7458_v44 = vpop.eup %4308  ;;  %v2686_v9 = vsub.s32 4294967266, %v7453_v11  ;;  %v2862_v45 = vsel %vm2850_vm6, %v2840_v29, %v2843_v40  ;;  %v2863_v8 = vsel %vm2853_vm2, %v2849_v36, 1326507024 }
 0x2d3   :  { %v2860_v33 = vsel %vm2852_vm3, %v2843_v40, %v2859_v32  ;;  %v2780_v30 = vsub.s32 0, %v7455_v0  ;;  %vm2851_vm7 = vcmp.lt.s32.totalorder %v2831_v31, 2  ;;  %v2854_v54 = vsel %vm2850_vm6, %v2834_v4, %v2837_v6 }
 0x2d4   :  { %v2866_v43 = vshll.u32 %v2826_v18, 8  ;;  %v4311_v27 = vpop.eup %4310  ;;  %vm2289_vm8 = vcmp.lt.s32.totalorder %v7316_v62, 2  ;;  %v8978_v60 = vand.u32 2147483647, %v8977_v15  ;;  %v2856_v20 = vsel %vm2852_vm3, %v2840_v29, %v2855_v24 }
 0x2d5   :  { %v2861_v39 = vsel %vm2851_vm7, %v2858_v59, %v2860_v33  ;;  %v2864_v58 = vsel %vm2852_vm3, %v2846_v10, %v2863_v8  ;;  %v4066_v13 = vadd.s32 4294967169, %v2926_v61  ;;  %v2682_v40 = vsub.s32 32, %v7453_v11 }
 0x2d6   :  { %vm7466_vm11 = vcmp.le.f32.partialorder %v8978_v60, 0.7853982  ;;  %v2865_v4 = vsel %vm2851_vm7, %v2862_v45, %v2864_v58  ;;  %v7475_v18 = vmul.u32.u64.low %v2866_v43, %v2861_v39  ;;  %v7476_v6 = vmul.u32.u64.high %v2866_v43, %v2861_v39, %v7475_v18 }
 0x2d7   :  { %vm2397_vm12 = vcmp.eq.s32.totalorder %v7412_v37, 2  ;;  %v2579_v36 = vshll.u32 %v7273_v50, %v7401_v2  ;;  %v2687_v32 = vadd.s32 127, %v2686_v9  ;;  %vm2394_vm5 = vcmp.eq.s32.totalorder %v7412_v37, 0 }
 0x2d8   :  { %v7482_v29 = vmul.u32.u64.low %v2866_v43, %v2865_v4  ;;  %v7483_v24 = vmul.u32.u64.high %v2866_v43, %v2865_v4, %v7482_v29  ;;  %vm2508_vm14 = vcmp.lt.s32.totalorder %v6927_v53, 0  ;;  %v2666_v10 = vadd.s32 %v7260_v48, %v7265_v17 }
 0x2d9   :  { %v4059_v61 = vmin.u32 %v2780_v30, %v7455_v0  ;;  %v2857_v59 = vsel %vm2851_vm7, %v2854_v54, %v2856_v20  ;;  %v2932_v33 = vadd.s32 1, %v4066_v13  ;;  %v2398_v45 = vxor.u32 2147483648, %v7458_v44 }
 0x2da   :  { %v2487_v50 = vsel %vm2404_vm13, %v2486_v57, %v7425_v23  ;;  %v7498_v2 = vsel %vm2404_vm13, %v2488_v41, %v7136_v49  ;;  %v2581_v9 = vor.u32 %v2580_v52, %v2579_v36  ;;  %v2585_v8 = vor.u32 4788187, %v2584_v22 }
 0x2db   :  { %v2684_v60 = vshrl.u32 %v2666_v10, %v2682_v40  ;;  %v2876_v48 = vadd.s32 1, %v7476_v6  ;;  %v8862_v17 = vand.u32 2147483647, %v7423_v38  ;;  %v2688_v31 = vshll.u32 %v2687_v32, 23 }
 0x2dc   :  { %v2873_v30 = vmul.u32 %v2866_v43, %v2857_v59  ;;  %vm2875_vm15 = vc.u32 %v7483_v24, %v7475_v18  ;;  %vm2933_vm1 = vcmp.gt.s32.totalorder %v2932_v33, 0  ;;  %v2683_v23 = vshll.u32 %v7354_v55, %v7453_v11  ;;  %v7541_v59 = vpop.f32.mrf.mxu0 }
 0x2dd   :  { %v2782_v57 = vclz %v4059_v61  ;;  %v2877_v49 = vsel %vm2875_vm15, %v2876_v48, %v7476_v6  ;;  %v2934_v41 = vsel %vm2933_vm1, %v2932_v33, 0  ;;  %v2395_v52 = vxor.u32 2147483648, %v4311_v27 }
 0x2de   :  { %v2592_v22 = vsub.s32 4, %v7249_v34  ;;  %v2878_v54 = vadd.s32 %v2877_v49, %v2873_v30  ;;  %v2936_v20 = vand.u32 31, %v2934_v41  ;;  %v7512_v43 = vsel %vm2289_vm8, %v7417_v14, %v7421_v7 }
 0x2df   :  { %v2490_v39 = vsel %vm7466_vm11, %v8977_v15, %v2487_v50  ;;  %v2586_v55 = vand.u32 2147483647, %v2585_v8  ;;  %v2685_v11 = vor.u32 %v2684_v60, %v2683_v23  ;;  %vm2393_vm0 = vcmp.lt.s32.totalorder %v7412_v37, 2 }
 0x2e0   :  { %v8981_v58 = vand.u32 2147483647, %v6927_v53  ;;  %v2689_v40 = vor.u32 4788187, %v2688_v31  ;;  %v2879_v4 = vadd.s32 536870912, %v2878_v54  ;;  %v2937_v14 = vsub.s32 32, %v2936_v20 }
 0x2e1   :  { %v2929_v62 = vand.u32 8388607, %v8862_v17  ;;  %v2399_v7 = vsel %vm2397_vm12, %v2398_v45, %v4311_v27  ;;  %v2491_v6 = vsel %vm7466_vm11, 0, %v7498_v2  ;;  %v2588_v36 = vcvt.s32.f32 %v2581_v9 }
 0x2e2   :  { %vm7520_vm9 = vcmp.le.f32.partialorder %v8981_v58, 0.7853982  ;;  %v4060_v32 = vadd.s32 4294967294, %v2782_v57  ;;  %v2396_v29 = vsel %vm2394_vm5, %v7458_v44, %v2395_v52  ;;  %4312 = vcosq.f32 %v2490_v39 }
 0x2e3   :  { %v7537_v10 = vsel %vm2508_vm14, %v2592_v22, %v7249_v34  ;;  %v7539_v61 = vshrl.u32 %v2879_v4, 30  ;;  %4314 = vsinq.f32 %v2490_v39  ;;  %v7543_v27 = vmul.f32 %v2588_v36, %v2586_v55 }
 0x2e4   :  { %v2692_v12 = vcvt.s32.f32 %v2685_v11  ;;  %v2940_v33 = vshrl.u32 %v8902_v51, %v2937_v14  ;;  %v2690_v45 = vand.u32 2147483647, %v2689_v40  ;;  %v2930_v44 = vor.u32 8388608, %v2929_v62 }
 0x2e5   :  { %v2881_v50 = vshll.u32 %v7539_v61, 30  ;;  %v2943_v2 = vshrl.u32 %v8903_v56, %v2937_v14  ;;  %vm4061_vm10 = vcmp.lt.s32.totalorder %v4060_v32, 0  ;;  %v2939_v34 = vshll.u32 %v8920_v26, %v2936_v20 }
 0x2e6   :  { %v2946_v9 = vshrl.u32 %v8885_v5, %v2937_v14  ;;  %v3029_v8 = vand.u32 2139095040, %v7541_v59  ;;  %v2942_v48 = vshll.u32 %v8902_v51, %v2936_v20  ;;  %v2945_v31 = vshll.u32 %v8903_v56, %v2936_v20 }
 0x2e7   :  { %v7551_v60 = vsub.s32 %v2878_v54, %v2881_v50  ;;  %v2949_v30 = vshrl.u32 %v8901_v25, %v2937_v14  ;;  %v2935_v23 = vshrl.u32 %v2934_v41, 5  ;;  %v2941_v57 = vor.u32 %v2940_v33, %v2939_v34 }
 0x2e8   :  { %v2948_v49 = vshll.u32 %v8885_v5, %v2936_v20  ;;  %v2952_v52 = vshrl.u32 %v8884_v63, %v2937_v14  ;;  %v2944_v39 = vor.u32 %v2943_v2, %v2942_v48  ;;  %v2947_v55 = vor.u32 %v2946_v9, %v2945_v31 }
 0x2e9   :  { %v2884_v22 = vsub.s32 0, %v7551_v60  ;;  %v2951_v11 = vshll.u32 %v8901_v25, %v2936_v20  ;;  %vm2286_vm4 = vweird.f32 %v6476_v46  ;;  %v2400_v54 = vsel %vm2393_vm0, %v2396_v29, %v2399_v7 }
 0x2ea   :  { %v2495_v58 = vadd.s32 3, %v2491_v6  ;;  %v2595_v41 = vsel %vm7520_vm9, 0, %v7537_v10  ;;  %v2950_v40 = vor.u32 %v2949_v30, %v2948_v49  ;;  %vm2390_vm13 = vweird.f32 %v8970_v21 }
 0x2eb   :  { %v2590_v4 = vxor.u32 2147483648, %v7543_v27  ;;  %v2693_v62 = vmul.f32 %v2692_v12, %v2690_v45  ;;  %v4063_v36 = vmin.u32 %v2884_v22, %v7551_v60  ;;  %v2953_v33 = vor.u32 %v2952_v52, %v2951_v11 }
 0x2ec   :  { %vm2612_vm6 = vcmp.lt.s32.totalorder %v7084_v1, 0  ;;  %v7571_v20 = vsel %vm4061_vm10, 0, %v4060_v32  ;;  %vm2954_vm2 = vcmp.lt.s32.totalorder %v2935_v23, 1  ;;  %vm2957_vm3 = vcmp.lt.s32.totalorder %v2935_v23, 4 }
 0x2ed   :  { %v3030_v37 = vshrl.u32 %v3029_v8, 23  ;;  %v2938_v7 = vshrl.u32 %v8920_v26, %v2937_v14  ;;  %v2959_v6 = vsel %vm2957_vm3, %v2947_v55, 2102212464  ;;  %v2962_v29 = vsel %vm2954_vm2, %v2941_v57, %v2944_v39 }
 0x2ee   :  { %v2970_v10 = vshll.u32 %v2930_v44, 8  ;;  %vm2955_vm7 = vcmp.lt.s32.totalorder %v2935_v23, 2  ;;  %vm2956_vm8 = vcmp.lt.s32.totalorder %v2935_v23, 3  ;;  %v2963_v50 = vsel %vm2957_vm3, %v2950_v40, 920167782 }
 0x2ef   :  { %v2966_v12 = vsel %vm2954_vm2, %v2944_v39, %v2947_v55  ;;  %v2886_v45 = vclz %v4063_v36  ;;  %v2958_v2 = vsel %vm2954_vm2, %v2938_v7, %v2941_v57  ;;  %v2964_v34 = vsel %vm2956_vm8, %v2947_v55, %v2963_v50  ;;  %v7574_v48 = vpop.eup %4312 }
 0x2f0   :  { %v2967_v9 = vsel %vm2957_vm3, %v2953_v33, 1326507024  ;;  %v2960_v32 = vsel %vm2956_vm8, %v2944_v39, %v2959_v6  ;;  %v2965_v31 = vsel %vm2955_vm7, %v2962_v29, %v2964_v34  ;;  %v4070_v8 = vadd.s32 4294967169, %v3030_v37  ;;  %v7577_v49 = vpop.eup %4314 }
 0x2f1   :  { %v2968_v30 = vsel %vm2956_vm8, %v2950_v40, %v2967_v9  ;;  %v2694_v14 = vxor.u32 2147483648, %v2693_v62  ;;  %v7580_v52 = vmul.u32.u64.low %v2970_v10, %v2965_v31  ;;  %v7581_v22 = vmul.u32.u64.high %v2970_v10, %v2965_v31, %v7580_v52 }
 0x2f2   :  { %v2969_v44 = vsel %vm2955_vm7, %v2966_v12, %v2968_v30  ;;  %v8984_v57 = vand.u32 2147483647, %v7084_v1  ;;  %v2790_v39 = vsub.s32 4294967266, %v7571_v20  ;;  %v7597_v36 = vsel %vm2286_vm4, nan, %v7512_v43 }
 0x2f3   :  { %v7591_v11 = vmul.u32.u64.low %v2970_v10, %v2969_v44  ;;  %v7592_v40 = vmul.u32.u64.high %v2970_v10, %v2969_v44, %v7591_v11  ;;  %8987 = vst [vmem:[#allocation5_spill] sm:$0xff] %v7597_v36  ;;  %v7599_v33 = vand.u32 3, %v2495_v58  ;;  %v2961_v37 = vsel %vm2955_vm7, %v2958_v2, %v2960_v32 }
 0x2f4   :  { %vm7586_vm11 = vcmp.le.f32.partialorder %v8984_v57, 0.7853982  ;;  %v3036_v7 = vadd.s32 1, %v4070_v8  ;;  %v7604_v6 = vsel %vm2390_vm13, nan, %v2400_v54  ;;  %v2591_v29 = vsel %vm2508_vm14, %v2590_v4, %v7543_v27 }
 0x2f5   :  { %8988 = vst [vmem:[#allocation22_spill] sm:$0xff] %v7604_v6  ;;  %v7609_v50 = vadd.s32 3, %v2595_v41  ;;  %v4064_v12 = vadd.s32 4294967294, %v2886_v45  ;;  %v2695_v46 = vsel %vm2612_vm6, %v2694_v14, %v2693_v62  ;;  %v2786_v43 = vsub.s32 32, %v7571_v20 }
 0x2f6   :  { %v2980_v23 = vadd.s32 1, %v7581_v22  ;;  %vm3037_vm12 = vcmp.gt.s32.totalorder %v3036_v7, 0  ;;  %v2791_v58 = vadd.s32 127, %v2790_v39  ;;  %v2977_v2 = vmul.u32 %v2970_v10, %v2961_v37 }
 0x2f7   :  { %vm2979_vm5 = vc.u32 %v7592_v40, %v7580_v52  ;;  %v3038_v21 = vsel %vm3037_vm12, %v3036_v7, 0  ;;  %v2594_v27 = vsel %vm7520_vm9, %v6927_v53, %v2591_v29  ;;  %v2770_v54 = vadd.s32 %v7381_v35, %v7378_v3 }
 0x2f8   :  { %v2981_v41 = vsel %vm2979_vm5, %v2980_v23, %v7581_v22  ;;  %v8861_v4 = vand.u32 2147483647, %v7541_v59  ;;  %v2696_v62 = vsub.s32 4, %v7329_v19  ;;  %vm4065_vm14 = vcmp.lt.s32.totalorder %v4064_v12, 0 }
 0x2f9   :  { %v2982_v45 = vadd.s32 %v2981_v41, %v2977_v2  ;;  %v3040_v10 = vand.u32 31, %v3038_v21  ;;  %v2698_v13 = vsel %vm7586_vm11, %v7084_v1, %v2695_v46  ;;  %v2788_v32 = vshrl.u32 %v2770_v54, %v2786_v43  ;;  %v7655_v54 = vpop.f32.mrf.mxu0 }
 0x2fa   :  { %4316 = vcosq.f32 %v2594_v27  ;;  %v2792_v3 = vshll.u32 %v2791_v58, 23  ;;  %v2787_v30 = vshll.u32 %v7455_v0, %v7571_v20  ;;  %v7632_v8 = vsel %vm4065_vm14, 0, %v4064_v12 }
 0x2fb   :  { %v2983_v35 = vadd.s32 536870912, %v2982_v45  ;;  %v3041_v31 = vsub.s32 32, %v3040_v10  ;;  %4318 = vsinq.f32 %v2594_v27  ;;  %v3033_v14 = vand.u32 8388607, %v8861_v4 }
 0x2fc   :  { %v7639_v44 = vsel %vm2612_vm6, %v2696_v62, %v7329_v19  ;;  %4320 = vcosq.f32 %v2698_v13  ;;  %v2789_v39 = vor.u32 %v2788_v32, %v2787_v30  ;;  %v2793_v20 = vor.u32 4788187, %v2792_v3 }
 0x2fd   :  { %v7641_v22 = vshrl.u32 %v2983_v35, 30  ;;  %v3044_v57 = vshrl.u32 %v8902_v51, %v3041_v31  ;;  %4322 = vsinq.f32 %v2698_v13  ;;  %v3047_v11 = vshrl.u32 %v8903_v56, %v3041_v31 }
 0x2fe   :  { %v3050_v0 = vshrl.u32 %v8885_v5, %v3041_v31  ;;  %v2894_v37 = vsub.s32 4294967266, %v7632_v8  ;;  %v3043_v29 = vshll.u32 %v8920_v26, %v3040_v10  ;;  %v3034_v19 = vor.u32 8388608, %v3033_v14 }
 0x2ff   :  { %v2985_v7 = vshll.u32 %v7641_v22, 30  ;;  %v3039_v12 = vshrl.u32 %v3038_v21, 5  ;;  %v3046_v46 = vshll.u32 %v8902_v51, %v3040_v10  ;;  %v3049_v43 = vshll.u32 %v8903_v56, %v3040_v10 }
 0x300   :  { %v3045_v58 = vor.u32 %v3044_v57, %v3043_v29  ;;  %v3052_v2 = vshll.u32 %v8885_v5, %v3040_v10  ;;  %v3053_v27 = vshrl.u32 %v8901_v25, %v3041_v31  ;;  %v3055_v13 = vshll.u32 %v8901_v25, %v3040_v10 }
 0x301   :  { %v7651_v23 = vsub.s32 %v2982_v45, %v2985_v7  ;;  %v3048_v41 = vor.u32 %v3047_v11, %v3046_v46  ;;  %v3051_v62 = vor.u32 %v3050_v0, %v3049_v43  ;;  %v3056_v32 = vshrl.u32 %v8884_v63, %v3041_v31 }
 0x302   :  { %vm2501_vm15 = vcmp.eq.s32.totalorder %v7599_v33, 2  ;;  %v2874_v21 = vadd.s32 %v7475_v18, %v7483_v24  ;;  %v2895_v45 = vadd.s32 127, %v2894_v37  ;;  %v3054_v35 = vor.u32 %v3053_v27, %v3052_v2 }
 0x303   :  { %v2988_v3 = vsub.s32 0, %v7651_v23  ;;  %vm2498_vm1 = vcmp.eq.s32.totalorder %v7599_v33, 0  ;;  %v2794_v30 = vand.u32 2147483647, %v2793_v20  ;;  %v2796_v14 = vcvt.s32.f32 %v2789_v39 }
 0x304   :  { %v3057_v57 = vor.u32 %v3056_v32, %v3055_v13  ;;  %v3133_v11 = vand.u32 2139095040, %v7655_v54  ;;  %v2890_v10 = vsub.s32 32, %v7632_v8  ;;  %vm3058_vm0 = vcmp.lt.s32.totalorder %v3039_v12, 1 }
 0x305   :  { %vm3061_vm9 = vcmp.lt.s32.totalorder %v3039_v12, 4  ;;  %v3074_v0 = vshll.u32 %v3034_v19, 8  ;;  %v4067_v7 = vmin.u32 %v2988_v3, %v7651_v23  ;;  %v3066_v18 = vsel %vm3058_vm0, %v3045_v58, %v3048_v41 }
 0x306   :  { %v3063_v29 = vsel %vm3061_vm9, %v3051_v62, 2102212464  ;;  %v3067_v24 = vsel %vm3061_vm9, %v3054_v35, 920167782  ;;  %v2896_v37 = vshll.u32 %v2895_v45, 23  ;;  %v3042_v46 = vshrl.u32 %v8920_v26, %v3041_v31 }
 0x307   :  { %vm3060_vm10 = vcmp.lt.s32.totalorder %v3039_v12, 3  ;;  %v3070_v39 = vsel %vm3058_vm0, %v3048_v41, %v3051_v62  ;;  %v7670_v20 = vpop.eup %4316  ;;  %vm2497_vm4 = vcmp.lt.s32.totalorder %v7599_v33, 2  ;;  %vm3059_vm13 = vcmp.lt.s32.totalorder %v3039_v12, 2 }
 0x308   :  { %v3068_v43 = vsel %vm3060_vm10, %v3051_v62, %v3067_v24  ;;  %v3071_v2 = vsel %vm3061_vm9, %v3057_v57, 1326507024  ;;  %v3134_v19 = vshrl.u32 %v3133_v11, 23  ;;  %v7673_v27 = vpop.eup %4318  ;;  %v3062_v13 = vsel %vm3058_vm0, %v3042_v46, %v3045_v58 }
 0x309   :  { %v3064_v32 = vsel %vm3060_vm10, %v3048_v41, %v3063_v29  ;;  %v3069_v45 = vsel %vm3059_vm13, %v3066_v18, %v3068_v43  ;;  %v3072_v3 = vsel %vm3060_vm10, %v3054_v35, %v3071_v2  ;;  %v7677_v31 = vpop.eup %4320  ;;  %vm2716_vm6 = vcmp.lt.s32.totalorder %v7237_v16, 0 }
 0x30a   :  { %v2990_v4 = vclz %v4067_v7  ;;  %v3073_v17 = vsel %vm3059_vm13, %v3070_v39, %v3072_v3  ;;  %v7681_v34 = vmul.u32.u64.low %v3074_v0, %v3069_v45  ;;  %v7682_v9 = vmul.u32.u64.high %v3074_v0, %v3069_v45, %v7681_v34  ;;  %v7685_v62 = vpop.eup %4322 }
 0x30b   :  { %vm2494_vm2 = vweird.f32 %v8977_v15  ;;  %v2797_v58 = vmul.f32 %v2796_v14, %v2794_v30  ;;  %v7688_v41 = vmul.u32.u64.low %v3074_v0, %v3073_v17  ;;  %v7689_v57 = vmul.u32.u64.high %v3074_v0, %v3073_v17, %v7688_v41 }
 0x30c   :  { %v4074_v35 = vadd.s32 4294967169, %v3134_v19  ;;  %v8989_v11 = vxor.u32 2147483648, %v7574_v48  ;;  %v7697_v29 = vand.u32 3, %v7609_v50  ;;  %v2892_v18 = vshrl.u32 %v2874_v21, %v2890_v10 }
 0x30d   :  { %v3065_v24 = vsel %vm3059_vm13, %v3062_v13, %v3064_v32  ;;  %v8990_v46 = vxor.u32 2147483648, %v7577_v49  ;;  %v2699_v30 = vsel %vm7586_vm11, 0, %v7639_v44  ;;  %v8991_v14 = vand.u32 2147483647, %v7237_v16 }
 0x30e   :  { %v2503_v7 = vsel %vm2501_vm15, %v8989_v11, %v7577_v49  ;;  %v2800_v50 = vsub.s32 4, %v7432_v47  ;;  %v3140_v12 = vadd.s32 1, %v4074_v35  ;;  %v2891_v49 = vshll.u32 %v7551_v60, %v7632_v8 }
 0x30f   :  { %v2500_v17 = vsel %vm2498_vm1, %v7574_v48, %v8990_v46  ;;  %vm7710_vm3 = vcmp.le.f32.partialorder %v8991_v14, 0.7853982  ;;  %v2897_v21 = vor.u32 4788187, %v2896_v37  ;;  %v4068_v10 = vadd.s32 4294967294, %v2990_v4  ;;  %v7750_v46 = vpop.f32.mrf.mxu0 }
 0x310   :  { %v3084_v48 = vadd.s32 1, %v7682_v9  ;;  %v2798_v43 = vxor.u32 2147483648, %v2797_v58  ;;  %v3081_v2 = vmul.u32 %v3074_v0, %v3065_v24  ;;  %vm3083_vm7 = vc.u32 %v7689_v57, %v7681_v34  ;;  %8995 = vst [vmem:[#allocation24_spill] sm:$0xff] %v7750_v46 }
 0x311   :  { %v8863_v55 = vand.u32 2147483647, %v7655_v54  ;;  %v2703_v44 = vadd.s32 3, %v2699_v30  ;;  %v2893_v19 = vor.u32 %v2892_v18, %v2891_v49  ;;  %vm3141_vm8 = vcmp.gt.s32.totalorder %v3140_v12, 0 }
 0x312   :  { %v3085_v13 = vsel %vm3083_vm7, %v3084_v48, %v7682_v9  ;;  %v2504_v32 = vsel %vm2497_vm4, %v2500_v17, %v2503_v7  ;;  %v2606_v60 = vxor.u32 2147483648, %v7670_v20  ;;  %v3142_v8 = vsel %vm3141_vm8, %v3140_v12, 0 }
 0x313   :  { %v3086_v4 = vadd.s32 %v3085_v13, %v3081_v2  ;;  %vm2605_vm11 = vcmp.eq.s32.totalorder %v7697_v29, 2  ;;  %v2898_v0 = vand.u32 2147483647, %v2897_v21  ;;  %vm4069_vm12 = vcmp.lt.s32.totalorder %v4068_v10, 0 }
 0x314   :  { %v3144_v37 = vand.u32 31, %v3142_v8  ;;  %v2799_v45 = vsel %vm2716_vm6, %v2798_v43, %v2797_v58  ;;  %v7731_v9 = vsel %vm2716_vm6, %v2800_v50, %v7432_v47  ;;  %v3137_v33 = vand.u32 8388607, %v8863_v55 }
 0x315   :  { %v3087_v3 = vadd.s32 536870912, %v3086_v4  ;;  %v7737_v41 = vsel %vm2494_vm2, nan, %v2504_v32  ;;  %v7739_v35 = vand.u32 3, %v2703_v44  ;;  %vm2820_vm5 = vcmp.lt.s32.totalorder %v7331_v28, 0 }
 0x316   :  { %8994 = vst [vmem:[#allocation23_spill] sm:$0xff] %v7737_v41  ;;  %v2900_v11 = vcvt.s32.f32 %v2893_v19  ;;  %v3145_v7 = vsub.s32 32, %v3144_v37  ;;  %v7744_v18 = vsel %vm2605_vm11, %v2606_v60, %v7673_v27  ;;  %v7746_v47 = vsel %vm4069_vm12, 0, %v4068_v10 }
 0x317   :  { %v7748_v24 = vshrl.u32 %v3087_v3, 30  ;;  %v2802_v15 = vsel %vm7710_vm3, %v7237_v16, %v2799_v45  ;;  %v2904_v14 = vsub.s32 4, %v7539_v61  ;;  %v3138_v12 = vor.u32 8388608, %v3137_v33 }
 0x318   :  { %v7758_v30 = vmul.f32 %v2900_v11, %v2898_v0  ;;  %v3148_v49 = vshrl.u32 %v8902_v51, %v3145_v7  ;;  %v3151_v21 = vshrl.u32 %v8903_v56, %v3145_v7  ;;  %v2998_v10 = vsub.s32 4294967266, %v7746_v47 }
 0x319   :  { %v3089_v50 = vshll.u32 %v7748_v24, 30  ;;  %v7765_v48 = vshrl.u32 %v3142_v8, 5  ;;  %v3154_v43 = vshrl.u32 %v8885_v5, %v3145_v7  ;;  %v3237_v2 = vand.u32 2139095040, %v7750_v46 }
 0x31a   :  { %v3147_v19 = vshll.u32 %v8920_v26, %v3144_v37  ;;  %v3150_v13 = vshll.u32 %v8902_v51, %v3144_v37  ;;  %v3157_v32 = vshrl.u32 %v8901_v25, %v3145_v7  ;;  %v3153_v60 = vshll.u32 %v8903_v56, %v3144_v37 }
 0x31b   :  { %v7769_v44 = vsub.s32 %v3086_v4, %v3089_v50  ;;  %v3156_v0 = vshll.u32 %v8885_v5, %v3144_v37  ;;  %v3159_v45 = vshll.u32 %v8901_v25, %v3144_v37  ;;  %v3160_v8 = vshrl.u32 %v8884_v63, %v3145_v7 }
 0x31c   :  { %v2707_v3 = vxor.u32 2147483648, %v7685_v62  ;;  %v2710_v33 = vxor.u32 2147483648, %v7677_v31  ;;  %v3149_v4 = vor.u32 %v3148_v49, %v3147_v19  ;;  %v3152_v11 = vor.u32 %v3151_v21, %v3150_v13 }
 0x31d   :  { %vm2602_vm14 = vcmp.eq.s32.totalorder %v7697_v29, 0  ;;  %4324 = vcosq.f32 %v2802_v15  ;;  %v3155_v50 = vor.u32 %v3154_v43, %v3153_v60  ;;  %v3158_v55 = vor.u32 %v3157_v32, %v3156_v0 }
 0x31e   :  { %v3161_v17 = vor.u32 %v3160_v8, %v3159_v45  ;;  %vm2709_vm15 = vcmp.eq.s32.totalorder %v7739_v35, 2  ;;  %4326 = vsinq.f32 %v2802_v15  ;;  %v2902_v58 = vxor.u32 2147483648, %v7758_v30 }
 0x31f   :  { %v7786_v37 = vsel %vm2820_vm5, %v2904_v14, %v7539_v61  ;;  %v3092_v41 = vsub.s32 0, %v7769_v44  ;;  %vm2706_vm1 = vcmp.eq.s32.totalorder %v7739_v35, 0  ;;  %v8996_v49 = vand.u32 2147483647, %v7331_v28 }
 0x320   :  { %v2999_v43 = vadd.s32 127, %v2998_v10  ;;  %vm3162_vm9 = vcmp.lt.s32.totalorder %v7765_v48, 1  ;;  %v3178_v15 = vshll.u32 %v3138_v12, 8  ;;  %v3238_v19 = vshrl.u32 %v3237_v2, 23 }
 0x321   :  { %vm7792_vm0 = vcmp.le.f32.partialorder %v8996_v49, 0.7853982  ;;  %v3146_v13 = vshrl.u32 %v8920_v26, %v3145_v7  ;;  %vm3164_vm10 = vcmp.lt.s32.totalorder %v7765_v48, 3  ;;  %vm3165_vm4 = vcmp.lt.s32.totalorder %v7765_v48, 4 }
 0x322   :  { %v3170_v61 = vsel %vm3162_vm9, %v3149_v4, %v3152_v11  ;;  %v3167_v14 = vsel %vm3165_vm4, %v3155_v50, 2102212464  ;;  %v3171_v32 = vsel %vm3165_vm4, %v3158_v55, 920167782  ;;  %v3174_v60 = vsel %vm3162_vm9, %v3152_v11, %v3155_v50 }
 0x323   :  { %v3175_v0 = vsel %vm3165_vm4, %v3161_v17, 1326507024  ;;  %v4071_v10 = vmin.u32 %v3092_v41, %v7769_v44  ;;  %vm3163_vm13 = vcmp.lt.s32.totalorder %v7765_v48, 2  ;;  %v3172_v7 = vsel %vm3164_vm10, %v3155_v50, %v3171_v32 }
 0x324   :  { %v3176_v12 = vsel %vm3164_vm10, %v3158_v55, %v3175_v0  ;;  %vm2601_vm6 = vcmp.lt.s32.totalorder %v7697_v29, 2  ;;  %vm2705_vm2 = vcmp.lt.s32.totalorder %v7739_v35, 2  ;;  %v2994_v2 = vsub.s32 32, %v7746_v47 }
 0x325   :  { %v3173_v45 = vsel %vm3163_vm13, %v3170_v61, %v3172_v7  ;;  %v3177_v41 = vsel %vm3163_vm13, %v3174_v60, %v3176_v12  ;;  %v4078_v17 = vadd.s32 4294967169, %v3238_v19  ;;  %v3166_v8 = vsel %vm3162_vm9, %v3146_v13, %v3149_v4 }
 0x326   :  { %v3168_v50 = vsel %vm3164_vm10, %v3152_v11, %v3167_v14  ;;  %v7821_v55 = vmul.u32.u64.low %v3178_v15, %v3177_v41  ;;  %v7822_v49 = vmul.u32.u64.high %v3178_v15, %v3177_v41, %v7821_v55  ;;  %v2978_v32 = vadd.s32 %v7580_v52, %v7592_v40 }
 0x327   :  { %v3000_v0 = vshll.u32 %v2999_v43, 23  ;;  %v7826_v6 = vmul.u32.u64.low %v3178_v15, %v3173_v45  ;;  %v7827_v36 = vmul.u32.u64.high %v3178_v15, %v3173_v45, %v7826_v6  ;;  %v8999_v61 = vxor.u32 2147483648, %v7673_v27 }
 0x328   :  { %v9000_v11 = vsel %vm7710_vm3, 0, %v7731_v9  ;;  %vm2924_vm7 = vcmp.lt.s32.totalorder %v7423_v38, 0  ;;  %v3094_v13 = vclz %v4071_v10  ;;  %v3244_v52 = vadd.s32 1, %v4078_v17 }
 0x329   :  { %v2604_v4 = vsel %vm2602_vm14, %v7670_v20, %v8999_v61  ;;  %v2807_v19 = vadd.s32 3, %v9000_v11  ;;  %v2711_v40 = vsel %vm2709_vm15, %v2710_v33, %v7685_v62  ;;  %v2903_v27 = vsel %vm2820_vm5, %v2902_v58, %v7758_v30 }
 0x32a   :  { %v2996_v43 = vshrl.u32 %v2978_v32, %v2994_v2  ;;  %v3169_v20 = vsel %vm3163_vm13, %v3166_v8, %v3168_v50  ;;  %v2708_v39 = vsel %vm2706_vm1, %v7677_v31, %v2707_v3  ;;  %v2907_v9 = vsel %vm7792_vm0, 0, %v7786_v37  ;;  %v7860_v48 = vpop.eup %4324 }
 0x32b   :  { %v3008_v14 = vsub.s32 4, %v7641_v22  ;;  %vm3187_vm3 = vc.u32 %v7822_v49, %v7826_v6  ;;  %v2995_v62 = vshll.u32 %v7651_v23, %v7746_v47  ;;  %v3001_v58 = vor.u32 4788187, %v3000_v0  ;;  %v7865_v60 = vpop.eup %4326 }
 0x32c   :  { %v3188_v30 = vadd.s32 1, %v7827_v36  ;;  %vm3245_vm8 = vcmp.gt.s32.totalorder %v3244_v52, 0  ;;  %v2906_v31 = vsel %vm7792_vm0, %v7331_v28, %v2903_v27  ;;  %v4072_v3 = vadd.s32 4294967294, %v3094_v13 }
 0x32d   :  { %v3185_v33 = vmul.u32 %v3178_v15, %v3169_v20  ;;  %v3246_v37 = vsel %vm3245_vm8, %v3244_v52, 0  ;;  %v2997_v10 = vor.u32 %v2996_v43, %v2995_v62  ;;  %v8865_v23 = vand.u32 2147483647, %v7750_v46 }
 0x32e   :  { %v3189_v7 = vsel %vm3187_vm3, %v3188_v30, %v7827_v36  ;;  %v3248_v47 = vand.u32 31, %v3246_v37  ;;  %v7872_v12 = vsel %vm2601_vm6, %v2604_v4, %v7744_v18  ;;  %v7876_v21 = vsel %vm2705_vm2, %v2708_v39, %v2711_v40  ;;  %v7884_v18 = vpop.f32.mrf.mxu0 }
 0x32f   :  { %v7878_v2 = vand.u32 3, %v2807_v19  ;;  %v3190_v15 = vadd.s32 %v3189_v7, %v3185_v33  ;;  %v2814_v45 = vxor.u32 2147483648, %v7860_v48  ;;  %v7881_v41 = vadd.s32 3, %v2907_v9  ;;  %9001 = vst [vmem:[#allocation25_spill] sm:$0xff] %v7884_v18 }
 0x330   :  { %v3002_v36 = vand.u32 2147483647, %v3001_v58  ;;  %v3249_v17 = vsub.s32 32, %v3248_v47  ;;  %v2811_v8 = vxor.u32 2147483648, %v7865_v60  ;;  %4328 = vcosq.f32 %v2906_v31 }
 0x331   :  { %vm4073_vm11 = vcmp.lt.s32.totalorder %v4072_v3, 0  ;;  %v3191_v29 = vadd.s32 536870912, %v3190_v15  ;;  %4330 = vsinq.f32 %v2906_v31  ;;  %v3004_v35 = vcvt.s32.f32 %v2997_v10 }
 0x332   :  { %v7889_v50 = vsel %vm2924_vm7, %v3008_v14, %v7641_v22  ;;  %v3241_v55 = vand.u32 8388607, %v8865_v23  ;;  %v3252_v0 = vshrl.u32 %v8902_v51, %v3249_v17  ;;  %v3255_v61 = vshrl.u32 %v8903_v56, %v3249_v17 }
 0x333   :  { %v7893_v32 = vshrl.u32 %v3191_v29, 30  ;;  %v3258_v4 = vshrl.u32 %v8885_v5, %v3249_v17  ;;  %v7898_v11 = vmul.f32 %v3004_v35, %v3002_v36  ;;  %v7900_v19 = vsel %vm4073_vm11, 0, %v4072_v3 }
 0x334   :  { %v3247_v13 = vshrl.u32 %v3246_v37, 5  ;;  %v3341_v52 = vand.u32 2139095040, %v7884_v18  ;;  %v3251_v40 = vshll.u32 %v8920_v26, %v3248_v47  ;;  %v3254_v27 = vshll.u32 %v8902_v51, %v3248_v47 }
 0x335   :  { %v3193_v22 = vshll.u32 %v7893_v32, 30  ;;  %v3257_v43 = vshll.u32 %v8903_v56, %v3248_v47  ;;  %v3260_v20 = vshll.u32 %v8885_v5, %v3248_v47  ;;  %v3261_v39 = vshrl.u32 %v8901_v25, %v3249_v17 }
 0x336   :  { %v3263_v9 = vshll.u32 %v8901_v25, %v3248_v47  ;;  %v3264_v14 = vshrl.u32 %v8884_v63, %v3249_v17  ;;  %v3253_v58 = vor.u32 %v3252_v0, %v3251_v40  ;;  %v3256_v30 = vor.u32 %v3255_v61, %v3254_v27 }
 0x337   :  { %v7911_v62 = vsub.s32 %v3190_v15, %v3193_v22  ;;  %v3259_v31 = vor.u32 %v3258_v4, %v3257_v43  ;;  %vm2813_vm12 = vcmp.eq.s32.totalorder %v7878_v2, 2  ;;  %v3006_v3 = vxor.u32 2147483648, %v7898_v11 }
 0x338   :  { %v3102_v33 = vsub.s32 4294967266, %v7900_v19  ;;  %v3262_v37 = vor.u32 %v3261_v39, %v3260_v20  ;;  %v3265_v10 = vor.u32 %v3264_v14, %v3263_v9  ;;  %vm2810_vm5 = vcmp.eq.s32.totalorder %v7878_v2, 0 }
 0x339   :  { %v9002_v7 = vand.u32 2147483647, %v7423_v38  ;;  %v3098_v15 = vsub.s32 32, %v7900_v19  ;;  %v3196_v36 = vsub.s32 0, %v7911_v62  ;;  %v3242_v29 = vor.u32 8388608, %v3241_v55 }
 0x33a   :  { %v3342_v35 = vshrl.u32 %v3341_v52, 23  ;;  %v3250_v0 = vshrl.u32 %v8920_v26, %v3249_v17  ;;  %vm3266_vm15 = vcmp.lt.s32.totalorder %v3247_v13, 1  ;;  %vm3268_vm1 = vcmp.lt.s32.totalorder %v3247_v13, 3 }
 0x33b   :  { %vm7919_vm14 = vcmp.le.f32.partialorder %v9002_v7, 0.7853982  ;;  %vm3269_vm0 = vcmp.lt.s32.totalorder %v3247_v13, 4  ;;  %v4075_v61 = vmin.u32 %v3196_v36, %v7911_v62  ;;  %v3274_v22 = vsel %vm3266_vm15, %v3253_v58, %v3256_v30 }
 0x33c   :  { %v3271_v4 = vsel %vm3269_vm0, %v3259_v31, 2102212464  ;;  %v3275_v40 = vsel %vm3269_vm0, %v3262_v37, 920167782  ;;  %vm2809_vm9 = vcmp.lt.s32.totalorder %v7878_v2, 2  ;;  %v3103_v27 = vadd.s32 127, %v3102_v33 }
 0x33d   :  { %v3276_v43 = vsel %vm3268_vm1, %v3259_v31, %v3275_v40  ;;  %v3278_v20 = vsel %vm3266_vm15, %v3256_v30, %v3259_v31  ;;  %v3279_v39 = vsel %vm3269_vm0, %v3265_v10, 1326507024  ;;  %v3198_v9 = vclz %v4075_v61  ;;  %v7929_v17 = vpop.eup %4328 }
 0x33e   :  { %vm3267_vm10 = vcmp.lt.s32.totalorder %v3247_v13, 2  ;;  %v3270_v55 = vsel %vm3266_vm15, %v3250_v0, %v3253_v58  ;;  %v3282_v52 = vshll.u32 %v3242_v29, 8  ;;  %vm2598_vm4 = vweird.f32 %v6927_v53  ;;  %v7936_v40 = vpop.eup %4330 }
 0x33f   :  { %vm2702_vm13 = vweird.f32 %v7084_v1  ;;  %v3272_v14 = vsel %vm3268_vm1, %v3256_v30, %v3271_v4  ;;  %v3277_v7 = vsel %vm3267_vm10, %v3274_v22, %v3276_v43  ;;  %v3280_v33 = vsel %vm3268_vm1, %v3262_v37, %v3279_v39 }
 0x340   :  { %v4082_v36 = vadd.s32 4294967169, %v3342_v35  ;;  %v4076_v31 = vadd.s32 4294967294, %v3198_v9  ;;  %v3281_v10 = vsel %vm3267_vm10, %v3278_v20, %v3280_v33  ;;  %vm2806_vm6 = vweird.f32 %v7237_v16 }
 0x341   :  { %v7939_v58 = vmul.u32.u64.low %v3282_v52, %v3277_v7  ;;  %v7940_v29 = vmul.u32.u64.high %v3282_v52, %v3277_v7, %v7939_v58  ;;  %v3082_v0 = vadd.s32 %v7681_v34, %v7689_v57  ;;  %v3104_v30 = vshll.u32 %v3103_v27, 23 }
 0x342   :  { %v7946_v61 = vmul.u32.u64.low %v3282_v52, %v3281_v10  ;;  %v7947_v4 = vmul.u32.u64.high %v3282_v52, %v3281_v10, %v7946_v61  ;;  %v2815_v37 = vsel %vm2813_vm12, %v2814_v45, %v7865_v60  ;;  %v7955_v35 = vand.u32 3, %v7881_v41  ;;  %v8008_v10 = vpop.f32.mrf.mxu0 }
 0x343   :  { %v3273_v22 = vsel %vm3267_vm10, %v3270_v55, %v3272_v14  ;;  %v3348_v43 = vadd.s32 1, %v4082_v36  ;;  %v2812_v34 = vsel %vm2810_vm5, %v7860_v48, %v2811_v8  ;;  %v3007_v57 = vsel %vm2924_vm7, %v3006_v3, %v7898_v11 }
 0x344   :  { %v3011_v45 = vsel %vm7919_vm14, 0, %v7889_v50  ;;  %v3100_v27 = vshrl.u32 %v3082_v0, %v3098_v15  ;;  %v3099_v41 = vshll.u32 %v7769_v44, %v7900_v19  ;;  %vm4077_vm2 = vcmp.lt.s32.totalorder %v4076_v31, 0 }
 0x345   :  { %v3292_v13 = vadd.s32 1, %v7940_v29  ;;  %v8864_v60 = vand.u32 2147483647, %v7884_v18  ;;  %v3105_v20 = vor.u32 4788187, %v3104_v30  ;;  %v3289_v39 = vmul.u32 %v3282_v52, %v3273_v22 }
 0x346   :  { %vm3291_vm3 = vc.u32 %v7947_v4, %v7939_v58  ;;  %vm3349_vm8 = vcmp.gt.s32.totalorder %v3348_v43, 0  ;;  %v2816_v48 = vsel %vm2809_vm9, %v2812_v34, %v2815_v37  ;;  %v3015_v8 = vadd.s32 3, %v3011_v45 }
 0x347   :  { %v3293_v50 = vsel %vm3291_vm3, %v3292_v13, %v7940_v29  ;;  %v3350_v11 = vsel %vm3349_vm8, %v3348_v43, 0  ;;  %v3101_v3 = vor.u32 %v3100_v27, %v3099_v41  ;;  %v7978_v44 = vsel %vm4077_vm2, 0, %v4076_v31 }
 0x348   :  { %v3294_v19 = vadd.s32 %v3293_v50, %v3289_v39  ;;  %v3352_v15 = vand.u32 31, %v3350_v11  ;;  %v7983_v9 = vsel %vm2598_vm4, nan, %v7872_v12  ;;  %v7988_v55 = vsel %vm2702_vm13, nan, %v7876_v21 }
 0x349   :  { %9005 = vst [vmem:[#allocation26_spill] sm:$0xff] %v7983_v9  ;;  %9006 = vst [vmem:[#allocation27_spill] sm:$0xff] %v7988_v55  ;;  %v2918_v2 = vxor.u32 2147483648, %v7929_v17  ;;  %v3010_v52 = vsel %vm7919_vm14, %v7423_v38, %v3007_v57  ;;  %vm3028_vm7 = vcmp.lt.s32.totalorder %v7541_v59, 0  ;;  %v3106_v14 = vand.u32 2147483647, %v3105_v20 }
 0x34a   :  { %v3295_v7 = vadd.s32 536870912, %v3294_v19  ;;  %v3345_v53 = vand.u32 8388607, %v8864_v60  ;;  %v3353_v12 = vsub.s32 32, %v3352_v15  ;;  %v7999_v33 = vsel %vm2806_vm6, nan, %v2816_v48 }
 0x34b   :  { %9007 = vst [vmem:[#allocation28_spill] sm:$0xff] %v7999_v33  ;;  %vm2917_vm11 = vcmp.eq.s32.totalorder %v7955_v35, 2  ;;  %v8002_v1 = vand.u32 3, %v3015_v8  ;;  %v3206_v21 = vsub.s32 4294967266, %v7978_v44  ;;  %v2915_v47 = vxor.u32 2147483648, %v7936_v40 }
 0x34c   :  { %4332 = vcosq.f32 %v3010_v52  ;;  %v3108_v36 = vcvt.s32.f32 %v3101_v3  ;;  %v8006_v31 = vshrl.u32 %v3295_v7, 30  ;;  %v8011_v29 = vsel %vm2917_vm11, %v2918_v2, %v7936_v40 }
 0x34d   :  { %4334 = vsinq.f32 %v3010_v52  ;;  %v3112_v16 = vsub.s32 4, %v7748_v24  ;;  %v3356_v0 = vshrl.u32 %v8902_v51, %v3353_v12  ;;  %v3346_v37 = vor.u32 8388608, %v3345_v53 }
 0x34e   :  { %v8015_v30 = vmul.f32 %v3108_v36, %v3106_v14  ;;  %v3297_v61 = vshll.u32 %v8006_v31, 30  ;;  %v3359_v22 = vshrl.u32 %v8903_v56, %v3353_v12  ;;  %v8019_v43 = vadd.s32 127, %v3206_v21 }
 0x34f   :  { %v3355_v34 = vshll.u32 %v8920_v26, %v3352_v15  ;;  %v3362_v57 = vshrl.u32 %v8885_v5, %v3353_v12  ;;  %v3445_v45 = vand.u32 2139095040, %v8008_v10  ;;  %v3358_v41 = vshll.u32 %v8902_v51, %v3352_v15 }
 0x350   :  { %v8024_v27 = vsub.s32 %v3294_v19, %v3297_v61  ;;  %v3361_v13 = vshll.u32 %v8903_v56, %v3352_v15  ;;  %v3365_v20 = vshrl.u32 %v8901_v25, %v3353_v12  ;;  %v3351_v39 = vshrl.u32 %v3350_v11, 5 }
 0x351   :  { %v3357_v48 = vor.u32 %v3356_v0, %v3355_v34  ;;  %v3364_v8 = vshll.u32 %v8885_v5, %v3352_v15  ;;  %v3368_v50 = vshrl.u32 %v8884_v63, %v3353_v12  ;;  %vm2914_vm12 = vcmp.eq.s32.totalorder %v7955_v35, 0 }
 0x352   :  { %v3300_v3 = vsub.s32 0, %v8024_v27  ;;  %v3360_v2 = vor.u32 %v3359_v22, %v3358_v41  ;;  %v3363_v52 = vor.u32 %v3362_v57, %v3361_v13  ;;  %v3367_v19 = vshll.u32 %v8901_v25, %v3352_v15 }
 0x353   :  { %v3110_v14 = vxor.u32 2147483648, %v8015_v30  ;;  %v8038_v7 = vsel %vm3028_vm7, %v3112_v16, %v7748_v24  ;;  %v3186_v11 = vadd.s32 %v7826_v6, %v7822_v49  ;;  %v3366_v53 = vor.u32 %v3365_v20, %v3364_v8 }
 0x354   :  { %v9008_v21 = vand.u32 2147483647, %v7541_v59  ;;  %v3202_v0 = vsub.s32 32, %v7978_v44  ;;  %v4079_v15 = vmin.u32 %v3300_v3, %v8024_v27  ;;  %v3369_v61 = vor.u32 %v3368_v50, %v3367_v19 }
 0x355   :  { %v3386_v22 = vshll.u32 %v3346_v37, 8  ;;  %v3208_v34 = vshll.u32 %v8019_v43, 23  ;;  %vm3370_vm14 = vcmp.lt.s32.totalorder %v3351_v39, 1  ;;  %vm3373_vm15 = vcmp.lt.s32.totalorder %v3351_v39, 4 }
 0x356   :  { %vm8044_vm5 = vcmp.le.f32.partialorder %v9008_v21, 0.7853982  ;;  %v3446_v24 = vshrl.u32 %v3445_v45, 23  ;;  %v3302_v16 = vclz %v4079_v15  ;;  %v3354_v6 = vshrl.u32 %v8920_v26, %v3353_v12 }
 0x357   :  { %v3375_v49 = vsel %vm3373_vm15, %v3363_v52, 2102212464  ;;  %v3378_v57 = vsel %vm3370_vm14, %v3357_v48, %v3360_v2  ;;  %vm3371_vm1 = vcmp.lt.s32.totalorder %v3351_v39, 2  ;;  %vm3372_vm0 = vcmp.lt.s32.totalorder %v3351_v39, 3 }
 0x358   :  { %v3379_v41 = vsel %vm3373_vm15, %v3366_v53, 920167782  ;;  %v3382_v13 = vsel %vm3370_vm14, %v3360_v2, %v3363_v52  ;;  %v4080_v20 = vadd.s32 4294967294, %v3302_v16  ;;  %v3374_v8 = vsel %vm3370_vm14, %v3354_v6, %v3357_v48 }
 0x359   :  { %v3380_v21 = vsel %vm3372_vm0, %v3363_v52, %v3379_v41  ;;  %v3383_v3 = vsel %vm3373_vm15, %v3369_v61, 1326507024  ;;  %v4333_v50 = vpop.eup %4332  ;;  %vm2913_vm9 = vcmp.lt.s32.totalorder %v7955_v35, 2  ;;  %v3376_v37 = vsel %vm3372_vm0, %v3360_v2, %v3375_v49 }
 0x35a   :  { %v3381_v43 = vsel %vm3371_vm1, %v3378_v57, %v3380_v21  ;;  %v3384_v45 = vsel %vm3372_vm0, %v3366_v53, %v3383_v3  ;;  %v4086_v19 = vadd.s32 4294967169, %v3446_v24  ;;  %v4335_v15 = vpop.eup %4334  ;;  %vm4081_vm10 = vcmp.lt.s32.totalorder %v4080_v20, 0 }
 0x35b   :  { %v3385_v12 = vsel %vm3371_vm1, %v3382_v13, %v3384_v45  ;;  %v8055_v60 = vmul.u32.u64.low %v3386_v22, %v3381_v43  ;;  %v8056_v23 = vmul.u32.u64.high %v3386_v22, %v3381_v43, %v8055_v60  ;;  %v2916_v48 = vsel %vm2914_vm12, %v7929_v17, %v2915_v47 }
 0x35c   :  { %vm3018_vm4 = vcmp.eq.s32.totalorder %v8002_v1, 0  ;;  %vm3021_vm13 = vcmp.eq.s32.totalorder %v8002_v1, 2  ;;  %v3305_v2 = vsel %vm4081_vm10, 0, %v4080_v20  ;;  %vm3132_vm6 = vcmp.lt.s32.totalorder %v7655_v54, 0 }
 0x35d   :  { %v8066_v52 = vmul.u32.u64.low %v3386_v22, %v3385_v12  ;;  %v8067_v53 = vmul.u32.u64.high %v3386_v22, %v3385_v12, %v8066_v52  ;;  %v3204_v61 = vshrl.u32 %v3186_v11, %v3202_v0  ;;  %v3310_v24 = vsub.s32 4294967266, %v3305_v2 }
 0x35e   :  { %v3377_v16 = vsel %vm3371_vm1, %v3374_v8, %v3376_v37  ;;  %v3452_v6 = vadd.s32 1, %v4086_v19  ;;  %v3022_v40 = vxor.u32 2147483648, %v4333_v50  ;;  %v3111_v17 = vsel %vm3028_vm7, %v3110_v14, %v8015_v30 }
 0x35f   :  { %v3115_v47 = vsel %vm8044_vm5, 0, %v8038_v7  ;;  %v8867_v49 = vand.u32 2147483647, %v8008_v10  ;;  %v3203_v57 = vshll.u32 %v7911_v62, %v7978_v44  ;;  %v3209_v41 = vor.u32 4788187, %v3208_v34 }
 0x360   :  { %v3396_v11 = vadd.s32 1, %v8056_v23  ;;  %vm3453_vm2 = vcmp.gt.s32.totalorder %v3452_v6, 0  ;;  %v3306_v39 = vsub.s32 32, %v3305_v2  ;;  %v3393_v0 = vmul.u32 %v3386_v22, %v3377_v16 }
 0x361   :  { %vm3395_vm3 = vc.u32 %v8067_v53, %v8055_v60  ;;  %v3454_v13 = vsel %vm3453_vm2, %v3452_v6, 0  ;;  %v3019_v30 = vxor.u32 2147483648, %v4335_v15  ;;  %v3205_v14 = vor.u32 %v3204_v61, %v3203_v57 }
 0x362   :  { %v3311_v20 = vadd.s32 127, %v3310_v24  ;;  %v3397_v7 = vsel %vm3395_vm3, %v3396_v11, %v8056_v23  ;;  %v3216_v8 = vsub.s32 4, %v7893_v32  ;;  %v3290_v62 = vadd.s32 %v7939_v58, %v7947_v4 }
 0x363   :  { %v3398_v44 = vadd.s32 %v3397_v7, %v3393_v0  ;;  %v3456_v34 = vand.u32 31, %v3454_v13  ;;  %v8090_v22 = vsel %vm2913_vm9, %v2916_v48, %v8011_v29  ;;  %v3114_v21 = vsel %vm8044_vm5, %v7541_v59, %v3111_v17  ;;  %v8130_v0 = vpop.f32.mrf.mxu1 }
 0x364   :  { %v8095_v3 = vadd.s32 3, %v3115_v47  ;;  %v3210_v37 = vand.u32 2147483647, %v3209_v41  ;;  %v3308_v23 = vshrl.u32 %v3290_v62, %v3306_v39  ;;  %v3449_v45 = vand.u32 8388607, %v8867_v49  ;;  %v8128_v39 = vpop.f32.mrf.mxu0 }
 0x365   :  { %v3399_v43 = vadd.s32 536870912, %v3398_v44  ;;  %v3457_v58 = vsub.s32 32, %v3456_v34  ;;  %v8101_v4 = vsel %vm3018_vm4, %v4333_v50, %v3019_v30  ;;  %v8105_v35 = vsel %vm3021_vm13, %v3022_v40, %v4335_v15 }
 0x366   :  { %v3212_v29 = vcvt.s32.f32 %v3205_v14  ;;  %v3312_v36 = vshll.u32 %v3311_v20, 23  ;;  %v8110_v19 = vsel %vm3132_vm6, %v3216_v8, %v7893_v32  ;;  %v3307_v12 = vshll.u32 %v8024_v27, %v3305_v2 }
 0x367   :  { %v8113_v48 = vshrl.u32 %v3399_v43, 30  ;;  %v3460_v52 = vshrl.u32 %v8902_v51, %v3457_v58  ;;  %4336 = vcosq.f32 %v3114_v21  ;;  %v3463_v61 = vshrl.u32 %v8903_v56, %v3457_v58 }
 0x368   :  { %v8116_v50 = vmul.f32 %v3212_v29, %v3210_v37  ;;  %v3466_v15 = vshrl.u32 %v8885_v5, %v3457_v58  ;;  %v3309_v24 = vor.u32 %v3308_v23, %v3307_v12  ;;  %v3450_v6 = vor.u32 8388608, %v3449_v45 }
 0x369   :  { %v3401_v16 = vshll.u32 %v8113_v48, 30  ;;  %v3459_v32 = vshll.u32 %v8920_v26, %v3456_v34  ;;  %v3313_v40 = vor.u32 4788187, %v3312_v36  ;;  %v3455_v17 = vshrl.u32 %v3454_v13, 5  ;;  %v8146_v36 = vpop.f32.mrf.mxu1 }
 0x36a   :  { %v3462_v27 = vshll.u32 %v8902_v51, %v3456_v34  ;;  %v3465_v2 = vshll.u32 %v8903_v56, %v3456_v34  ;;  %v3468_v41 = vshll.u32 %v8885_v5, %v3456_v34  ;;  %v3469_v11 = vshrl.u32 %v8901_v25, %v3457_v58 }
 0x36b   :  { %v8124_v47 = vsub.s32 %v3398_v44, %v3401_v16  ;;  %v3461_v57 = vor.u32 %v3460_v52, %v3459_v32  ;;  %v3471_v20 = vshll.u32 %v8901_v25, %v3456_v34  ;;  %v3472_v13 = vshrl.u32 %v8884_v63, %v3457_v58 }
 0x36c   :  { %v3464_v30 = vor.u32 %v3463_v61, %v3462_v27  ;;  %v3467_v14 = vor.u32 %v3466_v15, %v3465_v2  ;;  %vm2910_vm8 = vweird.f32 %v7331_v28  ;;  %4338 = vsinq.f32 %v3114_v21 }
 0x36d   :  { %v3214_v7 = vxor.u32 2147483648, %v8116_v50  ;;  %v3404_v8 = vsub.s32 0, %v8124_v47  ;;  %v3470_v62 = vor.u32 %v3469_v11, %v3468_v41  ;;  %vm3017_vm7 = vcmp.lt.s32.totalorder %v8002_v1, 2 }
 0x36e   :  { %v9011_v44 = vand.u32 2147483647, %v7655_v54  ;;  %v3316_v23 = vcvt.s32.f32 %v3309_v24  ;;  %v3473_v34 = vor.u32 %v3472_v13, %v3471_v20  ;;  %v3490_v43 = vshll.u32 %v3450_v6, 8  ;;  %v8150_v13 = vpop.f32.mrf.mxu1 }
 0x36f   :  { %v3549_v45 = vand.u32 2139095040, %v8128_v39  ;;  %v3314_v29 = vand.u32 2147483647, %v3313_v40  ;;  %v4083_v21 = vmin.u32 %v3404_v8, %v8124_v47  ;;  %vm3474_vm12 = vcmp.lt.s32.totalorder %v3455_v17, 1 }
 0x370   :  { %vm8140_vm11 = vcmp.le.f32.partialorder %v9011_v44, 0.7853982  ;;  %vm3477_vm5 = vcmp.lt.s32.totalorder %v3455_v17, 4  ;;  %v3458_v12 = vshrl.u32 %v8920_v26, %v3457_v58  ;;  %v3482_v61 = vsel %vm3474_vm12, %v3461_v57, %v3464_v30 }
 0x371   :  { %v3479_v52 = vsel %vm3477_vm5, %v3467_v14, 2102212464  ;;  %v3483_v15 = vsel %vm3477_vm5, %v3470_v62, 920167782  ;;  %v3406_v16 = vclz %v4083_v21  ;;  %vm3475_vm14 = vcmp.lt.s32.totalorder %v3455_v17, 2 }
 0x372   :  { %vm3476_vm15 = vcmp.lt.s32.totalorder %v3455_v17, 3  ;;  %v3486_v24 = vsel %vm3474_vm12, %v3464_v30, %v3467_v14  ;;  %v3478_v32 = vsel %vm3474_vm12, %v3458_v12, %v3461_v57  ;;  %v3487_v27 = vsel %vm3477_vm5, %v3473_v34, 1326507024 }
 0x373   :  { %v3484_v6 = vsel %vm3476_vm15, %v3467_v14, %v3483_v15  ;;  %v3550_v2 = vshrl.u32 %v3549_v45, 23  ;;  %v4084_v40 = vadd.s32 4294967294, %v3406_v16  ;;  %v3480_v41 = vsel %vm3476_vm15, %v3464_v30, %v3479_v52  ;;  %v8186_v15 = vpop.f32.mrf.mxu1 }
 0x374   :  { %v3485_v11 = vsel %vm3475_vm14, %v3482_v61, %v3484_v6  ;;  %v3488_v20 = vsel %vm3476_vm15, %v3470_v62, %v3487_v27  ;;  %vm3014_vm1 = vweird.f32 %v7423_v38  ;;  %vm3236_vm0 = vcmp.lt.s32.totalorder %v7750_v46, 0  ;;  %v8159_v57 = vpop.eup %4336 }
 0x375   :  { %v3317_v58 = vmul.f32 %v3316_v23, %v3314_v29  ;;  %v3489_v8 = vsel %vm3475_vm14, %v3486_v24, %v3488_v20  ;;  %v8155_v44 = vmul.u32.u64.low %v3490_v43, %v3485_v11  ;;  %v8156_v21 = vmul.u32.u64.high %v3490_v43, %v3485_v11, %v8155_v44  ;;  %v8199_v11 = vpop.f32.mrf.mxu1 }
 0x376   :  { %vm4085_vm9 = vcmp.lt.s32.totalorder %v4084_v40, 0  ;;  %v8161_v30 = vmul.u32.u64.low %v3490_v43, %v3489_v8  ;;  %v8162_v14 = vmul.u32.u64.high %v3490_v43, %v3489_v8, %v8161_v30  ;;  %v4090_v62 = vadd.s32 4294967169, %v3550_v2 }
 0x377   :  { %v8167_v34 = vsel %vm2910_vm8, nan, %v8090_v22  ;;  %v8170_v23 = vand.u32 3, %v8095_v3  ;;  %v3409_v45 = vsel %vm4085_vm9, 0, %v4084_v40  ;;  %v3481_v29 = vsel %vm3475_vm14, %v3478_v32, %v3480_v41 }
 0x378   :  { %9014 = vst [vmem:[#allocation29_spill] sm:$0xff] %v8167_v34  ;;  %v3024_v12 = vsel %vm3017_vm7, %v8101_v4, %v8105_v35  ;;  %v3219_v52 = vsel %vm8140_vm11, 0, %v8110_v19  ;;  %v9015_v61 = vand.u32 2147483647, %v7750_v46  ;;  %v3414_v22 = vsub.s32 4294967266, %v3409_v45 }
 0x379   :  { %v3556_v3 = vadd.s32 1, %v4090_v62  ;;  %v3215_v17 = vsel %vm3132_vm6, %v3214_v7, %v8116_v50  ;;  %v3318_v1 = vxor.u32 2147483648, %v3317_v58  ;;  %v3500_v4 = vadd.s32 1, %v8156_v21  ;;  %v4339_v32 = vpop.eup %4338 }
 0x37a   :  { %vm8182_vm10 = vcmp.le.f32.partialorder %v9015_v61, 0.7853982  ;;  %v8866_v35 = vand.u32 2147483647, %v8128_v39  ;;  %v3410_v19 = vsub.s32 32, %v3409_v45  ;;  %v3415_v16 = vadd.s32 127, %v3414_v22 }
 0x37b   :  { %v3497_v24 = vmul.u32 %v3490_v43, %v3481_v29  ;;  %vm3499_vm4 = vc.u32 %v8162_v14, %v8155_v44  ;;  %v3126_v6 = vxor.u32 2147483648, %v8159_v57  ;;  %v3223_v27 = vadd.s32 3, %v3219_v52 }
 0x37c   :  { %v3501_v2 = vsel %vm3499_vm4, %v3500_v4, %v8156_v21  ;;  %vm3557_vm13 = vcmp.gt.s32.totalorder %v3556_v3, 0  ;;  %v3394_v50 = vadd.s32 %v8055_v60, %v8067_v53  ;;  %v3416_v7 = vshll.u32 %v3415_v16, 23 }
 0x37d   :  { %v3502_v40 = vadd.s32 %v3501_v2, %v3497_v24  ;;  %v3558_v41 = vsel %vm3557_vm13, %v3556_v3, 0  ;;  %vm3125_vm6 = vcmp.eq.s32.totalorder %v8170_v23, 2  ;;  %v3218_v43 = vsel %vm8140_vm11, %v7655_v54, %v3215_v17  ;;  %v8223_v3 = vpop.f32.mrf.mxu1 }
 0x37e   :  { %v3553_v20 = vand.u32 8388607, %v8866_v35  ;;  %v3560_v8 = vand.u32 31, %v3558_v41  ;;  %v8209_v21 = vsel %vm3014_vm1, nan, %v3024_v12  ;;  %vm3122_vm2 = vcmp.eq.s32.totalorder %v8170_v23, 0  ;;  %v8221_v12 = vpop.f32.mrf.mxu0 }
 0x37f   :  { %9018 = vst [vmem:[#allocation30_spill] sm:$0xff] %v8209_v21  ;;  %v3319_v60 = vsel %vm3236_vm0, %v3318_v1, %v3317_v58  ;;  %v3412_v53 = vshrl.u32 %v3394_v50, %v3410_v19  ;;  %v3503_v30 = vadd.s32 536870912, %v3502_v40  ;;  %v3123_v62 = vxor.u32 2147483648, %v4339_v32 }
 0x380   :  { %v8214_v29 = vsel %vm3125_vm6, %v3126_v6, %v4339_v32  ;;  %v8216_v37 = vand.u32 3, %v3223_v27  ;;  %v3561_v52 = vsub.s32 32, %v3560_v8  ;;  %4340 = vcosq.f32 %v3218_v43 }
 0x381   :  { %v3411_v61 = vshll.u32 %v8124_v47, %v3409_v45  ;;  %v3417_v22 = vor.u32 4788187, %v3416_v7  ;;  %v8219_v38 = vshrl.u32 %v3503_v30, 30  ;;  %4342 = vsinq.f32 %v3218_v43  ;;  %v8243_v43 = vpop.f32.mrf.mxu1 }
 0x382   :  { %v3320_v58 = vsub.s32 4, %v8006_v31  ;;  %v8229_v17 = vsel %vm8182_vm10, %v7750_v46, %v3319_v60  ;;  %v3554_v1 = vor.u32 8388608, %v3553_v20  ;;  %v3564_v47 = vshrl.u32 %v8902_v51, %v3561_v52 }
 0x383   :  { %v3413_v4 = vor.u32 %v3412_v53, %v3411_v61  ;;  %v3505_v19 = vshll.u32 %v8219_v38, 30  ;;  %v3567_v45 = vshrl.u32 %v8903_v56, %v3561_v52  ;;  %v8234_v16 = vshrl.u32 %v3558_v41, 5 }
 0x384   :  { %v3563_v24 = vshll.u32 %v8920_v26, %v3560_v8  ;;  %v3570_v32 = vshrl.u32 %v8885_v5, %v3561_v52  ;;  %v3653_v6 = vand.u32 2139095040, %v8221_v12  ;;  %v3418_v27 = vand.u32 2147483647, %v3417_v22 }
 0x385   :  { %v8239_v2 = vsub.s32 %v3502_v40, %v3505_v19  ;;  %v3566_v50 = vshll.u32 %v8902_v51, %v3560_v8  ;;  %v3573_v7 = vshrl.u32 %v8901_v25, %v3561_v52  ;;  %v3569_v20 = vshll.u32 %v8903_v56, %v3560_v8 }
 0x386   :  { %v3572_v41 = vshll.u32 %v8885_v5, %v3560_v8  ;;  %v3575_v60 = vshll.u32 %v8901_v25, %v3560_v8  ;;  %v3576_v53 = vshrl.u32 %v8884_v63, %v3561_v52  ;;  %v3420_v30 = vcvt.s32.f32 %v3413_v4 }
 0x387   :  { %v3508_v61 = vsub.s32 0, %v8239_v2  ;;  %v3565_v22 = vor.u32 %v3564_v47, %v3563_v24  ;;  %v3568_v40 = vor.u32 %v3567_v45, %v3566_v50  ;;  %v3124_v19 = vsel %vm3122_vm2, %v8159_v57, %v3123_v62  ;;  %v8259_v47 = vpop.f32.mrf.mxu1 }
 0x388   :  { %v3571_v35 = vor.u32 %v3570_v32, %v3569_v20  ;;  %v3574_v49 = vor.u32 %v3573_v7, %v3572_v41  ;;  %v3577_v21 = vor.u32 %v3576_v53, %v3575_v60  ;;  %vm3121_vm3 = vcmp.lt.s32.totalorder %v8170_v23, 2 }
 0x389   :  { %v3321_v8 = vsel %vm3236_vm0, %v3320_v58, %v8006_v31  ;;  %4344 = vcosq.f32 %v8229_v17  ;;  %v3421_v4 = vmul.f32 %v3420_v30, %v3418_v27  ;;  %v4087_v34 = vmin.u32 %v3508_v61, %v8239_v2  ;;  %v8281_v20 = vpop.f32.mrf.mxu1 }
 0x38a   :  { %vm3340_vm8 = vcmp.lt.s32.totalorder %v7884_v18, 0  ;;  %v3562_v57 = vshrl.u32 %v8920_v26, %v3561_v52  ;;  %vm3578_vm7 = vcmp.lt.s32.totalorder %v8234_v16, 1  ;;  %v3594_v62 = vshll.u32 %v3554_v1, 8 }
 0x38b   :  { %v3654_v45 = vshrl.u32 %v3653_v6, 23  ;;  %v3510_v24 = vclz %v4087_v34  ;;  %vm3580_vm11 = vcmp.lt.s32.totalorder %v8234_v16, 3  ;;  %vm3581_vm12 = vcmp.lt.s32.totalorder %v8234_v16, 4 }
 0x38c   :  { %v3586_v31 = vsel %vm3578_vm7, %v3565_v22, %v3568_v40  ;;  %v3583_v58 = vsel %vm3581_vm12, %v3571_v35, 2102212464  ;;  %v3587_v32 = vsel %vm3581_vm12, %v3574_v49, 920167782  ;;  %v3590_v27 = vsel %vm3578_vm7, %v3568_v40, %v3571_v35 }
 0x38d   :  { %v3591_v50 = vsel %vm3581_vm12, %v3577_v21, 1326507024  ;;  %v9019_v52 = vand.u32 2147483647, %v7884_v18  ;;  %v3422_v34 = vxor.u32 2147483648, %v3421_v4  ;;  %vm3579_vm14 = vcmp.lt.s32.totalorder %v8234_v16, 2  ;;  %v4341_v41 = vpop.eup %4340 }
 0x38e   :  { %v3588_v1 = vsel %vm3580_vm11, %v3571_v35, %v3587_v32  ;;  %v3592_v6 = vsel %vm3580_vm11, %v3574_v49, %v3591_v50  ;;  %vm3118_vm15 = vweird.f32 %v7541_v59  ;;  %v4088_v21 = vadd.s32 4294967294, %v3510_v24  ;;  %v4343_v61 = vpop.eup %4342 }
 0x38f   :  { %vm8272_vm5 = vcmp.le.f32.partialorder %v9019_v52, 0.7853982  ;;  %v3589_v60 = vsel %vm3579_vm14, %v3586_v31, %v3588_v1  ;;  %v3593_v53 = vsel %vm3579_vm14, %v3590_v27, %v3592_v6  ;;  %v4094_v30 = vadd.s32 4294967169, %v3654_v45 }
 0x390   :  { %v3582_v35 = vsel %vm3578_vm7, %v3562_v57, %v3565_v22  ;;  %v3584_v49 = vsel %vm3580_vm11, %v3568_v40, %v3583_v58  ;;  %v8292_v32 = vmul.u32.u64.low %v3594_v62, %v3593_v53  ;;  %v8293_v50 = vmul.u32.u64.high %v3594_v62, %v3593_v53, %v8292_v32  ;;  %v8305_v40 = vpop.f32.mrf.mxu1 }
 0x391   :  { %v3323_v24 = vsel %vm8182_vm10, 0, %v3321_v8  ;;  %v3424_v52 = vsub.s32 4, %v8113_v48  ;;  %v8298_v31 = vmul.u32.u64.low %v3594_v62, %v3589_v60  ;;  %v8299_v1 = vmul.u32.u64.high %v3594_v62, %v3589_v60, %v8298_v31 }
 0x392   :  { %vm3226_vm1 = vcmp.eq.s32.totalorder %v8216_v37, 0  ;;  %vm3229_vm0 = vcmp.eq.s32.totalorder %v8216_v37, 2  ;;  %v8868_v22 = vand.u32 2147483647, %v8221_v12  ;;  %v3660_v57 = vadd.s32 1, %v4094_v30 }
 0x393   :  { %v3128_v28 = vsel %vm3121_vm3, %v3124_v19, %v8214_v29  ;;  %vm3444_vm9 = vcmp.lt.s32.totalorder %v8008_v10, 0  ;;  %vm4089_vm10 = vcmp.lt.s32.totalorder %v4088_v21, 0  ;;  %v3585_v8 = vsel %vm3579_vm14, %v3582_v35, %v3584_v49 }
 0x394   :  { %v3230_v45 = vxor.u32 2147483648, %v4341_v41  ;;  %v3327_v58 = vadd.s32 3, %v3323_v24  ;;  %v3423_v27 = vsel %vm3340_vm8, %v3422_v34, %v3421_v4  ;;  %vm3603_vm4 = vc.u32 %v8293_v50, %v8298_v31  ;;  %v8327_v4 = vpop.f32.mrf.mxu1 }
 0x395   :  { %v3227_v6 = vxor.u32 2147483648, %v4343_v61  ;;  %v8320_v23 = vsel %vm3340_vm8, %v3424_v52, %v8113_v48  ;;  %v3604_v29 = vadd.s32 1, %v8299_v1  ;;  %vm3661_vm13 = vcmp.gt.s32.totalorder %v3660_v57, 0  ;;  %9022 = vst [vmem:[#allocation31_spill] sm:$0xff] %v8327_v4 }
 0x396   :  { %v8323_v19 = vsel %vm4089_vm10, 0, %v4088_v21  ;;  %v3601_v16 = vmul.u32 %v3594_v62, %v3585_v8  ;;  %v3657_v60 = vand.u32 8388607, %v8868_v22  ;;  %v3662_v53 = vsel %vm3661_vm13, %v3660_v57, 0  ;;  %v8329_v34 = vpop.eup %4344  ;;  %v8357_v8 = vpop.f32.mrf.mxu0 }
 0x397   :  { %v3426_v30 = vsel %vm8272_vm5, %v7884_v18, %v3423_v27  ;;  %v3528_v48 = vsub.s32 4, %v8219_v38  ;;  %v3605_v35 = vsel %vm3603_vm4, %v3604_v29, %v8299_v1  ;;  %v3664_v49 = vand.u32 31, %v3662_v53 }
 0x398   :  { %v8338_v62 = vsel %vm3118_vm15, nan, %v3128_v28  ;;  %v8342_v21 = vsel %vm3229_vm0, %v3230_v45, %v4343_v61  ;;  %v8344_v32 = vand.u32 3, %v3327_v58  ;;  %v3606_v24 = vadd.s32 %v3605_v35, %v3601_v16  ;;  %v8359_v45 = vpop.f32.mrf.mxu1 }
 0x399   :  { %9023 = vst [vmem:[#allocation32_spill] sm:$0xff] %v8338_v62  ;;  %v8348_v52 = vsel %vm3226_vm1, %v4341_v41, %v3227_v6  ;;  %4346 = vsinq.f32 %v8229_v17  ;;  %v3518_v1 = vsub.s32 4294967266, %v8323_v19  ;;  %v3665_v57 = vsub.s32 32, %v3664_v49  ;;  %9024 = vst [vmem:[#allocation33_spill] sm:$0xff] %v8359_v45 }
 0x39a   :  { %4348 = vcosq.f32 %v3426_v30  ;;  %v3498_v61 = vadd.s32 %v8155_v44, %v8162_v14  ;;  %v3607_v28 = vadd.s32 536870912, %v3606_v24  ;;  %v8365_v17 = vsel %vm3444_vm9, %v3528_v48, %v8219_v38 }
 0x39b   :  { %4350 = vsinq.f32 %v3426_v30  ;;  %v3658_v58 = vor.u32 8388608, %v3657_v60  ;;  %v3668_v6 = vshrl.u32 %v8902_v51, %v3665_v57  ;;  %v3671_v44 = vshrl.u32 %v8903_v56, %v3665_v57 }
 0x39c   :  { %v8367_v27 = vshrl.u32 %v3607_v28, 30  ;;  %v3674_v14 = vshrl.u32 %v8885_v5, %v3665_v57  ;;  %v3514_v29 = vsub.s32 32, %v8323_v19  ;;  %v3519_v16 = vadd.s32 127, %v3518_v1  ;;  %v8380_v28 = vpop.f32.mrf.mxu1 }
 0x39d   :  { %v8373_v35 = vshrl.u32 %v3662_v53, 5  ;;  %v3757_v30 = vand.u32 2139095040, %v8357_v8  ;;  %v3667_v38 = vshll.u32 %v8920_v26, %v3664_v49  ;;  %v3670_v60 = vshll.u32 %v8902_v51, %v3664_v49  ;;  %9025 = vst [vmem:[#allocation34_spill] sm:$0xff] %v8380_v28 }
 0x39e   :  { %v3609_v22 = vshll.u32 %v8367_v27, 30  ;;  %v3673_v48 = vshll.u32 %v8903_v56, %v3664_v49  ;;  %v3676_v41 = vshll.u32 %v8885_v5, %v3664_v49  ;;  %v3677_v59 = vshrl.u32 %v8901_v25, %v3665_v57 }
 0x39f   :  { %v3679_v1 = vshll.u32 %v8901_v25, %v3664_v49  ;;  %v3680_v53 = vshrl.u32 %v8884_v63, %v3665_v57  ;;  %vm3225_vm6 = vcmp.lt.s32.totalorder %v8216_v37, 2  ;;  %v3669_v33 = vor.u32 %v3668_v6, %v3667_v38 }
 0x3a0   :  { %v8387_v62 = vsub.s32 %v3606_v24, %v3609_v22  ;;  %v3672_v55 = vor.u32 %v3671_v44, %v3670_v60  ;;  %v3675_v9 = vor.u32 %v3674_v14, %v3673_v48  ;;  %v3515_v18 = vshll.u32 %v8239_v2, %v8323_v19  ;;  %v8401_v44 = vpop.f32.mrf.mxu1 }
 0x3a1   :  { %v3678_v46 = vor.u32 %v3677_v59, %v3676_v41  ;;  %v3681_v42 = vor.u32 %v3680_v53, %v3679_v1  ;;  %v8391_v28 = vshll.u32 %v3658_v58, 8  ;;  %v9026_v45 = vand.u32 2147483647, %v8008_v10 }
 0x3a2   :  { %v3520_v4 = vshll.u32 %v3519_v16, 23  ;;  %v3612_v22 = vsub.s32 0, %v8387_v62  ;;  %v8873_v24 = vand.u32 2147483647, %v8357_v8  ;;  %v3758_v6 = vshrl.u32 %v3757_v30, 23  ;;  %v8419_v1 = vpop.f32.mrf.mxu1 }
 0x3a3   :  { %vm8395_vm2 = vcmp.le.f32.partialorder %v9026_v45, 0.7853982  ;;  %vm3333_vm3 = vcmp.eq.s32.totalorder %v8344_v32, 2  ;;  %v3666_v2 = vshrl.u32 %v8920_v26, %v3665_v57  ;;  %vm3682_vm8 = vcmp.lt.s32.totalorder %v8373_v35, 1 }
 0x3a4   :  { %vm3684_vm7 = vcmp.lt.s32.totalorder %v8373_v35, 3  ;;  %vm3685_vm11 = vcmp.lt.s32.totalorder %v8373_v35, 4  ;;  %v4091_v19 = vmin.u32 %v3612_v22, %v8387_v62  ;;  %v3690_v45 = vsel %vm3682_vm8, %v3669_v33, %v3672_v55 }
 0x3a5   :  { %v3687_v59 = vsel %vm3685_vm11, %v3675_v9, 2102212464  ;;  %v3691_v41 = vsel %vm3685_vm11, %v3678_v46, 920167782  ;;  %v3516_v58 = vshrl.u32 %v3498_v61, %v3514_v29  ;;  %v3694_v57 = vsel %vm3682_vm8, %v3672_v55, %v3675_v9 }
 0x3a6   :  { %v3692_v14 = vsel %vm3684_vm7, %v3675_v9, %v3691_v41  ;;  %v3695_v16 = vsel %vm3685_vm11, %v3681_v42, 1326507024  ;;  %v4347_v30 = vpop.eup %4346  ;;  %vm3330_vm12 = vcmp.eq.s32.totalorder %v8344_v32, 0  ;;  %v3521_v38 = vor.u32 4788187, %v3520_v4 }
 0x3a7   :  { %v3614_v60 = vclz %v4091_v19  ;;  %vm3683_vm14 = vcmp.lt.s32.totalorder %v8373_v35, 2  ;;  %v3686_v48 = vsel %vm3682_vm8, %v3666_v2, %v3669_v33  ;;  %v8421_v61 = vpop.eup %4348  ;;  %vm3222_vm15 = vweird.f32 %v7655_v54 }
 0x3a8   :  { %v3688_v9 = vsel %vm3684_vm7, %v3672_v55, %v3687_v59  ;;  %v3693_v42 = vsel %vm3683_vm14, %v3690_v45, %v3692_v14  ;;  %v3696_v4 = vsel %vm3684_vm7, %v3678_v46, %v3695_v16  ;;  %v4098_v29 = vadd.s32 4294967169, %v3758_v6  ;;  %v8430_v53 = vpop.eup %4350  ;;  %v8453_v16 = vpop.f32.mrf.mxu1 }
 0x3a9   :  { %v4092_v22 = vadd.s32 4294967294, %v3614_v60  ;;  %v3697_v33 = vsel %vm3683_vm14, %v3694_v57, %v3696_v4  ;;  %v8435_v2 = vmul.u32.u64.low %v8391_v28, %v3693_v42  ;;  %v8436_v19 = vmul.u32.u64.high %v8391_v28, %v3693_v42, %v8435_v2 }
 0x3aa   :  { %v3232_v55 = vsel %vm3225_vm6, %v8348_v52, %v8342_v21  ;;  %v3517_v59 = vor.u32 %v3516_v58, %v3515_v18  ;;  %v8444_v46 = vmul.u32.u64.low %v8391_v28, %v3697_v33  ;;  %v8445_v6 = vmul.u32.u64.high %v8391_v28, %v3697_v33, %v8444_v46 }
 0x3ab   :  { %v9029_v45 = vsel %vm8272_vm5, 0, %v8320_v23  ;;  %vm4093_vm1 = vcmp.lt.s32.totalorder %v4092_v22, 0  ;;  %v3689_v14 = vsel %vm3683_vm14, %v3686_v48, %v3688_v9  ;;  %v3764_v57 = vadd.s32 1, %v4098_v29  ;;  %v8469_v29 = vpop.f32.mrf.mxu1 }
 0x3ac   :  { %v3431_v41 = vadd.s32 3, %v9029_v45  ;;  %v3331_v60 = vxor.u32 2147483648, %v4347_v30  ;;  %v3522_v37 = vand.u32 2147483647, %v3521_v38  ;;  %v3531_v18 = vsel %vm8395_vm2, 0, %v8365_v17 }
 0x3ad   :  { %v3617_v21 = vsel %vm4093_vm1, 0, %v4092_v22  ;;  %v9030_v52 = vxor.u32 2147483648, %v8329_v34  ;;  %v3708_v58 = vadd.s32 1, %v8436_v19  ;;  %v3761_v35 = vand.u32 8388607, %v8873_v24  ;;  %v8489_v54 = vpop.f32.mrf.mxu1 }
 0x3ae   :  { %v3622_v23 = vsub.s32 4294967266, %v3617_v21  ;;  %v3524_v48 = vcvt.s32.f32 %v3517_v59  ;;  %v3705_v9 = vmul.u32 %v8391_v28, %v3689_v14  ;;  %vm3707_vm5 = vc.u32 %v8445_v6, %v8435_v2 }
 0x3af   :  { %v3335_v7 = vsel %vm3333_vm3, %v9030_v52, %v4347_v30  ;;  %vm3765_vm0 = vcmp.gt.s32.totalorder %v3764_v57, 0  ;;  %v3535_v17 = vadd.s32 3, %v3531_v18  ;;  %v3709_v42 = vsel %vm3707_vm5, %v3708_v58, %v8436_v19  ;;  %v8505_v24 = vpop.f32.mrf.mxu1 }
 0x3b0   :  { %v3623_v38 = vadd.s32 127, %v3622_v23  ;;  %v3766_v4 = vsel %vm3765_vm0, %v3764_v57, 0  ;;  %v3332_v30 = vsel %vm3330_vm12, %v8329_v34, %v3331_v60  ;;  %v8474_v22 = vmul.f32 %v3524_v48, %v3522_v37 }
 0x3b1   :  { %v3710_v33 = vadd.s32 %v3709_v42, %v3705_v9  ;;  %v3768_v59 = vand.u32 31, %v3766_v4  ;;  %v8478_v28 = vsel %vm3222_vm15, nan, %v3232_v55  ;;  %vm3329_vm10 = vcmp.lt.s32.totalorder %v8344_v32, 2 }
 0x3b2   :  { %9031 = vst [vmem:[#allocation35_spill] sm:$0xff] %v8478_v28  ;;  %v3618_v46 = vsub.s32 32, %v3617_v21  ;;  %v3762_v45 = vor.u32 8388608, %v3761_v35  ;;  %v8481_v19 = vand.u32 3, %v3431_v41  ;;  %v424_v18 = vlaneseq  ;;  %v8518_v28 = vpop.f32.mrf.mxu1 }
 0x3b3   :  { %v3711_v14 = vadd.s32 536870912, %v3710_v33  ;;  %v3769_v57 = vsub.s32 32, %v3768_v59  ;;  %v8483_v52 = vsel %vm3329_vm10, %v3332_v30, %v3335_v7  ;;  %v8485_v34 = vand.u32 3, %v3535_v17 }
 0x3b4   :  { %v3602_v60 = vadd.s32 %v8298_v31, %v8293_v50  ;;  %v3624_v37 = vshll.u32 %v3623_v38, 23  ;;  %v3619_v58 = vshll.u32 %v8387_v62, %v3617_v21  ;;  %v8498_v48 = vshll.u32 %v3762_v45, 8 }
 0x3b5   :  { %v8494_v23 = vshrl.u32 %v3711_v14, 30  ;;  %v3772_v31 = vshrl.u32 %v8902_v51, %v3769_v57  ;;  %v3775_v9 = vshrl.u32 %v8903_v56, %v3769_v57  ;;  %v425_v17 = vshrl.u32 %v424_v18, 7 }
 0x3b6   :  { %v3620_v7 = vshrl.u32 %v3602_v60, %v3618_v46  ;;  %v3625_v38 = vor.u32 4788187, %v3624_v37  ;;  %v3767_v42 = vshrl.u32 %v3766_v4, 5  ;;  %v3777_v30 = vshll.u32 %v8903_v56, %v3768_v59 }
 0x3b7   :  { %v3713_v50 = vshll.u32 %v8494_v23, 30  ;;  %v3778_v14 = vshrl.u32 %v8885_v5, %v3769_v57  ;;  %v3771_v21 = vshll.u32 %v8920_v26, %v3768_v59  ;;  %v3774_v46 = vshll.u32 %v8902_v51, %v3768_v59 }
 0x3b8   :  { %v3781_v45 = vshrl.u32 %v8901_v25, %v3769_v57  ;;  %v3621_v60 = vor.u32 %v3620_v7, %v3619_v58  ;;  %v3780_v18 = vshll.u32 %v8885_v5, %v3768_v59  ;;  %v3784_v4 = vshrl.u32 %v8884_v63, %v3769_v57 }
 0x3b9   :  { %v8507_v62 = vsub.s32 %v3710_v33, %v3713_v50  ;;  %v3779_v35 = vor.u32 %v3778_v14, %v3777_v30  ;;  %v3773_v37 = vor.u32 %v3772_v31, %v3771_v21  ;;  %v3776_v55 = vor.u32 %v3775_v9, %v3774_v46 }
 0x3ba   :  { %v3783_v32 = vshll.u32 %v8901_v25, %v3768_v59  ;;  %v3626_v33 = vand.u32 2147483647, %v3625_v38  ;;  %v3706_v50 = vadd.s32 %v8435_v2, %v8445_v6  ;;  %v3782_v41 = vor.u32 %v3781_v45, %v3780_v18  ;;  %v422_v2 = vld [vmem:[%s8813_s3] sm:$0x3]  ;;  %s4461_s3 = smov [#allocation2]  }
 0x3bb   :  { %v3716_v56 = vsub.s32 0, %v8507_v62  ;;  %v426_v51 = vsub.s32 0, %v425_v17  ;;  %v3770_v5 = vshrl.u32 %v8920_v26, %v3769_v57  ;;  %vm3789_vm4 = vcmp.lt.s32.totalorder %v3767_v42, 4  ;;  %s3927_s27 = sshll.u32 %s4461_s3, 4  ;;  %s3928_s27 = int_to_ptr.vmem [resolvable:$true] %s3927_s27 }
 0x3bc   :  { %v3785_v7 = vor.u32 %v3784_v4, %v3783_v32  ;;  %v3628_v63 = vcvt.s32.f32 %v3621_v60  ;;  %vm3786_vm13 = vcmp.lt.s32.totalorder %v3767_v42, 1  ;;  %v3791_v31 = vsel %vm3789_vm4, %v3779_v35, 2102212464  ;;  %v8529_v32 = vpop.f32.mrf.mxu1  ;;  %s4432_s2 = scalar_lea.vmem %s3928_s27, 4096  ;;  %p4437_p1 = scmp.lt.s32.totalorder %s3928_s27, %s3928_s27 }
 0x3bd   :  { %v4095_v58 = vmin.u32 %v3716_v56, %v8507_v62  ;;  %v430_v9 = vsub.s32 1, %v425_v17  ;;  %vm3788_vm6 = vcmp.lt.s32.totalorder %v3767_v42, 3  ;;  %v3790_v59 = vsel %vm3786_vm13, %v3770_v5, %v3773_v37  ;;  %p4433_p0 = scmp.ne.s32.totalorder %s3928_s27, %s4432_s2  ;;  %p4438_p2 = scmp.lt.s32.totalorder %s4432_s2, %s4432_s2 }
 0x3be   :  { %v3794_v38 = vsel %vm3786_vm13, %v3773_v37, %v3776_v55  ;;  %v8526_v6 = vmul.f32 %v3628_v63, %v3626_v33  ;;  %v3792_v30 = vsel %vm3788_vm6, %v3776_v55, %v3791_v31  ;;  %v3795_v26 = vsel %vm3789_vm4, %v3782_v41, 920167782 }
 0x3bf   :  { %v3718_v25 = vclz %v4095_v58  ;;  %v3798_v57 = vsel %vm3786_vm13, %v3776_v55, %v3779_v35  ;;  %vm3787_vm3 = vcmp.lt.s32.totalorder %v3767_v42, 2  ;;  %v3796_v21 = vsel %vm3788_vm6, %v3779_v35, %v3795_v26  ;;  %v8545_v42 = vpop.f32.mrf.mxu1  ;;  %p4439_p3 = por %p4438_p2, %p4437_p1 }
 0x3c0   :  { %v3799_v17 = vsel %vm3789_vm4, %v3785_v7, 1326507024  ;;  %v3793_v46 = vsel %vm3787_vm3, %v3790_v59, %v3792_v30  ;;  %v3797_v45 = vsel %vm3787_vm3, %v3794_v38, %v3796_v21  ;;  %v8532_v18 = vrot.slane %v422_v2, %v426_v51 }
 0x3c1   :  { %v4096_v14 = vadd.s32 4294967294, %v3718_v25  ;;  %v3800_v60 = vsel %vm3788_vm6, %v3782_v41, %v3799_v17  ;;  %v8535_v56 = vmul.u32.u64.low %v8498_v48, %v3797_v45  ;;  %v8536_v37 = vmul.u32.u64.high %v8498_v48, %v3797_v45, %v8535_v56  ;;  %p4440_p4 = pnand %p4439_p3, %p4433_p0 }
 0x3c2   :  { %v3801_v4 = vsel %vm3787_vm3, %v3798_v57, %v3800_v60  ;;  %v434_v35 = vmul.f32 %v8532_v18, %v8130_v0  ;;  %vm3437_vm7 = vcmp.eq.s32.totalorder %v8481_v19, 2  ;;  %v3809_v5 = vmul.u32 %v8498_v48, %v3793_v46 }
 0x3c3   :  { %vm4097_vm8 = vcmp.lt.s32.totalorder %v4096_v14, 0  ;;  %v8540_v33 = vmul.u32.u64.low %v8498_v48, %v3801_v4  ;;  %v8541_v58 = vmul.u32.u64.high %v8498_v48, %v3801_v4, %v8540_v33  ;;  %v8549_v7 = vrot.slane %v422_v2, %v430_v9  ;;  %v8565_v9 = vpop.f32.mrf.mxu1 }
 0x3c4   :  { %v3721_v55 = vsel %vm4097_vm8, 0, %v4096_v14  ;;  %vm3548_vm11 = vcmp.lt.s32.totalorder %v8128_v39, 0  ;;  %v466_v31 = vmul.f32 1.442695, %v434_v35  ;;  %v436_v25 = vmul.f32 %v8532_v18, %v8150_v13 }
 0x3c5   :  { %v3722_v41 = vsub.s32 32, %v3721_v55  ;;  %v3726_v51 = vsub.s32 4294967266, %v3721_v55  ;;  %v3723_v63 = vshll.u32 %v8507_v62, %v3721_v55  ;;  %v438_v0 = vmul.f32 %v8532_v18, %v8199_v11  ;;  %v8591_v35 = vpop.f32.mrf.mxu1 }
 0x3c6   :  { %vm3434_vm12 = vcmp.eq.s32.totalorder %v8481_v19, 0  ;;  %v3812_v30 = vadd.s32 1, %v8536_v37  ;;  %v435_v48 = vmul.f32 %v8549_v7, %v8146_v36  ;;  %vm3811_vm14 = vc.u32 %v8541_v58, %v8535_v56 }
 0x3c7   :  { %v3724_v59 = vshrl.u32 %v3706_v50, %v3722_v41  ;;  %v3727_v38 = vadd.s32 127, %v3726_v51  ;;  %4352 = vpow2.f32 %v466_v31  ;;  %v470_v62 = vmul.f32 1.442695, %v436_v25 }
 0x3c8   :  { %v440_v13 = vmul.f32 %v8532_v18, %v8243_v43  ;;  %v9032_v11 = vand.u32 2147483647, %v8128_v39  ;;  %v3813_v36 = vsel %vm3811_vm14, %v3812_v30, %v8536_v37  ;;  %v468_v57 = vmul.f32 1.442695, %v435_v48 }
 0x3c9   :  { %v3725_v2 = vor.u32 %v3724_v59, %v3723_v63  ;;  %v3728_v26 = vshll.u32 %v3727_v38, 23  ;;  %vm3652_vm1 = vcmp.lt.s32.totalorder %v8221_v12, 0  ;;  %v3814_v14 = vadd.s32 %v3813_v36, %v3809_v5  ;;  %v9042_v36 = vld [vmem:[#allocation31_spill] sm:$0xff] }
 0x3ca   :  { %vm8569_vm15 = vcmp.le.f32.partialorder %v9032_v11, 0.7853982  ;;  %4354 = vpow2.f32 %v470_v62  ;;  %v437_v43 = vmul.f32 %v8549_v7, %v8186_v15  ;;  %v474_v21 = vmul.f32 1.442695, %v438_v0 }
 0x3cb   :  { %v3630_v17 = vxor.u32 2147483648, %v8526_v6  ;;  %v3729_v46 = vor.u32 4788187, %v3728_v26  ;;  %4356 = vpow2.f32 %v468_v57  ;;  %v439_v45 = vmul.f32 %v8549_v7, %v8223_v3 }
 0x3cc   :  { %v9035_v60 = vxor.u32 2147483648, %v8474_v22  ;;  %v9036_v37 = vand.u32 2147483647, %v8221_v12  ;;  %v3815_v15 = vadd.s32 536870912, %v3814_v14  ;;  %v472_v33 = vmul.f32 1.442695, %v437_v43 }
 0x3cd   :  { %4358 = vpow2.f32 %v474_v21  ;;  %v3730_v41 = vand.u32 2147483647, %v3729_v46  ;;  %v3732_v51 = vcvt.s32.f32 %v3725_v2  ;;  %v476_v3 = vmul.f32 1.442695, %v439_v45  ;;  %v9043_v21 = vld [vmem:[#allocation33_spill] sm:$0xff] }
 0x3ce   :  { %v3527_v4 = vsel %vm3444_vm9, %v9035_v60, %v8474_v22  ;;  %vm8587_vm5 = vcmp.le.f32.partialorder %v9036_v37, 0.7853982  ;;  %v441_v5 = vmul.f32 %v8549_v7, %v8259_v47  ;;  %v9039_v22 = vxor.u32 2147483648, %v8421_v61  ;;  %v9044_v37 = vld [vmem:[#allocation34_spill] sm:$0xff] }
 0x3cf   :  { %v8602_v31 = vshrl.u32 %v3815_v15, 30  ;;  %4360 = vpow2.f32 %v472_v33  ;;  %v478_v25 = vmul.f32 1.442695, %v440_v13  ;;  %v3631_v0 = vsel %vm3548_vm11, %v3630_v17, %v8526_v6  ;;  %v8618_v13 = vpop.f32.mrf.mxu1 }
 0x3d0   :  { %v8600_v63 = vsel %vm3437_vm7, %v9039_v22, %v8430_v53  ;;  %v3733_v59 = vmul.f32 %v3732_v51, %v3730_v41  ;;  %4362 = vpow2.f32 %v476_v3  ;;  %v480_v38 = vmul.f32 1.442695, %v441_v5  ;;  %v9045_v41 = vld [vmem:[#allocation6_spill] sm:$0xff] }
 0x3d1   :  { %v9040_v47 = vxor.u32 2147483648, %v8430_v53  ;;  %v3530_v48 = vsel %vm8395_vm2, %v8008_v10, %v3527_v4  ;;  %v3817_v62 = vshll.u32 %v8602_v31, 30  ;;  %4364 = vpow2.f32 %v478_v25  ;;  %v8647_v46 = vpop.f32.mrf.mxu1 }
 0x3d2   :  { %v9041_v6 = vsub.s32 4, %v8367_v27  ;;  %v3734_v11 = vxor.u32 2147483648, %v3733_v59  ;;  %4366 = vpow2.f32 %v480_v38  ;;  %v3634_v49 = vsel %vm8569_vm15, %v8128_v39, %v3631_v0 }
 0x3d3   :  { %v8612_v30 = vsel %vm3434_vm12, %v8421_v61, %v9040_v47  ;;  %v442_v61 = vmul.f32 %v8532_v18, %v8281_v20  ;;  %v8632_v2 = vsub.s32 %v3814_v14, %v3817_v62  ;;  %v443_v26 = vmul.f32 %v8549_v7, %v8305_v40  ;;  %v8665_v62 = vpop.f32.mrf.mxu1 }
 0x3d4   :  { %v8625_v53 = vsel %vm3548_vm11, %v9041_v6, %v8367_v27  ;;  %v444_v57 = vmul.f32 %v8532_v18, %v9042_v36  ;;  %4368 = vcosq.f32 %v3530_v48  ;;  %v3735_v27 = vsel %vm3652_vm1, %v3734_v11, %v3733_v59  ;;  %v4353_v45 = vpop.eup %4352  ;;  %v9046_v11 = vld [vmem:[#allocation8_spill] sm:$0xff] }
 0x3d5   :  { %v482_v43 = vmul.f32 1.442695, %v442_v61  ;;  %v445_v20 = vmul.f32 %v8549_v7, %v9043_v21  ;;  %4370 = vsinq.f32 %v3530_v48  ;;  %v3635_v14 = vsel %vm8569_vm15, 0, %v8625_v53  ;;  %v9057_v53 = vld [vmem:[#allocation15_spill] sm:$0xff] }
 0x3d6   :  { %v3736_v17 = vsub.s32 4, %v8494_v23  ;;  %v3820_v40 = vsub.s32 0, %v8632_v2  ;;  %4372 = vcosq.f32 %v3634_v49  ;;  %v8652_v60 = vsel %vm8587_vm5, %v8221_v12, %v3735_v27 }
 0x3d7   :  { %v484_v4 = vmul.f32 1.442695, %v443_v26  ;;  %v446_v15 = vmul.f32 %v8532_v18, %v9044_v37  ;;  %4374 = vsinq.f32 %v3634_v49  ;;  %v3858_v51 = vmul.f32 %v4353_v45, %v9045_v41  ;;  %v4355_v5 = vpop.eup %4354  ;;  %v9047_v49 = vld [vmem:[#allocation9_spill] sm:$0xff]  ;;  %v8679_v37 = vpop.f32.mrf.mxu1 }
 0x3d8   :  { %v4099_v33 = vmin.u32 %v3820_v40, %v8632_v2  ;;  %v486_v3 = vmul.f32 1.442695, %v444_v57  ;;  %4376 = vpow2.f32 %v482_v43  ;;  %v488_v22 = vmul.f32 1.442695, %v445_v20  ;;  %v4357_v59 = vpop.eup %4356  ;;  %v9049_v40 = vld [vmem:[#allocation11_spill] sm:$0xff] }
 0x3d9   :  { %v447_v25 = vmul.f32 %v8549_v7, %v8401_v44  ;;  %v448_v0 = vmul.f32 %v8532_v18, %v8419_v1  ;;  %4378 = vcosq.f32 %v8652_v60  ;;  %v3810_v38 = vadd.s32 %v8535_v56, %v8541_v58  ;;  %3890 = vst [vmem:[#allocation2] sm:$0xff] %v3858_v51  ;;  %v9048_v1 = vld [vmem:[#allocation13_spill] sm:$0xff] }
 0x3da   :  { %v3822_v47 = vclz %v4099_v33  ;;  %v490_v48 = vmul.f32 1.442695, %v446_v15  ;;  %v4359_v6 = vpop.eup %4358  ;;  %v3859_v61 = vmul.f32 %v4357_v59, %v9046_v11  ;;  %v3860_v26 = vmul.f32 %v4355_v5, %v9047_v49 }
 0x3db   :  { %4380 = vpow2.f32 %v484_v4  ;;  %v492_v44 = vmul.f32 1.442695, %v447_v25  ;;  %v3862_v57 = vmul.f32 %v4359_v6, %v9048_v1  ;;  %v494_v27 = vmul.f32 1.442695, %v448_v0 }
 0x3dc   :  { %v4100_v36 = vadd.s32 4294967294, %v3822_v47  ;;  %4382 = vpow2.f32 %v486_v3  ;;  %v4361_v43 = vpop.eup %4360  ;;  %3891 = vst [vmem:[#allocation2 + $0x8] sm:$0xff] %v3859_v61  ;;  %3892 = vst [vmem:[#allocation2 + $0x10] sm:$0xff] %v3860_v26  ;;  %v449_v56 = vmul.f32 %v8549_v7, %v8453_v16  ;;  %v450_v58 = vmul.f32 %v8532_v18, %v8469_v29  ;;  %v9050_v16 = vld [vmem:[#allocation14_spill] sm:$0xff] }
 0x3dd   :  { %4384 = vpow2.f32 %v488_v22  ;;  %v451_v21 = vmul.f32 %v8549_v7, %v8489_v54  ;;  %v4363_v20 = vpop.eup %4362  ;;  %v3861_v45 = vmul.f32 %v4361_v43, %v9049_v40  ;;  %3894 = vst [vmem:[#allocation2 + $0x20] sm:$0xff] %v3862_v57  ;;  %v452_v4 = vmul.f32 %v8532_v18, %v8505_v24  ;;  %v9051_v22 = vld [vmem:[#allocation16_spill] sm:$0xff]  ;;  %v9052_v24 = vld [vmem:[#allocation7_spill] sm:$0xff] }
 0x3de   :  { %vm4101_vm9 = vcmp.lt.s32.totalorder %v4100_v36, 0  ;;  %4386 = vpow2.f32 %v490_v48  ;;  %v4365_v15 = vpop.eup %4364  ;;  %v3863_v41 = vmul.f32 %v4363_v20, %v9050_v16  ;;  %v496_v29 = vmul.f32 1.442695, %v449_v56 }
 0x3df   :  { %v3825_v33 = vsel %vm4101_vm9, 0, %v4100_v36  ;;  %4388 = vpow2.f32 %v492_v44  ;;  %v4367_v51 = vpop.eup %4366  ;;  %3893 = vst [vmem:[#allocation2 + $0x18] sm:$0xff] %v3861_v45  ;;  %v3864_v25 = vmul.f32 %v4365_v15, %v9051_v22  ;;  %vm3756_vm2 = vcmp.lt.s32.totalorder %v8357_v8, 0 }
 0x3e0   :  { %v3826_v3 = vsub.s32 32, %v3825_v33  ;;  %v3827_v54 = vshll.u32 %v8632_v2, %v3825_v33  ;;  %v3830_v5 = vsub.s32 4294967266, %v3825_v33  ;;  %3895 = vst [vmem:[#allocation2 + $0x28] sm:$0xff] %v3863_v41  ;;  %v3865_v0 = vmul.f32 %v4367_v51, %v9052_v24  ;;  %v411_v2 = vpop.f32.mrf.mxu1 }
 0x3e1   :  { %4390 = vpow2.f32 %v494_v27  ;;  %v498_v59 = vmul.f32 1.442695, %v450_v58  ;;  %v500_v47 = vmul.f32 1.442695, %v451_v21  ;;  %v8686_v48 = vpop.eup %4368  ;;  %3896 = vst [vmem:[#allocation2 + $0x30] sm:$0xff] %v3864_v25  ;;  %v453_v26 = vmul.f32 %v8549_v7, %v8518_v28 }
 0x3e2   :  { %v3828_v6 = vshrl.u32 %v3810_v38, %v3826_v3  ;;  %v3831_v11 = vadd.s32 127, %v3830_v5  ;;  %4392 = vpow2.f32 %v496_v29  ;;  %v502_v61 = vmul.f32 1.442695, %v452_v4  ;;  %v8688_v49 = vpop.eup %4370  ;;  %3897 = vst [vmem:[#allocation2 + $0x38] sm:$0xff] %v3865_v0  ;;  %v413_v45 = vpop.f32.mrf.mxu1  ;;  %v9059_v0 = vld [vmem:[#allocation18_spill] sm:$0xff] }
 0x3e3   :  { %4394 = vpow2.f32 %v498_v59  ;;  %v454_v44 = vmul.f32 %v8532_v18, %v8529_v32  ;;  %v455_v36 = vmul.f32 %v8549_v7, %v8545_v42  ;;  %v8696_v1 = vpop.eup %4372  ;;  %v456_v27 = vmul.f32 %v8532_v18, %v8565_v9 }
 0x3e4   :  { %v3829_v38 = vor.u32 %v3828_v6, %v3827_v54  ;;  %v3832_v57 = vshll.u32 %v3831_v11, 23  ;;  %4396 = vpow2.f32 %v500_v47  ;;  %v8700_v43 = vpop.eup %4374  ;;  %v8707_v28 = vsel %vm3652_vm1, %v3736_v17, %v8494_v23  ;;  %v9056_v17 = vld [vmem:[#allocation10_spill] sm:$0xff]  ;;  %v417_v24 = vpop.f32.mrf.mxu1 }
 0x3e5   :  { %4398 = vpow2.f32 %v502_v61  ;;  %v504_v32 = vmul.f32 1.442695, %v453_v26  ;;  %v506_v42 = vmul.f32 1.442695, %v454_v44  ;;  %v4377_v56 = vpop.eup %4376  ;;  %v9053_v58 = vand.u32 2147483647, %v8357_v8 }
 0x3e6   :  { %4400 = vsinq.f32 %v8652_v60  ;;  %v3833_v9 = vor.u32 4788187, %v3832_v57  ;;  %v3840_v20 = vsub.s32 4, %v8602_v31  ;;  %v508_v40 = vmul.f32 1.442695, %v455_v36  ;;  %v8717_v4 = vpop.eup %4378  ;;  %v9060_v26 = vld [vmem:[#allocation19_spill] sm:$0xff] }
 0x3e7   :  { %vm8712_vm0 = vcmp.le.f32.partialorder %v9053_v58, 0.7853982  ;;  %v8723_v23 = vadd.s32 3, %v3635_v14  ;;  %v3866_v60 = vmul.f32 %v4377_v56, %v9056_v17  ;;  %4402 = vpow2.f32 %v504_v32  ;;  %v419_v58 = vpop.f32.mrf.mxu1  ;;  %v9063_v17 = vld [vmem:[#allocation21_spill] sm:$0xff] }
 0x3e8   :  { %v510_v15 = vmul.f32 1.442695, %v456_v27  ;;  %v4381_v33 = vpop.eup %4380  ;;  %v3834_v16 = vand.u32 2147483647, %v3833_v9  ;;  %v3836_v41 = vcvt.s32.f32 %v3829_v38  ;;  %4404 = vpow2.f32 %v506_v42  ;;  %v9061_v38 = vld [vmem:[#allocation17_spill] sm:$0xff]  ;;  %v9062_v9 = vld [vmem:[#allocation20_spill] sm:$0xff] }
 0x3e9   :  { %v457_v29 = vmul.f32 %v8549_v7, %v8591_v35  ;;  %v4383_v51 = vpop.eup %4382  ;;  %v3739_v50 = vsel %vm8587_vm5, 0, %v8707_v28  ;;  %3898 = vst [vmem:[#allocation2 + $0x40] sm:$0xff] %v3866_v60  ;;  %v3867_v14 = vmul.f32 %v4381_v33, %v9057_v53  ;;  %4406 = vpow2.f32 %v508_v40  ;;  %v9058_v35 = vld [vmem:[#allocation12_spill] sm:$0xff] }
 0x3ea   :  { %v458_v3 = vmul.f32 %v8532_v18, %v8618_v13  ;;  %v4385_v54 = vpop.eup %4384  ;;  %v3837_v5 = vmul.f32 %v3836_v41, %v3834_v16  ;;  %v8737_v22 = vsel %vm3756_vm2, %v3840_v20, %v8602_v31  ;;  %v3868_v25 = vmul.f32 %v4383_v51, %v9058_v35 }
 0x3eb   :  { %4408 = vpow2.f32 %v510_v15  ;;  %v4387_v55 = vpop.eup %4386  ;;  %3899 = vst [vmem:[#allocation2 + $0x48] sm:$0xff] %v3867_v14  ;;  %v3869_v59 = vmul.f32 %v4385_v54, %v9059_v0  ;;  %v512_v47 = vmul.f32 1.442695, %v457_v29  ;;  %v459_v13 = vmul.f32 %v8549_v7, %v8647_v46  ;;  %v9064_v29 = vld [vmem:[#allocation5_spill] sm:$0xff] }
 0x3ec   :  { %v514_v6 = vmul.f32 1.442695, %v458_v3  ;;  %v4389_v11 = vpop.eup %4388  ;;  %v3838_v61 = vxor.u32 2147483648, %v3837_v5  ;;  %3900 = vst [vmem:[#allocation2 + $0x50] sm:$0xff] %v3868_v25  ;;  %v3870_v44 = vmul.f32 %v4387_v55, %v9060_v26  ;;  %v460_v31 = vmul.f32 %v8532_v18, %v8665_v62  ;;  %v9065_v3 = vld [vmem:[#allocation22_spill] sm:$0xff]  ;;  %v9067_v55 = vld [vmem:[#allocation24_spill] sm:$0xff] }
 0x3ed   :  { %v461_v36 = vmul.f32 %v8549_v7, %v8679_v37  ;;  %3901 = vst [vmem:[#allocation2 + $0x58] sm:$0xff] %v3869_v59  ;;  %v3871_v57 = vmul.f32 %v4389_v11, %v9061_v38  ;;  %4410 = vpow2.f32 %v512_v47  ;;  %v516_v27 = vmul.f32 1.442695, %v459_v13  ;;  %v9068_v13 = vld [vmem:[#allocation25_spill] sm:$0xff]  ;;  %v9069_v11 = vld [vmem:[#allocation26_spill] sm:$0xff] }
 0x3ee   :  { %v462_v28 = vmul.f32 %v8532_v18, %v411_v2  ;;  %v4391_v32 = vpop.eup %4390  ;;  %v3839_v46 = vsel %vm3756_vm2, %v3838_v61, %v3837_v5  ;;  %3902 = vst [vmem:[#allocation2 + $0x60] sm:$0xff] %v3870_v44  ;;  %4412 = vpow2.f32 %v514_v6  ;;  %v518_v42 = vmul.f32 1.442695, %v460_v31 }
 0x3ef   :  { %v520_v56 = vmul.f32 1.442695, %v461_v36  ;;  %v4393_v62 = vpop.eup %4392  ;;  %vm3433_vm10 = vcmp.lt.s32.totalorder %v8481_v19, 2  ;;  %v3842_v37 = vsel %vm8712_vm0, %v8357_v8, %v3839_v46  ;;  %3903 = vst [vmem:[#allocation2 + $0x68] sm:$0xff] %v3871_v57  ;;  %v3872_v20 = vmul.f32 %v4391_v32, %v9062_v9  ;;  %v9070_v36 = vld [vmem:[#allocation27_spill] sm:$0xff] }
 0x3f0   :  { %4414 = vpow2.f32 %v516_v27  ;;  %v522_v2 = vmul.f32 1.442695, %v462_v28  ;;  %v4395_v40 = vpop.eup %4394  ;;  %v3873_v60 = vmul.f32 %v4393_v62, %v9063_v17  ;;  %v463_v15 = vmul.f32 %v8549_v7, %v413_v45  ;;  %v9066_v45 = vld [vmem:[#allocation23_spill] sm:$0xff]  ;;  %v9071_v28 = vld [vmem:[#allocation28_spill] sm:$0xff] }
 0x3f1   :  { %4416 = vcosq.f32 %v3842_v37  ;;  %v464_v33 = vmul.f32 %v8532_v18, %v417_v24  ;;  %v4397_v16 = vpop.eup %4396  ;;  %v3743_v41 = vadd.s32 3, %v3739_v50  ;;  %3904 = vst [vmem:[#allocation2 + $0x70] sm:$0xff] %v3872_v20  ;;  %v3874_v51 = vmul.f32 %v4395_v40, %v9064_v29  ;;  %v9073_v40 = vld [vmem:[#allocation30_spill] sm:$0xff] }
 0x3f2   :  { %4418 = vsinq.f32 %v3842_v37  ;;  %v465_v53 = vmul.f32 %v8549_v7, %v419_v58  ;;  %v4399_v14 = vpop.eup %4398  ;;  %3905 = vst [vmem:[#allocation2 + $0x78] sm:$0xff] %v3873_v60  ;;  %v3875_v54 = vmul.f32 %v4397_v16, %v9065_v3  ;;  %v524_v5 = vmul.f32 1.442695, %v463_v15 }
 0x3f3   :  { %4420 = vpow2.f32 %v518_v42  ;;  %v526_v35 = vmul.f32 1.442695, %v464_v33  ;;  %v4401_v25 = vpop.eup %4400  ;;  %vm3537_vm4 = vcmp.lt.s32.totalorder %v8485_v34, 2  ;;  %v3843_v18 = vsel %vm8712_vm0, 0, %v8737_v22  ;;  %3906 = vst [vmem:[#allocation2 + $0x80] sm:$0xff] %v3874_v51  ;;  %v9072_v42 = vld [vmem:[#allocation29_spill] sm:$0xff] }
 0x3f4   :  { %v3876_v50 = vmul.f32 %v4399_v14, %v9066_v45  ;;  %4422 = vpow2.f32 %v520_v56  ;;  %v528_v24 = vmul.f32 1.442695, %v465_v53  ;;  %v4403_v7 = vpop.eup %4402  ;;  %vm3326_vm13 = vweird.f32 %v9067_v55  ;;  %3907 = vst [vmem:[#allocation2 + $0x88] sm:$0xff] %v3875_v54 }
 0x3f5   :  { %v3539_v0 = vxor.u32 2147483648, %v8688_v49  ;;  %v3542_v59 = vxor.u32 2147483648, %v8686_v48  ;;  %v3640_v47 = vand.u32 3, %v8723_v23  ;;  %4424 = vpow2.f32 %v522_v2  ;;  %v4405_v6 = vpop.eup %4404 }
 0x3f6   :  { %vm3430_vm6 = vweird.f32 %v9068_v13  ;;  %v3646_v21 = vxor.u32 2147483648, %v8696_v1  ;;  %v3744_v22 = vand.u32 3, %v3743_v41  ;;  %3908 = vst [vmem:[#allocation2 + $0x90] sm:$0xff] %v3876_v50  ;;  %v3877_v61 = vmul.f32 %v4403_v7, %v9069_v11  ;;  %v4407_v26 = vpop.eup %4406 }
 0x3f7   :  { %4426 = vpow2.f32 %v524_v5  ;;  %v3643_v44 = vxor.u32 2147483648, %v8700_v43  ;;  %v3847_v31 = vadd.s32 3, %v3843_v18  ;;  %v3878_v38 = vmul.f32 %v4405_v6, %v9070_v36 }
 0x3f8   :  { %4428 = vpow2.f32 %v526_v35  ;;  %v4409_v23 = vpop.eup %4408  ;;  %v3747_v57 = vxor.u32 2147483648, %v4401_v25  ;;  %v3750_v27 = vxor.u32 2147483648, %v8717_v4  ;;  %3909 = vst [vmem:[#allocation2 + $0x98] sm:$0xff] %v3877_v61  ;;  %v3879_v32 = vmul.f32 %v4407_v26, %v9071_v28 }
 0x3f9   :  { %4430 = vpow2.f32 %v528_v24  ;;  %v3440_v46 = vsel %vm3433_vm10, %v8612_v30, %v8600_v63  ;;  %vm3538_vm3 = vcmp.eq.s32.totalorder %v8485_v34, 0  ;;  %vm3541_vm8 = vcmp.eq.s32.totalorder %v8485_v34, 2  ;;  %3910 = vst [vmem:[#allocation2 + $0xa0] sm:$0xff] %v3878_v38 }
 0x3fa   :  { %v3880_v56 = vmul.f32 %v4409_v23, %v9072_v42  ;;  %v3540_v58 = vsel %vm3538_vm3, %v8686_v48, %v3539_v0  ;;  %v3543_v62 = vsel %vm3541_vm8, %v3542_v59, %v8688_v49  ;;  %vm3642_vm7 = vcmp.eq.s32.totalorder %v3640_v47, 0  ;;  %3911 = vst [vmem:[#allocation2 + $0xa8] sm:$0xff] %v3879_v32  ;;  %v4411_v37 = vpop.eup %4410 }
 0x3fb   :  { %vm3645_vm11 = vcmp.eq.s32.totalorder %v3640_v47, 2  ;;  %v3644_v9 = vsel %vm3642_vm7, %v8696_v1, %v3643_v44  ;;  %vm3746_vm12 = vcmp.eq.s32.totalorder %v3744_v22, 0  ;;  %vm3749_vm14 = vcmp.eq.s32.totalorder %v3744_v22, 2  ;;  %v4413_v63 = vpop.eup %4412  ;;  %v9074_v1 = vld [vmem:[#allocation32_spill] sm:$0xff] }
 0x3fc   :  { %v3647_v19 = vsel %vm3645_vm11, %v3646_v21, %v8700_v43  ;;  %3912 = vst [vmem:[#allocation2 + $0xb0] sm:$0xff] %v3880_v56  ;;  %v3748_v30 = vsel %vm3746_vm12, %v8717_v4, %v3747_v57  ;;  %v3751_v20 = vsel %vm3749_vm14, %v3750_v27, %v4401_v25  ;;  %v3848_v2 = vand.u32 3, %v3847_v31  ;;  %v9075_v4 = vld [vmem:[#allocation35_spill] sm:$0xff] }
 0x3fd   :  { %v3881_v48 = vmul.f32 %v4411_v37, %v9073_v40  ;;  %v4415_v17 = vpop.eup %4414  ;;  %vm3534_vm15 = vweird.f32 %v8008_v10  ;;  %v3544_v49 = vsel %vm3537_vm4, %v3540_v58, %v3543_v62  ;;  %vm3641_vm1 = vcmp.lt.s32.totalorder %v3640_v47, 2 }
 0x3fe   :  { %v3882_v60 = vmul.f32 %v4413_v63, %v9074_v1  ;;  %v4417_v43 = vpop.eup %4416  ;;  %v3337_v15 = vsel %vm3326_vm13, nan, %v8483_v52  ;;  %v3648_v33 = vsel %vm3641_vm1, %v3644_v9, %v3647_v19  ;;  %vm3745_vm5 = vcmp.lt.s32.totalorder %v3744_v22, 2 }
 0x3ff   :  { %3913 = vst [vmem:[#allocation2 + $0xb8] sm:$0xff] %v3881_v48  ;;  %v3883_v16 = vmul.f32 %v4415_v17, %v9075_v4  ;;  %v4419_v41 = vpop.eup %4418  ;;  %v3441_v29 = vsel %vm3430_vm6, nan, %v3440_v46  ;;  %vm3638_vm9 = vweird.f32 %v8128_v39  ;;  %v3752_v34 = vsel %vm3745_vm5, %v3748_v30, %v3751_v20 }
 0x400   :  { %v3854_v51 = vxor.u32 2147483648, %v4417_v43  ;;  %3914 = vst [vmem:[#allocation2 + $0xc0] sm:$0xff] %v3882_v60  ;;  %v4421_v53 = vpop.eup %4420  ;;  %v3545_v14 = vsel %vm3534_vm15, nan, %v3544_v49  ;;  %vm3742_vm2 = vweird.f32 %v8221_v12  ;;  %v3851_v52 = vxor.u32 2147483648, %v4419_v41 }
 0x401   :  { %vm3853_vm0 = vcmp.eq.s32.totalorder %v3848_v2, 2  ;;  %3915 = vst [vmem:[#allocation2 + $0xc8] sm:$0xff] %v3883_v16  ;;  %v4423_v3 = vpop.eup %4422  ;;  %v3649_v54 = vsel %vm3638_vm9, nan, %v3648_v33  ;;  %vm3850_vm10 = vcmp.eq.s32.totalorder %v3848_v2, 0  ;;  %v3884_v35 = vmul.f32 %v4421_v53, %v3337_v15 }
 0x402   :  { %v3855_v5 = vsel %vm3853_vm0, %v3854_v51, %v4419_v41  ;;  %v4425_v25 = vpop.eup %4424  ;;  %v3753_v18 = vsel %vm3742_vm2, nan, %v3752_v34  ;;  %vm3849_vm4 = vcmp.lt.s32.totalorder %v3848_v2, 2  ;;  %v3852_v39 = vsel %vm3850_vm10, %v4417_v43, %v3851_v52 }
 0x403   :  { %v3885_v45 = vmul.f32 %v4423_v3, %v3441_v29  ;;  %vm3846_vm13 = vweird.f32 %v8357_v8  ;;  %v3856_v10 = vsel %vm3849_vm4, %v3852_v39, %v3855_v5  ;;  %3916 = vst [vmem:[#allocation2 + $0xd0] sm:$0xff] %v3884_v35  ;;  %v3886_v24 = vmul.f32 %v4425_v25, %v3545_v14 }
 0x404   :  { %v4427_v50 = vpop.eup %4426  ;;  %v3857_v7 = vsel %vm3846_vm13, nan, %v3856_v10 }
 0x405   :  { %v4429_v12 = vpop.eup %4428  ;;  %3917 = vst [vmem:[#allocation2 + $0xd8] sm:$0xff] %v3885_v45  ;;  %v3887_v55 = vmul.f32 %v4427_v50, %v3649_v54  ;;  %3918 = vst [vmem:[#allocation2 + $0xe0] sm:$0xff] %v3886_v24 }
 0x406   :  { %v4431_v0 = vpop.eup %4430  ;;  %v3888_v59 = vmul.f32 %v4429_v12, %v3753_v18 }
 0x407   :  { %3919 = vst [vmem:[#allocation2 + $0xe8] sm:$0xff] %v3887_v55  ;;  %v3889_v47 = vmul.f32 %v4431_v0, %v3857_v7 }
 0x408   :  { %3920 = vst [vmem:[#allocation2 + $0xf0] sm:$0xff] %v3888_v59 }
 0x409   :  { %3921 = vst [vmem:[#allocation2 + $0xf8] sm:$0xff] %v3889_v47 }
 0x40a   :  { %4443 = shalt.err (!%p4440_p4)
}
 0x40b   :  { %s4462_s28 = smov 256   ;;  %s4463_s29 = smov 16  }
 0x40c   :  { %3933 = dma.vmem_to_hbm [thread:$0]  %s3928_s27, 4096, %s8814_s4, [#allocation3], %s4462_s28, %s4462_s28, %s4463_s29  }
 0x40d   :  { %4452 = dma.done.wait [#allocation3], 4096  }
 0x40e   :  { %4453 = vsyncadd [#allocation3], 4294963200 }
 0x40f   :  { %3937 = vsyncpa [#allocation3], 1 }

</bundles_post_ra>
